<compile_context>
chip_gen: v6e
topology: v6e:2x2x1
jax: 0.10.0
libtpu: 0.0.40
codegen_flags: <defaults>
</compile_context>

<pallas_src>
import math
import jax
import jax.numpy as jnp
from jax.experimental import pallas as pl
from jax.experimental.pallas import tpu as pltpu

# ------------------------- config (small synthetic shapes) -------------------------
D = 32          # transformer width (ctx_dim)
E = 32          # joint embedding dim (text_projection / visual proj output)
MLP = 64        # MLP hidden
N_CLS = 4       # number of classnames
N_CTX = 2       # number of learned context tokens
L_TXT = 8       # text context length
N_LAYERS_TXT = 2
N_LAYERS_VIS = 2
B = 2           # image batch
C = 3           # image channels
IMG = 16        # image resolution
PATCH = 8       # ViT patch size
N_PATCH = (IMG // PATCH) ** 2
L_VIS = N_PATCH + 1       # class token + patches (= 5)
L_PAD = 8                 # vision sequence padded to 8 tokens (tile-aligned)
CPP = C * PATCH * PATCH   # im2col patch width (= 192)

LAYER_FIELDS = ('ln1_g', 'ln1_b', 'wqkv', 'bqkv', 'wo', 'bo',
                'ln2_g', 'ln2_b', 'w1', 'b1', 'w2', 'b2')


# ------------------------------- fused Pallas kernel --------------------------------

def fused_clip_kernel(*refs):
    """Whole CustomCLIP_teacher forward in one kernel (everything VMEM-resident)."""
    f32 = jnp.float32
    it = iter(refs)
    # ---- text-branch inputs ----
    prefix_ref = next(it); ctx_ref = next(it); suffix_ref = next(it)
    pos_t_ref = next(it); eot_ref = next(it)
    t_lw = {f: next(it) for f in LAYER_FIELDS}
    lnf_g_ref = next(it); lnf_b_ref = next(it); tproj_ref = next(it)
    # ---- vision-branch inputs ----
    patches_ref = next(it); wpatch_ref = next(it); cls_ref = next(it); posv_ref = next(it)
    lnpre_g_ref = next(it); lnpre_b_ref = next(it)
    v_lw = {f: next(it) for f in LAYER_FIELDS}
    lnpost_g_ref = next(it); lnpost_b_ref = next(it); vproj_ref = next(it)
    scale_ref = next(it)
    # ---- outputs ----
    imf_ref = next(it); txf_ref = next(it); logits_ref = next(it)
    # ---- scratch ----
    xt_ref = next(it); xv_ref = next(it)

    def ln_rows(z, g, b):
        mu = jnp.mean(z, axis=-1, keepdims=True)
        var = jnp.mean((z - mu) ** 2, axis=-1, keepdims=True)
        return (z - mu) * jax.lax.rsqrt(var + 1e-5) * g + b

    def softmax_rows(s):
        s = s - jnp.max(s, axis=-1, keepdims=True)
        p = jnp.exp(s)
        return p * pl.reciprocal(jnp.sum(p, axis=-1, keepdims=True), approx=True)

    def run_layers(x, n, l, mask, lw, n_layers):
        # x: (n*l, D) f32, pre-LN residual attention blocks (single head, QuickGELU MLP)
        for i in range(n_layers):
            xn = ln_rows(x, lw['ln1_g'][i], lw['ln1_b'][i])
            qkv = jnp.dot(xn, lw['wqkv'][i], preferred_element_type=f32) + lw['bqkv'][i]
            q = qkv[:, 0:D].reshape(n, l, D)
            k = qkv[:, D:2 * D].reshape(n, l, D)
            v = qkv[:, 2 * D:3 * D].reshape(n, l, D)
            s = jnp.einsum('nqd,nkd->nqk', q, k,
                           preferred_element_type=f32) * (D ** -0.5)
            if mask is not None:
                s = s + mask
            p = softmax_rows(s)
            attn = jnp.einsum('nqk,nkd->nqd', p, v,
                              preferred_element_type=f32).reshape(n * l, D)
            attn = jnp.dot(attn, lw['wo'][i], preferred_element_type=f32) + lw['bo'][i]
            x = x + attn
            xn2 = ln_rows(x, lw['ln2_g'][i], lw['ln2_b'][i])
            h = jnp.dot(xn2, lw['w1'][i], preferred_element_type=f32) + lw['b1'][i]
            h = h * jax.nn.sigmoid(1.702 * h)
            h = jnp.dot(h, lw['w2'][i], preferred_element_type=f32) + lw['b2'][i]
            x = x + h
        return x

    # ======================= text branch =======================
    # prompts = cat([prefix, ctx, suffix], dim=1) assembled in VMEM scratch
    xt_ref[:, 0:1, :] = prefix_ref[...]
    xt_ref[:, 1:1 + N_CTX, :] = jnp.broadcast_to(ctx_ref[...][None, :, :],
                                                 (N_CLS, N_CTX, D))
    xt_ref[:, 1 + N_CTX:, :] = suffix_ref[...]

    xt = xt_ref[...].astype(f32) + pos_t_ref[...][None, :, :]
    xt = xt.reshape(N_CLS * L_TXT, D)

    qi = jax.lax.broadcasted_iota(jnp.int32, (L_TXT, L_TXT), 0)
    ki = jax.lax.broadcasted_iota(jnp.int32, (L_TXT, L_TXT), 1)
    causal = jnp.where(ki <= qi, 0.0, -1e9).astype(f32)

    xt = run_layers(xt, N_CLS, L_TXT, causal, t_lw, N_LAYERS_TXT)
    xt = ln_rows(xt, lnf_g_ref[...], lnf_b_ref[...])
    xt3 = xt.reshape(N_CLS, L_TXT, D)

    # EOT selection: one-hot built in-kernel from iota vs SMEM-free int32 indices
    pos_ids = jax.lax.broadcasted_iota(jnp.int32, (N_CLS, L_TXT), 1)
    onehot_eot = (pos_ids == eot_ref[...]).astype(f32)            # (N_CLS, L_TXT)
    sel = jnp.sum(onehot_eot[:, :, None] * xt3, axis=1)           # (N_CLS, D)
    txt = jnp.dot(sel, tproj_ref[...], preferred_element_type=f32)  # (N_CLS, E)

    # ======================= vision branch =======================
    pe = jnp.dot(patches_ref[...].astype(f32).reshape(B * N_PATCH, CPP),
                 wpatch_ref[...], preferred_element_type=f32).reshape(B, N_PATCH, D)
    xv_ref[:, 0:1, :] = jnp.broadcast_to(cls_ref[...][None, :, :], (B, 1, D))
    xv_ref[:, 1:1 + N_PATCH, :] = pe
    xv_ref[:, 1 + N_PATCH:, :] = jnp.zeros((B, L_PAD - 1 - N_PATCH, D), f32)

    xv = xv_ref[...].astype(f32) + posv_ref[...][None, :, :]
    xv = xv.reshape(B * L_PAD, D)
    xv = ln_rows(xv, lnpre_g_ref[...], lnpre_b_ref[...])

    # pad tokens are masked as attention keys -> exact match with unpadded compute
    kv = jax.lax.broadcasted_iota(jnp.int32, (L_PAD, L_PAD), 1)
    pad_mask = jnp.where(kv < L_VIS, 0.0, -1e9).astype(f32)

    xv = run_layers(xv, B, L_PAD, pad_mask, v_lw, N_LAYERS_VIS)
    xv3 = xv.reshape(B, L_PAD, D)

    cls_oh = (jax.lax.broadcasted_iota(jnp.int32, (B, L_PAD), 1) == 0).astype(f32)
    clsv = jnp.sum(cls_oh[:, :, None] * xv3, axis=1)              # (B, D)
    clsv = ln_rows(clsv, lnpost_g_ref[...], lnpost_b_ref[...])
    img = jnp.dot(clsv, vproj_ref[...], preferred_element_type=f32)  # (B, E)

    # ======================= normalize + logits =======================
    img_n = img * jax.lax.rsqrt(jnp.sum(img * img, axis=-1, keepdims=True) + 1e-12)
    txt_n = txt * jax.lax.rsqrt(jnp.sum(txt * txt, axis=-1, keepdims=True) + 1e-12)
    scale = jnp.exp(scale_ref[0, 0])

    imf_ref[...] = img_n.astype(imf_ref.dtype)
    txf_ref[...] = txt_n.astype(txf_ref.dtype)
    logits_ref[...] = (scale * jnp.dot(img_n, txt_n.T,
                                       preferred_element_type=f32)
                       ).astype(logits_ref.dtype)


# ------------------------------- pallas_call wrapper --------------------------------

def _vmem():
    return pl.BlockSpec(memory_space=pltpu.MemorySpace.VMEM)


def fused_forward(packed, patches):
    inputs = [
        packed['token_prefix'], packed['ctx'], packed['token_suffix'],
        packed['pos_text'], packed['eot'],
        *[packed['t_' + f] for f in LAYER_FIELDS],
        packed['ln_final_g'], packed['ln_final_b'], packed['text_projection'],
        patches, packed['w_patch'], packed['class_embedding'], packed['pos_vis'],
        packed['ln_pre_g'], packed['ln_pre_b'],
        *[packed['v_' + f] for f in LAYER_FIELDS],
        packed['ln_post_g'], packed['ln_post_b'], packed['visual_proj'],
        packed['logit_scale'],
    ]
    in_specs = [_vmem()] * (len(inputs) - 1) + \
               [pl.BlockSpec(memory_space=pltpu.MemorySpace.SMEM)]   # logit_scale scalar
    out_shape = (jax.ShapeDtypeStruct((B, E), jnp.float32),
                 jax.ShapeDtypeStruct((N_CLS, E), jnp.float32),
                 jax.ShapeDtypeStruct((B, N_CLS), jnp.float32))
    return pl.pallas_call(
        fused_clip_kernel,
        out_shape=out_shape,
        in_specs=in_specs,
        out_specs=(_vmem(), _vmem(), _vmem()),
        scratch_shapes=[pltpu.VMEM((N_CLS, L_TXT, D), jnp.float32),   # prompt assembly
                        pltpu.VMEM((B, L_PAD, D), jnp.float32)],      # padded vision seq
    )(*inputs)


# ------------------------------- parameter construction -----------------------------

def init_params(key):
    keys = iter(jax.random.split(key, 128))

    def nrm(shape, std=0.02):
        return (std * jax.random.normal(next(keys), shape)).astype(jnp.float32)

    def layer_params():
        return dict(
            ln1_g=1.0 + nrm((1, D), 0.01), ln1_b=nrm((1, D), 0.01),
            wq=nrm((D, D)), bq=nrm((1, D), 0.01),
            wk=nrm((D, D)), bk=nrm((1, D), 0.01),
            wv=nrm((D, D)), bv=nrm((1, D), 0.01),
            wo=nrm((D, D)), bo=nrm((1, D), 0.01),
            ln2_g=1.0 + nrm((1, D), 0.01), ln2_b=nrm((1, D), 0.01),
            w1=nrm((D, MLP)), b1=nrm((1, MLP), 0.01),
            w2=nrm((MLP, D)), b2=nrm((1, D), 0.01),
        )

    # synthetic token_embedding(tokenized_prompts) output, std=0.02 like CLIP
    # TODO(synk): clip.tokenize + token_embedding lookup have no Pallas equivalent;
    # the embedded prompts are synthesized deterministically instead.
    embedding = nrm((N_CLS, L_TXT, D))
    ctx = nrm((N_CTX, D))                           # nn.init.normal_(std=0.02)

    # tokenized prompts: argmax along dim=-1 marks the EOT position.
    base = jax.random.randint(next(keys), (N_CLS, L_TXT), 1, 400, dtype=jnp.int32)
    eot_pos = jnp.array([4, 5, 6, 7], dtype=jnp.int32)
    tokenized = base.at[jnp.arange(N_CLS), eot_pos].set(49407)

    params = dict(
        # prompt learner ('cross' modal: prefix/suffix cover all classes)
        token_prefix=embedding[:, :1, :],
        token_suffix=embedding[:, 1 + N_CTX:, :],
        ctx=ctx,
        tokenized_prompts=tokenized,
        # text encoder
        pos_text=nrm((L_TXT, D), 0.01),
        text_layers=[layer_params() for _ in range(N_LAYERS_TXT)],
        ln_final_g=1.0 + nrm((1, D), 0.01), ln_final_b=nrm((1, D), 0.01),
        text_projection=nrm((D, E), D ** -0.5),
        # image encoder (ViT): conv weight (D, C, P, P) folded to (C*P*P, D)
        w_patch=nrm((D, CPP)).T.reshape(CPP, D),
        class_embedding=nrm((1, 1, D)),
        pos_vis=nrm((L_VIS, D), 0.01),
        ln_pre_g=1.0 + nrm((1, D), 0.01), ln_pre_b=nrm((1, D), 0.01),
        vis_layers=[layer_params() for _ in range(N_LAYERS_VIS)],
        ln_post_g=1.0 + nrm((1, D), 0.01), ln_post_b=nrm((1, D), 0.01),
        visual_proj=nrm((D, E), D ** -0.5),
        # logit scale (CLIP init: log(1/0.07))
        logit_scale=jnp.full((1, 1), math.log(1.0 / 0.07), dtype=jnp.float32),
    )
    return params


def pack_params(p):
    """Stack per-layer weights, fuse QKV, pad pos_vis; run once outside the hot path."""
    def stack_layers(layers, prefix):
        out = {}
        out[prefix + 'wqkv'] = jnp.stack(
            [jnp.concatenate([lp['wq'], lp['wk'], lp['wv']], axis=1) for lp in layers])
        out[prefix + 'bqkv'] = jnp.stack(
            [jnp.concatenate([lp['bq'], lp['bk'], lp['bv']], axis=1) for lp in layers])
        for f in ('ln1_g', 'ln1_b', 'wo', 'bo', 'ln2_g', 'ln2_b', 'w1', 'b1', 'w2', 'b2'):
            out[prefix + f] = jnp.stack([lp[f] for lp in layers])
        return out

    packed = dict(
        token_prefix=p['token_prefix'],
        ctx=p['ctx'],
        token_suffix=p['token_suffix'],
        pos_text=p['pos_text'],
        eot=jnp.argmax(p['tokenized_prompts'], axis=-1).astype(jnp.int32).reshape(N_CLS, 1),
        ln_final_g=p['ln_final_g'], ln_final_b=p['ln_final_b'],
        text_projection=p['text_projection'],
        w_patch=p['w_patch'],
        class_embedding=p['class_embedding'].reshape(1, D),
        pos_vis=jnp.concatenate(
            [p['pos_vis'], jnp.zeros((L_PAD - L_VIS, D), jnp.float32)], axis=0),
        ln_pre_g=p['ln_pre_g'], ln_pre_b=p['ln_pre_b'],
        ln_post_g=p['ln_post_g'], ln_post_b=p['ln_post_b'],
        visual_proj=p['visual_proj'],
        logit_scale=p['logit_scale'],
    )
    packed.update(stack_layers(p['text_layers'], 't_'))
    packed.update(stack_layers(p['vis_layers'], 'v_'))
    return packed


# ------------------------------------- forward --------------------------------------

def patchify(img):
    """(B, C, H, W) NCHW -> (B, num_patches, C*P*P), matching a stride-P conv (im2col)."""
    hp = IMG // PATCH
    x = img.reshape(B, C, hp, PATCH, hp, PATCH)
    x = jnp.transpose(x, (0, 2, 4, 1, 3, 5))       # (B, hp, wp, C, P, P)
    return x.reshape(B, hp * hp, CPP)


def forward(packed, image):
    # single XLA glue op (im2col), then ONE fused pallas_call for everything else
    patches = patchify(image)
    return fused_forward(packed, patches)


# --------------------------------------- main ---------------------------------------

if __name__ == "__main__":
    key = jax.random.PRNGKey(0)
    pkey, ikey = jax.random.split(key)
    params = init_params(pkey)
    packed = pack_params(params)
    image = jax.random.normal(ikey, (B, C, IMG, IMG), dtype=jnp.float32)

    fwd = jax.jit(forward)
    image_features, text_features, logits = fwd(packed, image)
    jax.block_until_ready((image_features, text_features, logits))

    assert image_features.shape == (B, E)
    assert text_features.shape == (N_CLS, E)
    assert logits.shape == (B, N_CLS)
    # features must be unit-norm
    assert bool(jnp.allclose(jnp.linalg.norm(image_features, axis=-1), 1.0, atol=1e-4))
    assert bool(jnp.allclose(jnp.linalg.norm(text_features, axis=-1), 1.0, atol=1e-4))

    print("KERNEL_OK")
</pallas_src>

<mosaic_0001>
module attributes {stable_mosaic.version = 11 : i64} {
  func.func @fused_clip_kernel(%arg0: memref<4x1x32xf32, #tpu.memory_space<vmem>>, %arg1: memref<2x32xf32, #tpu.memory_space<vmem>>, %arg2: memref<4x5x32xf32, #tpu.memory_space<vmem>>, %arg3: memref<8x32xf32, #tpu.memory_space<vmem>>, %arg4: memref<4x1xi32, #tpu.memory_space<vmem>>, %arg5: memref<2x1x32xf32, #tpu.memory_space<vmem>>, %arg6: memref<2x1x32xf32, #tpu.memory_space<vmem>>, %arg7: memref<2x32x96xf32, #tpu.memory_space<vmem>>, %arg8: memref<2x1x96xf32, #tpu.memory_space<vmem>>, %arg9: memref<2x32x32xf32, #tpu.memory_space<vmem>>, %arg10: memref<2x1x32xf32, #tpu.memory_space<vmem>>, %arg11: memref<2x1x32xf32, #tpu.memory_space<vmem>>, %arg12: memref<2x1x32xf32, #tpu.memory_space<vmem>>, %arg13: memref<2x32x64xf32, #tpu.memory_space<vmem>>, %arg14: memref<2x1x64xf32, #tpu.memory_space<vmem>>, %arg15: memref<2x64x32xf32, #tpu.memory_space<vmem>>, %arg16: memref<2x1x32xf32, #tpu.memory_space<vmem>>, %arg17: memref<1x32xf32, #tpu.memory_space<vmem>>, %arg18: memref<1x32xf32, #tpu.memory_space<vmem>>, %arg19: memref<32x32xf32, #tpu.memory_space<vmem>>, %arg20: memref<2x4x192xf32, #tpu.memory_space<vmem>>, %arg21: memref<192x32xf32, #tpu.memory_space<vmem>>, %arg22: memref<1x32xf32, #tpu.memory_space<vmem>>, %arg23: memref<8x32xf32, #tpu.memory_space<vmem>>, %arg24: memref<1x32xf32, #tpu.memory_space<vmem>>, %arg25: memref<1x32xf32, #tpu.memory_space<vmem>>, %arg26: memref<2x1x32xf32, #tpu.memory_space<vmem>>, %arg27: memref<2x1x32xf32, #tpu.memory_space<vmem>>, %arg28: memref<2x32x96xf32, #tpu.memory_space<vmem>>, %arg29: memref<2x1x96xf32, #tpu.memory_space<vmem>>, %arg30: memref<2x32x32xf32, #tpu.memory_space<vmem>>, %arg31: memref<2x1x32xf32, #tpu.memory_space<vmem>>, %arg32: memref<2x1x32xf32, #tpu.memory_space<vmem>>, %arg33: memref<2x1x32xf32, #tpu.memory_space<vmem>>, %arg34: memref<2x32x64xf32, #tpu.memory_space<vmem>>, %arg35: memref<2x1x64xf32, #tpu.memory_space<vmem>>, %arg36: memref<2x64x32xf32, #tpu.memory_space<vmem>>, %arg37: memref<2x1x32xf32, #tpu.memory_space<vmem>>, %arg38: memref<1x32xf32, #tpu.memory_space<vmem>>, %arg39: memref<1x32xf32, #tpu.memory_space<vmem>>, %arg40: memref<32x32xf32, #tpu.memory_space<vmem>>, %arg41: memref<1x1xf32, #tpu.memory_space<smem>>, %arg42: memref<2x32xf32, #tpu.memory_space<vmem>>, %arg43: memref<4x32xf32, #tpu.memory_space<vmem>>, %arg44: memref<2x4xf32, #tpu.memory_space<vmem>>, %arg45: memref<4x8x32xf32, #tpu.memory_space<vmem>>, %arg46: memref<2x8x32xf32, #tpu.memory_space<vmem>>) attributes {dimension_semantics = [], scalar_prefetch = 0 : i64, scratch_operands = 2 : i64, tpu.core_type = #tpu.core_type<tc>} {
    %c0 = arith.constant 0 : index
    %c0_0 = arith.constant 0 : index
    %c0_1 = arith.constant 0 : index
    %0 = vector.load %arg0[%c0, %c0_0, %c0_1] : memref<4x1x32xf32, #tpu.memory_space<vmem>>, vector<4x1x32xf32>
    %c0_2 = arith.constant 0 : index
    %c0_3 = arith.constant 0 : index
    %c0_4 = arith.constant 0 : index
    %1 = vector.load %arg45[%c0_2, %c0_3, %c0_4] : memref<4x8x32xf32, #tpu.memory_space<vmem>>, vector<4x1x32xf32>
    tpu.vector_store %arg45[%c0_2, %c0_3, %c0_4], %0 {strides = array<i32>} : memref<4x8x32xf32, #tpu.memory_space<vmem>>, vector<4x1x32xf32>,
    %c0_5 = arith.constant 0 : index
    %c0_6 = arith.constant 0 : index
    %2 = vector.load %arg1[%c0_5, %c0_6] : memref<2x32xf32, #tpu.memory_space<vmem>>, vector<2x32xf32>
    %3 = vector.shape_cast %2 : vector<2x32xf32> to vector<1x2x32xf32>
    %4 = vector.shape_cast %3 : vector<1x2x32xf32> to vector<1x2x32xf32>
    %5 = vector.broadcast %4 : vector<1x2x32xf32> to vector<4x2x32xf32>
    %c0_7 = arith.constant 0 : index
    %c1 = arith.constant 1 : index
    %c0_8 = arith.constant 0 : index
    %6 = vector.load %arg45[%c0_7, %c1, %c0_8] : memref<4x8x32xf32, #tpu.memory_space<vmem>>, vector<4x2x32xf32>
    tpu.vector_store %arg45[%c0_7, %c1, %c0_8], %5 {strides = array<i32>} : memref<4x8x32xf32, #tpu.memory_space<vmem>>, vector<4x2x32xf32>,
    %c0_9 = arith.constant 0 : index
    %c0_10 = arith.constant 0 : index
    %c0_11 = arith.constant 0 : index
    %7 = vector.load %arg2[%c0_9, %c0_10, %c0_11] : memref<4x5x32xf32, #tpu.memory_space<vmem>>, vector<4x5x32xf32>
    %c0_12 = arith.constant 0 : index
    %c3 = arith.constant 3 : index
    %c0_13 = arith.constant 0 : index
    %8 = vector.load %arg45[%c0_12, %c3, %c0_13] : memref<4x8x32xf32, #tpu.memory_space<vmem>>, vector<4x5x32xf32>
    tpu.vector_store %arg45[%c0_12, %c3, %c0_13], %7 {strides = array<i32>} : memref<4x8x32xf32, #tpu.memory_space<vmem>>, vector<4x5x32xf32>,
    %c0_14 = arith.constant 0 : index
    %c0_15 = arith.constant 0 : index
    %c0_16 = arith.constant 0 : index
    %9 = vector.load %arg45[%c0_14, %c0_15, %c0_16] : memref<4x8x32xf32, #tpu.memory_space<vmem>>, vector<4x8x32xf32>
    %c0_17 = arith.constant 0 : index
    %c0_18 = arith.constant 0 : index
    %10 = vector.load %arg3[%c0_17, %c0_18] : memref<8x32xf32, #tpu.memory_space<vmem>>, vector<8x32xf32>
    %11 = vector.shape_cast %10 : vector<8x32xf32> to vector<1x8x32xf32>
    %12 = vector.broadcast %11 : vector<1x8x32xf32> to vector<4x8x32xf32>
    %13 = arith.addf %9, %12 : vector<4x8x32xf32>
    %14 = vector.shape_cast %13 : vector<4x8x32xf32> to vector<32x32xf32>
    %15 = tpu.iota {dimensions = array<i32: 0>} : vector<8x8xi32>
    %16 = tpu.iota {dimensions = array<i32: 1>} : vector<8x8xi32>
    %17 = arith.cmpi sle, %16, %15 : vector<8x8xi32>
    %cst = arith.constant 0.000000e+00 : f32
    %cst_19 = arith.constant -1.000000e+09 : f32
    %18 = vector.broadcast %cst : f32 to vector<8x8xf32>
    %19 = vector.broadcast %cst_19 : f32 to vector<8x8xf32>
    %20 = arith.select %17, %18, %19 : vector<8x8xi1>, vector<8x8xf32>
    %c0_20 = arith.constant 0 : index
    %c0_21 = arith.constant 0 : index
    %c0_22 = arith.constant 0 : index
    %21 = vector.load %arg5[%c0_20, %c0_21, %c0_22] : memref<2x1x32xf32, #tpu.memory_space<vmem>>, vector<1x1x32xf32>
    %22 = vector.shape_cast %21 : vector<1x1x32xf32> to vector<1x32xf32>
    %c0_23 = arith.constant 0 : index
    %c0_24 = arith.constant 0 : index
    %c0_25 = arith.constant 0 : index
    %23 = vector.load %arg6[%c0_23, %c0_24, %c0_25] : memref<2x1x32xf32, #tpu.memory_space<vmem>>, vector<1x1x32xf32>
    %24 = vector.shape_cast %23 : vector<1x1x32xf32> to vector<1x32xf32>
    %cst_26 = arith.constant dense<0.000000e+00> : vector<32xf32>
    %25 = vector.multi_reduction <add>, %14, %cst_26 [1] : vector<32x32xf32> to vector<32xf32>
    %26 = vector.shape_cast %25 : vector<32xf32> to vector<32x1xf32>
    %cst_27 = arith.constant 3.200000e+01 : f32
    %27 = vector.broadcast %cst_27 : f32 to vector<32x1xf32>
    %28 = arith.divf %26, %27 : vector<32x1xf32>
    %29 = vector.broadcast %28 : vector<32x1xf32> to vector<32x32xf32>
    %30 = arith.subf %14, %29 : vector<32x32xf32>
    %31 = arith.mulf %30, %30 : vector<32x32xf32>
    %cst_28 = arith.constant dense<0.000000e+00> : vector<32xf32>
    %32 = vector.multi_reduction <add>, %31, %cst_28 [1] : vector<32x32xf32> to vector<32xf32>
    %33 = vector.shape_cast %32 : vector<32xf32> to vector<32x1xf32>
    %cst_29 = arith.constant 3.200000e+01 : f32
    %34 = vector.broadcast %cst_29 : f32 to vector<32x1xf32>
    %35 = arith.divf %33, %34 : vector<32x1xf32>
    %36 = vector.broadcast %28 : vector<32x1xf32> to vector<32x32xf32>
    %37 = arith.subf %14, %36 : vector<32x32xf32>
    %cst_30 = arith.constant 9.99999974E-6 : f32
    %38 = vector.broadcast %cst_30 : f32 to vector<32x1xf32>
    %39 = arith.addf %35, %38 : vector<32x1xf32>
    %40 = math.rsqrt %39 : vector<32x1xf32>
    %41 = vector.broadcast %40 : vector<32x1xf32> to vector<32x32xf32>
    %42 = arith.mulf %37, %41 : vector<32x32xf32>
    %43 = vector.broadcast %22 : vector<1x32xf32> to vector<32x32xf32>
    %44 = arith.mulf %42, %43 : vector<32x32xf32>
    %45 = vector.broadcast %24 : vector<1x32xf32> to vector<32x32xf32>
    %46 = arith.addf %44, %45 : vector<32x32xf32>
    %c0_31 = arith.constant 0 : index
    %c0_32 = arith.constant 0 : index
    %c0_33 = arith.constant 0 : index
    %47 = vector.load %arg7[%c0_31, %c0_32, %c0_33] : memref<2x32x96xf32, #tpu.memory_space<vmem>>, vector<1x32x96xf32>
    %48 = vector.shape_cast %47 : vector<1x32x96xf32> to vector<32x96xf32>
    %cst_34 = arith.constant dense<0.000000e+00> : vector<32x96xf32>
    %49 = tpu.matmul %46, %48, %cst_34 {dimension_numbers = #tpu.dot_dimension_numbers<[1], [0], [0], [1], [0, 0, 1, 1], [], []>} : vector<32x32xf32>, vector<32x96xf32>, vector<32x96xf32> -> vector<32x96xf32>
    %c0_35 = arith.constant 0 : index
    %c0_36 = arith.constant 0 : index
    %c0_37 = arith.constant 0 : index
    %50 = vector.load %arg8[%c0_35, %c0_36, %c0_37] : memref<2x1x96xf32, #tpu.memory_space<vmem>>, vector<1x1x96xf32>
    %51 = vector.shape_cast %50 : vector<1x1x96xf32> to vector<1x96xf32>
    %52 = vector.broadcast %51 : vector<1x96xf32> to vector<32x96xf32>
    %53 = arith.addf %49, %52 : vector<32x96xf32>
    %54 = vector.extract_strided_slice %53 {offsets = [0, 0], sizes = [32, 32], strides = [1, 1]} : vector<32x96xf32> to vector<32x32xf32>
    %55 = vector.shape_cast %54 : vector<32x32xf32> to vector<4x8x32xf32>
    %56 = vector.extract_strided_slice %53 {offsets = [0, 32], sizes = [32, 32], strides = [1, 1]} : vector<32x96xf32> to vector<32x32xf32>
    %57 = vector.shape_cast %56 : vector<32x32xf32> to vector<4x8x32xf32>
    %58 = vector.extract_strided_slice %53 {offsets = [0, 64], sizes = [32, 32], strides = [1, 1]} : vector<32x96xf32> to vector<32x32xf32>
    %59 = vector.shape_cast %58 : vector<32x32xf32> to vector<4x8x32xf32>
    "tpu.trace_start"() <{level = 10 : i32, message = "nqd,nkd->nqk"}> : () -> ()
    %cst_38 = arith.constant dense<0.000000e+00> : vector<4x8x8xf32>
    %60 = tpu.matmul %55, %57, %cst_38 {dimension_numbers = #tpu.dot_dimension_numbers<[2], [2], [1], [1], [0, 0, 0, 1, 1, 1], [0], [0]>} : vector<4x8x32xf32>, vector<4x8x32xf32>, vector<4x8x8xf32> -> vector<4x8x8xf32>
    "tpu.trace_stop"() : () -> ()
    %cst_39 = arith.constant 0.176776692 : f32
    %61 = vector.broadcast %cst_39 : f32 to vector<4x8x8xf32>
    %62 = arith.mulf %60, %61 : vector<4x8x8xf32>
    %63 = vector.shape_cast %20 : vector<8x8xf32> to vector<1x8x8xf32>
    %64 = vector.broadcast %63 : vector<1x8x8xf32> to vector<4x8x8xf32>
    %65 = arith.addf %62, %64 : vector<4x8x8xf32>
    %cst_40 = arith.constant dense<0xFF800000> : vector<4x8xf32>
    %66 = vector.multi_reduction <maximumf>, %65, %cst_40 [2] : vector<4x8x8xf32> to vector<4x8xf32>
    %67 = vector.shape_cast %66 : vector<4x8xf32> to vector<4x8x1xf32>
    %68 = vector.broadcast %67 : vector<4x8x1xf32> to vector<4x8x8xf32>
    %69 = arith.subf %65, %68 : vector<4x8x8xf32>
    %70 = math.exp %69 : vector<4x8x8xf32>
    %cst_41 = arith.constant dense<0.000000e+00> : vector<4x8xf32>
    %71 = vector.multi_reduction <add>, %70, %cst_41 [2] : vector<4x8x8xf32> to vector<4x8xf32>
    %72 = vector.shape_cast %71 : vector<4x8xf32> to vector<4x8x1xf32>
    %73 = tpu.reciprocal %72 {approx = true} : vector<4x8x1xf32> -> vector<4x8x1xf32>
    %74 = vector.broadcast %73 : vector<4x8x1xf32> to vector<4x8x8xf32>
    %75 = arith.mulf %70, %74 : vector<4x8x8xf32>
    "tpu.trace_start"() <{level = 10 : i32, message = "nqk,nkd->nqd"}> : () -> ()
    %cst_42 = arith.constant dense<0.000000e+00> : vector<4x8x32xf32>
    %76 = tpu.matmul %75, %59, %cst_42 {dimension_numbers = #tpu.dot_dimension_numbers<[2], [1], [1], [2], [0, 0, 0, 1, 1, 2], [0], [0]>} : vector<4x8x8xf32>, vector<4x8x32xf32>, vector<4x8x32xf32> -> vector<4x8x32xf32>
    "tpu.trace_stop"() : () -> ()
    %77 = vector.shape_cast %76 : vector<4x8x32xf32> to vector<32x32xf32>
    %c0_43 = arith.constant 0 : index
    %c0_44 = arith.constant 0 : index
    %c0_45 = arith.constant 0 : index
    %78 = vector.load %arg9[%c0_43, %c0_44, %c0_45] : memref<2x32x32xf32, #tpu.memory_space<vmem>>, vector<1x32x32xf32>
    %79 = vector.shape_cast %78 : vector<1x32x32xf32> to vector<32x32xf32>
    %cst_46 = arith.constant dense<0.000000e+00> : vector<32x32xf32>
    %80 = tpu.matmul %77, %79, %cst_46 {dimension_numbers = #tpu.dot_dimension_numbers<[1], [0], [0], [1], [0, 0, 1, 1], [], []>} : vector<32x32xf32>, vector<32x32xf32>, vector<32x32xf32> -> vector<32x32xf32>
    %c0_47 = arith.constant 0 : index
    %c0_48 = arith.constant 0 : index
    %c0_49 = arith.constant 0 : index
    %81 = vector.load %arg10[%c0_47, %c0_48, %c0_49] : memref<2x1x32xf32, #tpu.memory_space<vmem>>, vector<1x1x32xf32>
    %82 = vector.shape_cast %81 : vector<1x1x32xf32> to vector<1x32xf32>
    %83 = vector.broadcast %82 : vector<1x32xf32> to vector<32x32xf32>
    %84 = arith.addf %80, %83 : vector<32x32xf32>
    %85 = arith.addf %14, %84 : vector<32x32xf32>
    %c0_50 = arith.constant 0 : index
    %c0_51 = arith.constant 0 : index
    %c0_52 = arith.constant 0 : index
    %86 = vector.load %arg11[%c0_50, %c0_51, %c0_52] : memref<2x1x32xf32, #tpu.memory_space<vmem>>, vector<1x1x32xf32>
    %87 = vector.shape_cast %86 : vector<1x1x32xf32> to vector<1x32xf32>
    %c0_53 = arith.constant 0 : index
    %c0_54 = arith.constant 0 : index
    %c0_55 = arith.constant 0 : index
    %88 = vector.load %arg12[%c0_53, %c0_54, %c0_55] : memref<2x1x32xf32, #tpu.memory_space<vmem>>, vector<1x1x32xf32>
    %89 = vector.shape_cast %88 : vector<1x1x32xf32> to vector<1x32xf32>
    %cst_56 = arith.constant dense<0.000000e+00> : vector<32xf32>
    %90 = vector.multi_reduction <add>, %85, %cst_56 [1] : vector<32x32xf32> to vector<32xf32>
    %91 = vector.shape_cast %90 : vector<32xf32> to vector<32x1xf32>
    %cst_57 = arith.constant 3.200000e+01 : f32
    %92 = vector.broadcast %cst_57 : f32 to vector<32x1xf32>
    %93 = arith.divf %91, %92 : vector<32x1xf32>
    %94 = vector.broadcast %93 : vector<32x1xf32> to vector<32x32xf32>
    %95 = arith.subf %85, %94 : vector<32x32xf32>
    %96 = arith.mulf %95, %95 : vector<32x32xf32>
    %cst_58 = arith.constant dense<0.000000e+00> : vector<32xf32>
    %97 = vector.multi_reduction <add>, %96, %cst_58 [1] : vector<32x32xf32> to vector<32xf32>
    %98 = vector.shape_cast %97 : vector<32xf32> to vector<32x1xf32>
    %cst_59 = arith.constant 3.200000e+01 : f32
    %99 = vector.broadcast %cst_59 : f32 to vector<32x1xf32>
    %100 = arith.divf %98, %99 : vector<32x1xf32>
    %101 = vector.broadcast %93 : vector<32x1xf32> to vector<32x32xf32>
    %102 = arith.subf %85, %101 : vector<32x32xf32>
    %cst_60 = arith.constant 9.99999974E-6 : f32
    %103 = vector.broadcast %cst_60 : f32 to vector<32x1xf32>
    %104 = arith.addf %100, %103 : vector<32x1xf32>
    %105 = math.rsqrt %104 : vector<32x1xf32>
    %106 = vector.broadcast %105 : vector<32x1xf32> to vector<32x32xf32>
    %107 = arith.mulf %102, %106 : vector<32x32xf32>
    %108 = vector.broadcast %87 : vector<1x32xf32> to vector<32x32xf32>
    %109 = arith.mulf %107, %108 : vector<32x32xf32>
    %110 = vector.broadcast %89 : vector<1x32xf32> to vector<32x32xf32>
    %111 = arith.addf %109, %110 : vector<32x32xf32>
    %c0_61 = arith.constant 0 : index
    %c0_62 = arith.constant 0 : index
    %c0_63 = arith.constant 0 : index
    %112 = vector.load %arg13[%c0_61, %c0_62, %c0_63] : memref<2x32x64xf32, #tpu.memory_space<vmem>>, vector<1x32x64xf32>
    %113 = vector.shape_cast %112 : vector<1x32x64xf32> to vector<32x64xf32>
    %cst_64 = arith.constant dense<0.000000e+00> : vector<32x64xf32>
    %114 = tpu.matmul %111, %113, %cst_64 {dimension_numbers = #tpu.dot_dimension_numbers<[1], [0], [0], [1], [0, 0, 1, 1], [], []>} : vector<32x32xf32>, vector<32x64xf32>, vector<32x64xf32> -> vector<32x64xf32>
    %c0_65 = arith.constant 0 : index
    %c0_66 = arith.constant 0 : index
    %c0_67 = arith.constant 0 : index
    %115 = vector.load %arg14[%c0_65, %c0_66, %c0_67] : memref<2x1x64xf32, #tpu.memory_space<vmem>>, vector<1x1x64xf32>
    %116 = vector.shape_cast %115 : vector<1x1x64xf32> to vector<1x64xf32>
    %117 = vector.broadcast %116 : vector<1x64xf32> to vector<32x64xf32>
    %118 = arith.addf %114, %117 : vector<32x64xf32>
    %cst_68 = arith.constant 1.702000e+00 : f32
    %119 = vector.broadcast %cst_68 : f32 to vector<32x64xf32>
    %120 = arith.mulf %119, %118 : vector<32x64xf32>
    %121 = arith.negf %120 : vector<32x64xf32>
    %122 = math.exp %121 : vector<32x64xf32>
    %cst_69 = arith.constant 1.000000e+00 : f32
    %123 = vector.broadcast %cst_69 : f32 to vector<32x64xf32>
    %124 = arith.addf %123, %122 : vector<32x64xf32>
    %125 = arith.divf %123, %124 : vector<32x64xf32>
    %126 = arith.mulf %118, %125 : vector<32x64xf32>
    %c0_70 = arith.constant 0 : index
    %c0_71 = arith.constant 0 : index
    %c0_72 = arith.constant 0 : index
    %127 = vector.load %arg15[%c0_70, %c0_71, %c0_72] : memref<2x64x32xf32, #tpu.memory_space<vmem>>, vector<1x64x32xf32>
    %128 = vector.shape_cast %127 : vector<1x64x32xf32> to vector<64x32xf32>
    %cst_73 = arith.constant dense<0.000000e+00> : vector<32x32xf32>
    %129 = tpu.matmul %126, %128, %cst_73 {dimension_numbers = #tpu.dot_dimension_numbers<[1], [0], [0], [1], [0, 0, 1, 1], [], []>} : vector<32x64xf32>, vector<64x32xf32>, vector<32x32xf32> -> vector<32x32xf32>
    %c0_74 = arith.constant 0 : index
    %c0_75 = arith.constant 0 : index
    %c0_76 = arith.constant 0 : index
    %130 = vector.load %arg16[%c0_74, %c0_75, %c0_76] : memref<2x1x32xf32, #tpu.memory_space<vmem>>, vector<1x1x32xf32>
    %131 = vector.shape_cast %130 : vector<1x1x32xf32> to vector<1x32xf32>
    %132 = vector.broadcast %131 : vector<1x32xf32> to vector<32x32xf32>
    %133 = arith.addf %129, %132 : vector<32x32xf32>
    %134 = arith.addf %85, %133 : vector<32x32xf32>
    %c1_77 = arith.constant 1 : index
    %c0_78 = arith.constant 0 : index
    %c0_79 = arith.constant 0 : index
    %135 = vector.load %arg5[%c1_77, %c0_78, %c0_79] : memref<2x1x32xf32, #tpu.memory_space<vmem>>, vector<1x1x32xf32>
    %136 = vector.shape_cast %135 : vector<1x1x32xf32> to vector<1x32xf32>
    %c1_80 = arith.constant 1 : index
    %c0_81 = arith.constant 0 : index
    %c0_82 = arith.constant 0 : index
    %137 = vector.load %arg6[%c1_80, %c0_81, %c0_82] : memref<2x1x32xf32, #tpu.memory_space<vmem>>, vector<1x1x32xf32>
    %138 = vector.shape_cast %137 : vector<1x1x32xf32> to vector<1x32xf32>
    %cst_83 = arith.constant dense<0.000000e+00> : vector<32xf32>
    %139 = vector.multi_reduction <add>, %134, %cst_83 [1] : vector<32x32xf32> to vector<32xf32>
    %140 = vector.shape_cast %139 : vector<32xf32> to vector<32x1xf32>
    %cst_84 = arith.constant 3.200000e+01 : f32
    %141 = vector.broadcast %cst_84 : f32 to vector<32x1xf32>
    %142 = arith.divf %140, %141 : vector<32x1xf32>
    %143 = vector.broadcast %142 : vector<32x1xf32> to vector<32x32xf32>
    %144 = arith.subf %134, %143 : vector<32x32xf32>
    %145 = arith.mulf %144, %144 : vector<32x32xf32>
    %cst_85 = arith.constant dense<0.000000e+00> : vector<32xf32>
    %146 = vector.multi_reduction <add>, %145, %cst_85 [1] : vector<32x32xf32> to vector<32xf32>
    %147 = vector.shape_cast %146 : vector<32xf32> to vector<32x1xf32>
    %cst_86 = arith.constant 3.200000e+01 : f32
    %148 = vector.broadcast %cst_86 : f32 to vector<32x1xf32>
    %149 = arith.divf %147, %148 : vector<32x1xf32>
    %150 = vector.broadcast %142 : vector<32x1xf32> to vector<32x32xf32>
    %151 = arith.subf %134, %150 : vector<32x32xf32>
    %cst_87 = arith.constant 9.99999974E-6 : f32
    %152 = vector.broadcast %cst_87 : f32 to vector<32x1xf32>
    %153 = arith.addf %149, %152 : vector<32x1xf32>
    %154 = math.rsqrt %153 : vector<32x1xf32>
    %155 = vector.broadcast %154 : vector<32x1xf32> to vector<32x32xf32>
    %156 = arith.mulf %151, %155 : vector<32x32xf32>
    %157 = vector.broadcast %136 : vector<1x32xf32> to vector<32x32xf32>
    %158 = arith.mulf %156, %157 : vector<32x32xf32>
    %159 = vector.broadcast %138 : vector<1x32xf32> to vector<32x32xf32>
    %160 = arith.addf %158, %159 : vector<32x32xf32>
    %c1_88 = arith.constant 1 : index
    %c0_89 = arith.constant 0 : index
    %c0_90 = arith.constant 0 : index
    %161 = vector.load %arg7[%c1_88, %c0_89, %c0_90] : memref<2x32x96xf32, #tpu.memory_space<vmem>>, vector<1x32x96xf32>
    %162 = vector.shape_cast %161 : vector<1x32x96xf32> to vector<32x96xf32>
    %cst_91 = arith.constant dense<0.000000e+00> : vector<32x96xf32>
    %163 = tpu.matmul %160, %162, %cst_91 {dimension_numbers = #tpu.dot_dimension_numbers<[1], [0], [0], [1], [0, 0, 1, 1], [], []>} : vector<32x32xf32>, vector<32x96xf32>, vector<32x96xf32> -> vector<32x96xf32>
    %c1_92 = arith.constant 1 : index
    %c0_93 = arith.constant 0 : index
    %c0_94 = arith.constant 0 : index
    %164 = vector.load %arg8[%c1_92, %c0_93, %c0_94] : memref<2x1x96xf32, #tpu.memory_space<vmem>>, vector<1x1x96xf32>
    %165 = vector.shape_cast %164 : vector<1x1x96xf32> to vector<1x96xf32>
    %166 = vector.broadcast %165 : vector<1x96xf32> to vector<32x96xf32>
    %167 = arith.addf %163, %166 : vector<32x96xf32>
    %168 = vector.extract_strided_slice %167 {offsets = [0, 0], sizes = [32, 32], strides = [1, 1]} : vector<32x96xf32> to vector<32x32xf32>
    %169 = vector.shape_cast %168 : vector<32x32xf32> to vector<4x8x32xf32>
    %170 = vector.extract_strided_slice %167 {offsets = [0, 32], sizes = [32, 32], strides = [1, 1]} : vector<32x96xf32> to vector<32x32xf32>
    %171 = vector.shape_cast %170 : vector<32x32xf32> to vector<4x8x32xf32>
    %172 = vector.extract_strided_slice %167 {offsets = [0, 64], sizes = [32, 32], strides = [1, 1]} : vector<32x96xf32> to vector<32x32xf32>
    %173 = vector.shape_cast %172 : vector<32x32xf32> to vector<4x8x32xf32>
    "tpu.trace_start"() <{level = 10 : i32, message = "nqd,nkd->nqk"}> : () -> ()
    %cst_95 = arith.constant dense<0.000000e+00> : vector<4x8x8xf32>
    %174 = tpu.matmul %169, %171, %cst_95 {dimension_numbers = #tpu.dot_dimension_numbers<[2], [2], [1], [1], [0, 0, 0, 1, 1, 1], [0], [0]>} : vector<4x8x32xf32>, vector<4x8x32xf32>, vector<4x8x8xf32> -> vector<4x8x8xf32>
    "tpu.trace_stop"() : () -> ()
    %cst_96 = arith.constant 0.176776692 : f32
    %175 = vector.broadcast %cst_96 : f32 to vector<4x8x8xf32>
    %176 = arith.mulf %174, %175 : vector<4x8x8xf32>
    %177 = vector.shape_cast %20 : vector<8x8xf32> to vector<1x8x8xf32>
    %178 = vector.broadcast %177 : vector<1x8x8xf32> to vector<4x8x8xf32>
    %179 = arith.addf %176, %178 : vector<4x8x8xf32>
    %cst_97 = arith.constant dense<0xFF800000> : vector<4x8xf32>
    %180 = vector.multi_reduction <maximumf>, %179, %cst_97 [2] : vector<4x8x8xf32> to vector<4x8xf32>
    %181 = vector.shape_cast %180 : vector<4x8xf32> to vector<4x8x1xf32>
    %182 = vector.broadcast %181 : vector<4x8x1xf32> to vector<4x8x8xf32>
    %183 = arith.subf %179, %182 : vector<4x8x8xf32>
    %184 = math.exp %183 : vector<4x8x8xf32>
    %cst_98 = arith.constant dense<0.000000e+00> : vector<4x8xf32>
    %185 = vector.multi_reduction <add>, %184, %cst_98 [2] : vector<4x8x8xf32> to vector<4x8xf32>
    %186 = vector.shape_cast %185 : vector<4x8xf32> to vector<4x8x1xf32>
    %187 = tpu.reciprocal %186 {approx = true} : vector<4x8x1xf32> -> vector<4x8x1xf32>
    %188 = vector.broadcast %187 : vector<4x8x1xf32> to vector<4x8x8xf32>
    %189 = arith.mulf %184, %188 : vector<4x8x8xf32>
    "tpu.trace_start"() <{level = 10 : i32, message = "nqk,nkd->nqd"}> : () -> ()
    %cst_99 = arith.constant dense<0.000000e+00> : vector<4x8x32xf32>
    %190 = tpu.matmul %189, %173, %cst_99 {dimension_numbers = #tpu.dot_dimension_numbers<[2], [1], [1], [2], [0, 0, 0, 1, 1, 2], [0], [0]>} : vector<4x8x8xf32>, vector<4x8x32xf32>, vector<4x8x32xf32> -> vector<4x8x32xf32>
    "tpu.trace_stop"() : () -> ()
    %191 = vector.shape_cast %190 : vector<4x8x32xf32> to vector<32x32xf32>
    %c1_100 = arith.constant 1 : index
    %c0_101 = arith.constant 0 : index
    %c0_102 = arith.constant 0 : index
    %192 = vector.load %arg9[%c1_100, %c0_101, %c0_102] : memref<2x32x32xf32, #tpu.memory_space<vmem>>, vector<1x32x32xf32>
    %193 = vector.shape_cast %192 : vector<1x32x32xf32> to vector<32x32xf32>
    %cst_103 = arith.constant dense<0.000000e+00> : vector<32x32xf32>
    %194 = tpu.matmul %191, %193, %cst_103 {dimension_numbers = #tpu.dot_dimension_numbers<[1], [0], [0], [1], [0, 0, 1, 1], [], []>} : vector<32x32xf32>, vector<32x32xf32>, vector<32x32xf32> -> vector<32x32xf32>
    %c1_104 = arith.constant 1 : index
    %c0_105 = arith.constant 0 : index
    %c0_106 = arith.constant 0 : index
    %195 = vector.load %arg10[%c1_104, %c0_105, %c0_106] : memref<2x1x32xf32, #tpu.memory_space<vmem>>, vector<1x1x32xf32>
    %196 = vector.shape_cast %195 : vector<1x1x32xf32> to vector<1x32xf32>
    %197 = vector.broadcast %196 : vector<1x32xf32> to vector<32x32xf32>
    %198 = arith.addf %194, %197 : vector<32x32xf32>
    %199 = arith.addf %134, %198 : vector<32x32xf32>
    %c1_107 = arith.constant 1 : index
    %c0_108 = arith.constant 0 : index
    %c0_109 = arith.constant 0 : index
    %200 = vector.load %arg11[%c1_107, %c0_108, %c0_109] : memref<2x1x32xf32, #tpu.memory_space<vmem>>, vector<1x1x32xf32>
    %201 = vector.shape_cast %200 : vector<1x1x32xf32> to vector<1x32xf32>
    %c1_110 = arith.constant 1 : index
    %c0_111 = arith.constant 0 : index
    %c0_112 = arith.constant 0 : index
    %202 = vector.load %arg12[%c1_110, %c0_111, %c0_112] : memref<2x1x32xf32, #tpu.memory_space<vmem>>, vector<1x1x32xf32>
    %203 = vector.shape_cast %202 : vector<1x1x32xf32> to vector<1x32xf32>
    %cst_113 = arith.constant dense<0.000000e+00> : vector<32xf32>
    %204 = vector.multi_reduction <add>, %199, %cst_113 [1] : vector<32x32xf32> to vector<32xf32>
    %205 = vector.shape_cast %204 : vector<32xf32> to vector<32x1xf32>
    %cst_114 = arith.constant 3.200000e+01 : f32
    %206 = vector.broadcast %cst_114 : f32 to vector<32x1xf32>
    %207 = arith.divf %205, %206 : vector<32x1xf32>
    %208 = vector.broadcast %207 : vector<32x1xf32> to vector<32x32xf32>
    %209 = arith.subf %199, %208 : vector<32x32xf32>
    %210 = arith.mulf %209, %209 : vector<32x32xf32>
    %cst_115 = arith.constant dense<0.000000e+00> : vector<32xf32>
    %211 = vector.multi_reduction <add>, %210, %cst_115 [1] : vector<32x32xf32> to vector<32xf32>
    %212 = vector.shape_cast %211 : vector<32xf32> to vector<32x1xf32>
    %cst_116 = arith.constant 3.200000e+01 : f32
    %213 = vector.broadcast %cst_116 : f32 to vector<32x1xf32>
    %214 = arith.divf %212, %213 : vector<32x1xf32>
    %215 = vector.broadcast %207 : vector<32x1xf32> to vector<32x32xf32>
    %216 = arith.subf %199, %215 : vector<32x32xf32>
    %cst_117 = arith.constant 9.99999974E-6 : f32
    %217 = vector.broadcast %cst_117 : f32 to vector<32x1xf32>
    %218 = arith.addf %214, %217 : vector<32x1xf32>
    %219 = math.rsqrt %218 : vector<32x1xf32>
    %220 = vector.broadcast %219 : vector<32x1xf32> to vector<32x32xf32>
    %221 = arith.mulf %216, %220 : vector<32x32xf32>
    %222 = vector.broadcast %201 : vector<1x32xf32> to vector<32x32xf32>
    %223 = arith.mulf %221, %222 : vector<32x32xf32>
    %224 = vector.broadcast %203 : vector<1x32xf32> to vector<32x32xf32>
    %225 = arith.addf %223, %224 : vector<32x32xf32>
    %c1_118 = arith.constant 1 : index
    %c0_119 = arith.constant 0 : index
    %c0_120 = arith.constant 0 : index
    %226 = vector.load %arg13[%c1_118, %c0_119, %c0_120] : memref<2x32x64xf32, #tpu.memory_space<vmem>>, vector<1x32x64xf32>
    %227 = vector.shape_cast %226 : vector<1x32x64xf32> to vector<32x64xf32>
    %cst_121 = arith.constant dense<0.000000e+00> : vector<32x64xf32>
    %228 = tpu.matmul %225, %227, %cst_121 {dimension_numbers = #tpu.dot_dimension_numbers<[1], [0], [0], [1], [0, 0, 1, 1], [], []>} : vector<32x32xf32>, vector<32x64xf32>, vector<32x64xf32> -> vector<32x64xf32>
    %c1_122 = arith.constant 1 : index
    %c0_123 = arith.constant 0 : index
    %c0_124 = arith.constant 0 : index
    %229 = vector.load %arg14[%c1_122, %c0_123, %c0_124] : memref<2x1x64xf32, #tpu.memory_space<vmem>>, vector<1x1x64xf32>
    %230 = vector.shape_cast %229 : vector<1x1x64xf32> to vector<1x64xf32>
    %231 = vector.broadcast %230 : vector<1x64xf32> to vector<32x64xf32>
    %232 = arith.addf %228, %231 : vector<32x64xf32>
    %cst_125 = arith.constant 1.702000e+00 : f32
    %233 = vector.broadcast %cst_125 : f32 to vector<32x64xf32>
    %234 = arith.mulf %233, %232 : vector<32x64xf32>
    %235 = arith.negf %234 : vector<32x64xf32>
    %236 = math.exp %235 : vector<32x64xf32>
    %cst_126 = arith.constant 1.000000e+00 : f32
    %237 = vector.broadcast %cst_126 : f32 to vector<32x64xf32>
    %238 = arith.addf %237, %236 : vector<32x64xf32>
    %239 = arith.divf %237, %238 : vector<32x64xf32>
    %240 = arith.mulf %232, %239 : vector<32x64xf32>
    %c1_127 = arith.constant 1 : index
    %c0_128 = arith.constant 0 : index
    %c0_129 = arith.constant 0 : index
    %241 = vector.load %arg15[%c1_127, %c0_128, %c0_129] : memref<2x64x32xf32, #tpu.memory_space<vmem>>, vector<1x64x32xf32>
    %242 = vector.shape_cast %241 : vector<1x64x32xf32> to vector<64x32xf32>
    %cst_130 = arith.constant dense<0.000000e+00> : vector<32x32xf32>
    %243 = tpu.matmul %240, %242, %cst_130 {dimension_numbers = #tpu.dot_dimension_numbers<[1], [0], [0], [1], [0, 0, 1, 1], [], []>} : vector<32x64xf32>, vector<64x32xf32>, vector<32x32xf32> -> vector<32x32xf32>
    %c1_131 = arith.constant 1 : index
    %c0_132 = arith.constant 0 : index
    %c0_133 = arith.constant 0 : index
    %244 = vector.load %arg16[%c1_131, %c0_132, %c0_133] : memref<2x1x32xf32, #tpu.memory_space<vmem>>, vector<1x1x32xf32>
    %245 = vector.shape_cast %244 : vector<1x1x32xf32> to vector<1x32xf32>
    %246 = vector.broadcast %245 : vector<1x32xf32> to vector<32x32xf32>
    %247 = arith.addf %243, %246 : vector<32x32xf32>
    %248 = arith.addf %199, %247 : vector<32x32xf32>
    %c0_134 = arith.constant 0 : index
    %c0_135 = arith.constant 0 : index
    %249 = vector.load %arg17[%c0_134, %c0_135] : memref<1x32xf32, #tpu.memory_space<vmem>>, vector<1x32xf32>
    %c0_136 = arith.constant 0 : index
    %c0_137 = arith.constant 0 : index
    %250 = vector.load %arg18[%c0_136, %c0_137] : memref<1x32xf32, #tpu.memory_space<vmem>>, vector<1x32xf32>
    %cst_138 = arith.constant dense<0.000000e+00> : vector<32xf32>
    %251 = vector.multi_reduction <add>, %248, %cst_138 [1] : vector<32x32xf32> to vector<32xf32>
    %252 = vector.shape_cast %251 : vector<32xf32> to vector<32x1xf32>
    %cst_139 = arith.constant 3.200000e+01 : f32
    %253 = vector.broadcast %cst_139 : f32 to vector<32x1xf32>
    %254 = arith.divf %252, %253 : vector<32x1xf32>
    %255 = vector.broadcast %254 : vector<32x1xf32> to vector<32x32xf32>
    %256 = arith.subf %248, %255 : vector<32x32xf32>
    %257 = arith.mulf %256, %256 : vector<32x32xf32>
    %cst_140 = arith.constant dense<0.000000e+00> : vector<32xf32>
    %258 = vector.multi_reduction <add>, %257, %cst_140 [1] : vector<32x32xf32> to vector<32xf32>
    %259 = vector.shape_cast %258 : vector<32xf32> to vector<32x1xf32>
    %cst_141 = arith.constant 3.200000e+01 : f32
    %260 = vector.broadcast %cst_141 : f32 to vector<32x1xf32>
    %261 = arith.divf %259, %260 : vector<32x1xf32>
    %262 = vector.broadcast %254 : vector<32x1xf32> to vector<32x32xf32>
    %263 = arith.subf %248, %262 : vector<32x32xf32>
    %cst_142 = arith.constant 9.99999974E-6 : f32
    %264 = vector.broadcast %cst_142 : f32 to vector<32x1xf32>
    %265 = arith.addf %261, %264 : vector<32x1xf32>
    %266 = math.rsqrt %265 : vector<32x1xf32>
    %267 = vector.broadcast %266 : vector<32x1xf32> to vector<32x32xf32>
    %268 = arith.mulf %263, %267 : vector<32x32xf32>
    %269 = vector.broadcast %249 : vector<1x32xf32> to vector<32x32xf32>
    %270 = arith.mulf %268, %269 : vector<32x32xf32>
    %271 = vector.broadcast %250 : vector<1x32xf32> to vector<32x32xf32>
    %272 = arith.addf %270, %271 : vector<32x32xf32>
    %273 = vector.shape_cast %272 : vector<32x32xf32> to vector<4x8x32xf32>
    %274 = tpu.iota {dimensions = array<i32: 1>} : vector<4x8xi32>
    %c0_143 = arith.constant 0 : index
    %c0_144 = arith.constant 0 : index
    %275 = vector.load %arg4[%c0_143, %c0_144] : memref<4x1xi32, #tpu.memory_space<vmem>>, vector<4x1xi32>
    %276 = vector.broadcast %275 : vector<4x1xi32> to vector<4x8xi32>
    %277 = arith.cmpi eq, %274, %276 : vector<4x8xi32>
    %278 = arith.extui %277 : vector<4x8xi1> to vector<4x8xi32>
    %279 = arith.sitofp %278 : vector<4x8xi32> to vector<4x8xf32>
    %280 = vector.shape_cast %279 : vector<4x8xf32> to vector<4x8x1xf32>
    %281 = vector.broadcast %280 : vector<4x8x1xf32> to vector<4x8x32xf32>
    %282 = arith.mulf %281, %273 : vector<4x8x32xf32>
    %cst_145 = arith.constant dense<0.000000e+00> : vector<4x32xf32>
    %283 = vector.multi_reduction <add>, %282, %cst_145 [1] : vector<4x8x32xf32> to vector<4x32xf32>
    %c0_146 = arith.constant 0 : index
    %c0_147 = arith.constant 0 : index
    %284 = vector.load %arg19[%c0_146, %c0_147] : memref<32x32xf32, #tpu.memory_space<vmem>>, vector<32x32xf32>
    %cst_148 = arith.constant dense<0.000000e+00> : vector<4x32xf32>
    %285 = tpu.matmul %283, %284, %cst_148 {dimension_numbers = #tpu.dot_dimension_numbers<[1], [0], [0], [1], [0, 0, 1, 1], [], []>} : vector<4x32xf32>, vector<32x32xf32>, vector<4x32xf32> -> vector<4x32xf32>
    %c0_149 = arith.constant 0 : index
    %c0_150 = arith.constant 0 : index
    %c0_151 = arith.constant 0 : index
    %286 = vector.load %arg20[%c0_149, %c0_150, %c0_151] : memref<2x4x192xf32, #tpu.memory_space<vmem>>, vector<2x4x192xf32>
    %287 = vector.shape_cast %286 : vector<2x4x192xf32> to vector<8x192xf32>
    %c0_152 = arith.constant 0 : index
    %c0_153 = arith.constant 0 : index
    %288 = vector.load %arg21[%c0_152, %c0_153] : memref<192x32xf32, #tpu.memory_space<vmem>>, vector<192x32xf32>
    %cst_154 = arith.constant dense<0.000000e+00> : vector<8x32xf32>
    %289 = tpu.matmul %287, %288, %cst_154 {dimension_numbers = #tpu.dot_dimension_numbers<[1], [0], [0], [1], [0, 0, 1, 1], [], []>} : vector<8x192xf32>, vector<192x32xf32>, vector<8x32xf32> -> vector<8x32xf32>
    %290 = vector.shape_cast %289 : vector<8x32xf32> to vector<2x4x32xf32>
    %c0_155 = arith.constant 0 : index
    %c0_156 = arith.constant 0 : index
    %291 = vector.load %arg22[%c0_155, %c0_156] : memref<1x32xf32, #tpu.memory_space<vmem>>, vector<1x32xf32>
    %292 = vector.shape_cast %291 : vector<1x32xf32> to vector<1x1x32xf32>
    %293 = vector.shape_cast %292 : vector<1x1x32xf32> to vector<1x1x32xf32>
    %294 = vector.broadcast %293 : vector<1x1x32xf32> to vector<2x1x32xf32>
    %c0_157 = arith.constant 0 : index
    %c0_158 = arith.constant 0 : index
    %c0_159 = arith.constant 0 : index
    %295 = vector.load %arg46[%c0_157, %c0_158, %c0_159] : memref<2x8x32xf32, #tpu.memory_space<vmem>>, vector<2x1x32xf32>
    tpu.vector_store %arg46[%c0_157, %c0_158, %c0_159], %294 {strides = array<i32>} : memref<2x8x32xf32, #tpu.memory_space<vmem>>, vector<2x1x32xf32>,
    %c0_160 = arith.constant 0 : index
    %c1_161 = arith.constant 1 : index
    %c0_162 = arith.constant 0 : index
    %296 = vector.load %arg46[%c0_160, %c1_161, %c0_162] : memref<2x8x32xf32, #tpu.memory_space<vmem>>, vector<2x4x32xf32>
    tpu.vector_store %arg46[%c0_160, %c1_161, %c0_162], %290 {strides = array<i32>} : memref<2x8x32xf32, #tpu.memory_space<vmem>>, vector<2x4x32xf32>,
    %cst_163 = arith.constant 0.000000e+00 : f32
    %297 = vector.broadcast %cst_163 : f32 to vector<2x3x32xf32>
    %c0_164 = arith.constant 0 : index
    %c5 = arith.constant 5 : index
    %c0_165 = arith.constant 0 : index
    %298 = vector.load %arg46[%c0_164, %c5, %c0_165] : memref<2x8x32xf32, #tpu.memory_space<vmem>>, vector<2x3x32xf32>
    tpu.vector_store %arg46[%c0_164, %c5, %c0_165], %297 {strides = array<i32>} : memref<2x8x32xf32, #tpu.memory_space<vmem>>, vector<2x3x32xf32>,
    %c0_166 = arith.constant 0 : index
    %c0_167 = arith.constant 0 : index
    %c0_168 = arith.constant 0 : index
    %299 = vector.load %arg46[%c0_166, %c0_167, %c0_168] : memref<2x8x32xf32, #tpu.memory_space<vmem>>, vector<2x8x32xf32>
    %c0_169 = arith.constant 0 : index
    %c0_170 = arith.constant 0 : index
    %300 = vector.load %arg23[%c0_169, %c0_170] : memref<8x32xf32, #tpu.memory_space<vmem>>, vector<8x32xf32>
    %301 = vector.shape_cast %300 : vector<8x32xf32> to vector<1x8x32xf32>
    %302 = vector.broadcast %301 : vector<1x8x32xf32> to vector<2x8x32xf32>
    %303 = arith.addf %299, %302 : vector<2x8x32xf32>
    %304 = vector.shape_cast %303 : vector<2x8x32xf32> to vector<16x32xf32>
    %c0_171 = arith.constant 0 : index
    %c0_172 = arith.constant 0 : index
    %305 = vector.load %arg24[%c0_171, %c0_172] : memref<1x32xf32, #tpu.memory_space<vmem>>, vector<1x32xf32>
    %c0_173 = arith.constant 0 : index
    %c0_174 = arith.constant 0 : index
    %306 = vector.load %arg25[%c0_173, %c0_174] : memref<1x32xf32, #tpu.memory_space<vmem>>, vector<1x32xf32>
    %cst_175 = arith.constant dense<0.000000e+00> : vector<16xf32>
    %307 = vector.multi_reduction <add>, %304, %cst_175 [1] : vector<16x32xf32> to vector<16xf32>
    %308 = vector.shape_cast %307 : vector<16xf32> to vector<16x1xf32>
    %cst_176 = arith.constant 3.200000e+01 : f32
    %309 = vector.broadcast %cst_176 : f32 to vector<16x1xf32>
    %310 = arith.divf %308, %309 : vector<16x1xf32>
    %311 = vector.broadcast %310 : vector<16x1xf32> to vector<16x32xf32>
    %312 = arith.subf %304, %311 : vector<16x32xf32>
    %313 = arith.mulf %312, %312 : vector<16x32xf32>
    %cst_177 = arith.constant dense<0.000000e+00> : vector<16xf32>
    %314 = vector.multi_reduction <add>, %313, %cst_177 [1] : vector<16x32xf32> to vector<16xf32>
    %315 = vector.shape_cast %314 : vector<16xf32> to vector<16x1xf32>
    %cst_178 = arith.constant 3.200000e+01 : f32
    %316 = vector.broadcast %cst_178 : f32 to vector<16x1xf32>
    %317 = arith.divf %315, %316 : vector<16x1xf32>
    %318 = vector.broadcast %310 : vector<16x1xf32> to vector<16x32xf32>
    %319 = arith.subf %304, %318 : vector<16x32xf32>
    %cst_179 = arith.constant 9.99999974E-6 : f32
    %320 = vector.broadcast %cst_179 : f32 to vector<16x1xf32>
    %321 = arith.addf %317, %320 : vector<16x1xf32>
    %322 = math.rsqrt %321 : vector<16x1xf32>
    %323 = vector.broadcast %322 : vector<16x1xf32> to vector<16x32xf32>
    %324 = arith.mulf %319, %323 : vector<16x32xf32>
    %325 = vector.broadcast %305 : vector<1x32xf32> to vector<16x32xf32>
    %326 = arith.mulf %324, %325 : vector<16x32xf32>
    %327 = vector.broadcast %306 : vector<1x32xf32> to vector<16x32xf32>
    %328 = arith.addf %326, %327 : vector<16x32xf32>
    %329 = tpu.iota {dimensions = array<i32: 1>} : vector<8x8xi32>
    %c5_i32 = arith.constant 5 : i32
    %330 = vector.broadcast %c5_i32 : i32 to vector<8x8xi32>
    %331 = arith.cmpi slt, %329, %330 : vector<8x8xi32>
    %cst_180 = arith.constant 0.000000e+00 : f32
    %cst_181 = arith.constant -1.000000e+09 : f32
    %332 = vector.broadcast %cst_180 : f32 to vector<8x8xf32>
    %333 = vector.broadcast %cst_181 : f32 to vector<8x8xf32>
    %334 = arith.select %331, %332, %333 : vector<8x8xi1>, vector<8x8xf32>
    %c0_182 = arith.constant 0 : index
    %c0_183 = arith.constant 0 : index
    %c0_184 = arith.constant 0 : index
    %335 = vector.load %arg26[%c0_182, %c0_183, %c0_184] : memref<2x1x32xf32, #tpu.memory_space<vmem>>, vector<1x1x32xf32>
    %336 = vector.shape_cast %335 : vector<1x1x32xf32> to vector<1x32xf32>
    %c0_185 = arith.constant 0 : index
    %c0_186 = arith.constant 0 : index
    %c0_187 = arith.constant 0 : index
    %337 = vector.load %arg27[%c0_185, %c0_186, %c0_187] : memref<2x1x32xf32, #tpu.memory_space<vmem>>, vector<1x1x32xf32>
    %338 = vector.shape_cast %337 : vector<1x1x32xf32> to vector<1x32xf32>
    %cst_188 = arith.constant dense<0.000000e+00> : vector<16xf32>
    %339 = vector.multi_reduction <add>, %328, %cst_188 [1] : vector<16x32xf32> to vector<16xf32>
    %340 = vector.shape_cast %339 : vector<16xf32> to vector<16x1xf32>
    %cst_189 = arith.constant 3.200000e+01 : f32
    %341 = vector.broadcast %cst_189 : f32 to vector<16x1xf32>
    %342 = arith.divf %340, %341 : vector<16x1xf32>
    %343 = vector.broadcast %342 : vector<16x1xf32> to vector<16x32xf32>
    %344 = arith.subf %328, %343 : vector<16x32xf32>
    %345 = arith.mulf %344, %344 : vector<16x32xf32>
    %cst_190 = arith.constant dense<0.000000e+00> : vector<16xf32>
    %346 = vector.multi_reduction <add>, %345, %cst_190 [1] : vector<16x32xf32> to vector<16xf32>
    %347 = vector.shape_cast %346 : vector<16xf32> to vector<16x1xf32>
    %cst_191 = arith.constant 3.200000e+01 : f32
    %348 = vector.broadcast %cst_191 : f32 to vector<16x1xf32>
    %349 = arith.divf %347, %348 : vector<16x1xf32>
    %350 = vector.broadcast %342 : vector<16x1xf32> to vector<16x32xf32>
    %351 = arith.subf %328, %350 : vector<16x32xf32>
    %cst_192 = arith.constant 9.99999974E-6 : f32
    %352 = vector.broadcast %cst_192 : f32 to vector<16x1xf32>
    %353 = arith.addf %349, %352 : vector<16x1xf32>
    %354 = math.rsqrt %353 : vector<16x1xf32>
    %355 = vector.broadcast %354 : vector<16x1xf32> to vector<16x32xf32>
    %356 = arith.mulf %351, %355 : vector<16x32xf32>
    %357 = vector.broadcast %336 : vector<1x32xf32> to vector<16x32xf32>
    %358 = arith.mulf %356, %357 : vector<16x32xf32>
    %359 = vector.broadcast %338 : vector<1x32xf32> to vector<16x32xf32>
    %360 = arith.addf %358, %359 : vector<16x32xf32>
    %c0_193 = arith.constant 0 : index
    %c0_194 = arith.constant 0 : index
    %c0_195 = arith.constant 0 : index
    %361 = vector.load %arg28[%c0_193, %c0_194, %c0_195] : memref<2x32x96xf32, #tpu.memory_space<vmem>>, vector<1x32x96xf32>
    %362 = vector.shape_cast %361 : vector<1x32x96xf32> to vector<32x96xf32>
    %cst_196 = arith.constant dense<0.000000e+00> : vector<16x96xf32>
    %363 = tpu.matmul %360, %362, %cst_196 {dimension_numbers = #tpu.dot_dimension_numbers<[1], [0], [0], [1], [0, 0, 1, 1], [], []>} : vector<16x32xf32>, vector<32x96xf32>, vector<16x96xf32> -> vector<16x96xf32>
    %c0_197 = arith.constant 0 : index
    %c0_198 = arith.constant 0 : index
    %c0_199 = arith.constant 0 : index
    %364 = vector.load %arg29[%c0_197, %c0_198, %c0_199] : memref<2x1x96xf32, #tpu.memory_space<vmem>>, vector<1x1x96xf32>
    %365 = vector.shape_cast %364 : vector<1x1x96xf32> to vector<1x96xf32>
    %366 = vector.broadcast %365 : vector<1x96xf32> to vector<16x96xf32>
    %367 = arith.addf %363, %366 : vector<16x96xf32>
    %368 = vector.extract_strided_slice %367 {offsets = [0, 0], sizes = [16, 32], strides = [1, 1]} : vector<16x96xf32> to vector<16x32xf32>
    %369 = vector.shape_cast %368 : vector<16x32xf32> to vector<2x8x32xf32>
    %370 = vector.extract_strided_slice %367 {offsets = [0, 32], sizes = [16, 32], strides = [1, 1]} : vector<16x96xf32> to vector<16x32xf32>
    %371 = vector.shape_cast %370 : vector<16x32xf32> to vector<2x8x32xf32>
    %372 = vector.extract_strided_slice %367 {offsets = [0, 64], sizes = [16, 32], strides = [1, 1]} : vector<16x96xf32> to vector<16x32xf32>
    %373 = vector.shape_cast %372 : vector<16x32xf32> to vector<2x8x32xf32>
    "tpu.trace_start"() <{level = 10 : i32, message = "nqd,nkd->nqk"}> : () -> ()
    %cst_200 = arith.constant dense<0.000000e+00> : vector<2x8x8xf32>
    %374 = tpu.matmul %369, %371, %cst_200 {dimension_numbers = #tpu.dot_dimension_numbers<[2], [2], [1], [1], [0, 0, 0, 1, 1, 1], [0], [0]>} : vector<2x8x32xf32>, vector<2x8x32xf32>, vector<2x8x8xf32> -> vector<2x8x8xf32>
    "tpu.trace_stop"() : () -> ()
    %cst_201 = arith.constant 0.176776692 : f32
    %375 = vector.broadcast %cst_201 : f32 to vector<2x8x8xf32>
    %376 = arith.mulf %374, %375 : vector<2x8x8xf32>
    %377 = vector.shape_cast %334 : vector<8x8xf32> to vector<1x8x8xf32>
    %378 = vector.broadcast %377 : vector<1x8x8xf32> to vector<2x8x8xf32>
    %379 = arith.addf %376, %378 : vector<2x8x8xf32>
    %cst_202 = arith.constant dense<0xFF800000> : vector<2x8xf32>
    %380 = vector.multi_reduction <maximumf>, %379, %cst_202 [2] : vector<2x8x8xf32> to vector<2x8xf32>
    %381 = vector.shape_cast %380 : vector<2x8xf32> to vector<2x8x1xf32>
    %382 = vector.broadcast %381 : vector<2x8x1xf32> to vector<2x8x8xf32>
    %383 = arith.subf %379, %382 : vector<2x8x8xf32>
    %384 = math.exp %383 : vector<2x8x8xf32>
    %cst_203 = arith.constant dense<0.000000e+00> : vector<2x8xf32>
    %385 = vector.multi_reduction <add>, %384, %cst_203 [2] : vector<2x8x8xf32> to vector<2x8xf32>
    %386 = vector.shape_cast %385 : vector<2x8xf32> to vector<2x8x1xf32>
    %387 = tpu.reciprocal %386 {approx = true} : vector<2x8x1xf32> -> vector<2x8x1xf32>
    %388 = vector.broadcast %387 : vector<2x8x1xf32> to vector<2x8x8xf32>
    %389 = arith.mulf %384, %388 : vector<2x8x8xf32>
    "tpu.trace_start"() <{level = 10 : i32, message = "nqk,nkd->nqd"}> : () -> ()
    %cst_204 = arith.constant dense<0.000000e+00> : vector<2x8x32xf32>
    %390 = tpu.matmul %389, %373, %cst_204 {dimension_numbers = #tpu.dot_dimension_numbers<[2], [1], [1], [2], [0, 0, 0, 1, 1, 2], [0], [0]>} : vector<2x8x8xf32>, vector<2x8x32xf32>, vector<2x8x32xf32> -> vector<2x8x32xf32>
    "tpu.trace_stop"() : () -> ()
    %391 = vector.shape_cast %390 : vector<2x8x32xf32> to vector<16x32xf32>
    %c0_205 = arith.constant 0 : index
    %c0_206 = arith.constant 0 : index
    %c0_207 = arith.constant 0 : index
    %392 = vector.load %arg30[%c0_205, %c0_206, %c0_207] : memref<2x32x32xf32, #tpu.memory_space<vmem>>, vector<1x32x32xf32>
    %393 = vector.shape_cast %392 : vector<1x32x32xf32> to vector<32x32xf32>
    %cst_208 = arith.constant dense<0.000000e+00> : vector<16x32xf32>
    %394 = tpu.matmul %391, %393, %cst_208 {dimension_numbers = #tpu.dot_dimension_numbers<[1], [0], [0], [1], [0, 0, 1, 1], [], []>} : vector<16x32xf32>, vector<32x32xf32>, vector<16x32xf32> -> vector<16x32xf32>
    %c0_209 = arith.constant 0 : index
    %c0_210 = arith.constant 0 : index
    %c0_211 = arith.constant 0 : index
    %395 = vector.load %arg31[%c0_209, %c0_210, %c0_211] : memref<2x1x32xf32, #tpu.memory_space<vmem>>, vector<1x1x32xf32>
    %396 = vector.shape_cast %395 : vector<1x1x32xf32> to vector<1x32xf32>
    %397 = vector.broadcast %396 : vector<1x32xf32> to vector<16x32xf32>
    %398 = arith.addf %394, %397 : vector<16x32xf32>
    %399 = arith.addf %328, %398 : vector<16x32xf32>
    %c0_212 = arith.constant 0 : index
    %c0_213 = arith.constant 0 : index
    %c0_214 = arith.constant 0 : index
    %400 = vector.load %arg32[%c0_212, %c0_213, %c0_214] : memref<2x1x32xf32, #tpu.memory_space<vmem>>, vector<1x1x32xf32>
    %401 = vector.shape_cast %400 : vector<1x1x32xf32> to vector<1x32xf32>
    %c0_215 = arith.constant 0 : index
    %c0_216 = arith.constant 0 : index
    %c0_217 = arith.constant 0 : index
    %402 = vector.load %arg33[%c0_215, %c0_216, %c0_217] : memref<2x1x32xf32, #tpu.memory_space<vmem>>, vector<1x1x32xf32>
    %403 = vector.shape_cast %402 : vector<1x1x32xf32> to vector<1x32xf32>
    %cst_218 = arith.constant dense<0.000000e+00> : vector<16xf32>
    %404 = vector.multi_reduction <add>, %399, %cst_218 [1] : vector<16x32xf32> to vector<16xf32>
    %405 = vector.shape_cast %404 : vector<16xf32> to vector<16x1xf32>
    %cst_219 = arith.constant 3.200000e+01 : f32
    %406 = vector.broadcast %cst_219 : f32 to vector<16x1xf32>
    %407 = arith.divf %405, %406 : vector<16x1xf32>
    %408 = vector.broadcast %407 : vector<16x1xf32> to vector<16x32xf32>
    %409 = arith.subf %399, %408 : vector<16x32xf32>
    %410 = arith.mulf %409, %409 : vector<16x32xf32>
    %cst_220 = arith.constant dense<0.000000e+00> : vector<16xf32>
    %411 = vector.multi_reduction <add>, %410, %cst_220 [1] : vector<16x32xf32> to vector<16xf32>
    %412 = vector.shape_cast %411 : vector<16xf32> to vector<16x1xf32>
    %cst_221 = arith.constant 3.200000e+01 : f32
    %413 = vector.broadcast %cst_221 : f32 to vector<16x1xf32>
    %414 = arith.divf %412, %413 : vector<16x1xf32>
    %415 = vector.broadcast %407 : vector<16x1xf32> to vector<16x32xf32>
    %416 = arith.subf %399, %415 : vector<16x32xf32>
    %cst_222 = arith.constant 9.99999974E-6 : f32
    %417 = vector.broadcast %cst_222 : f32 to vector<16x1xf32>
    %418 = arith.addf %414, %417 : vector<16x1xf32>
    %419 = math.rsqrt %418 : vector<16x1xf32>
    %420 = vector.broadcast %419 : vector<16x1xf32> to vector<16x32xf32>
    %421 = arith.mulf %416, %420 : vector<16x32xf32>
    %422 = vector.broadcast %401 : vector<1x32xf32> to vector<16x32xf32>
    %423 = arith.mulf %421, %422 : vector<16x32xf32>
    %424 = vector.broadcast %403 : vector<1x32xf32> to vector<16x32xf32>
    %425 = arith.addf %423, %424 : vector<16x32xf32>
    %c0_223 = arith.constant 0 : index
    %c0_224 = arith.constant 0 : index
    %c0_225 = arith.constant 0 : index
    %426 = vector.load %arg34[%c0_223, %c0_224, %c0_225] : memref<2x32x64xf32, #tpu.memory_space<vmem>>, vector<1x32x64xf32>
    %427 = vector.shape_cast %426 : vector<1x32x64xf32> to vector<32x64xf32>
    %cst_226 = arith.constant dense<0.000000e+00> : vector<16x64xf32>
    %428 = tpu.matmul %425, %427, %cst_226 {dimension_numbers = #tpu.dot_dimension_numbers<[1], [0], [0], [1], [0, 0, 1, 1], [], []>} : vector<16x32xf32>, vector<32x64xf32>, vector<16x64xf32> -> vector<16x64xf32>
    %c0_227 = arith.constant 0 : index
    %c0_228 = arith.constant 0 : index
    %c0_229 = arith.constant 0 : index
    %429 = vector.load %arg35[%c0_227, %c0_228, %c0_229] : memref<2x1x64xf32, #tpu.memory_space<vmem>>, vector<1x1x64xf32>
    %430 = vector.shape_cast %429 : vector<1x1x64xf32> to vector<1x64xf32>
    %431 = vector.broadcast %430 : vector<1x64xf32> to vector<16x64xf32>
    %432 = arith.addf %428, %431 : vector<16x64xf32>
    %cst_230 = arith.constant 1.702000e+00 : f32
    %433 = vector.broadcast %cst_230 : f32 to vector<16x64xf32>
    %434 = arith.mulf %433, %432 : vector<16x64xf32>
    %435 = arith.negf %434 : vector<16x64xf32>
    %436 = math.exp %435 : vector<16x64xf32>
    %cst_231 = arith.constant 1.000000e+00 : f32
    %437 = vector.broadcast %cst_231 : f32 to vector<16x64xf32>
    %438 = arith.addf %437, %436 : vector<16x64xf32>
    %439 = arith.divf %437, %438 : vector<16x64xf32>
    %440 = arith.mulf %432, %439 : vector<16x64xf32>
    %c0_232 = arith.constant 0 : index
    %c0_233 = arith.constant 0 : index
    %c0_234 = arith.constant 0 : index
    %441 = vector.load %arg36[%c0_232, %c0_233, %c0_234] : memref<2x64x32xf32, #tpu.memory_space<vmem>>, vector<1x64x32xf32>
    %442 = vector.shape_cast %441 : vector<1x64x32xf32> to vector<64x32xf32>
    %cst_235 = arith.constant dense<0.000000e+00> : vector<16x32xf32>
    %443 = tpu.matmul %440, %442, %cst_235 {dimension_numbers = #tpu.dot_dimension_numbers<[1], [0], [0], [1], [0, 0, 1, 1], [], []>} : vector<16x64xf32>, vector<64x32xf32>, vector<16x32xf32> -> vector<16x32xf32>
    %c0_236 = arith.constant 0 : index
    %c0_237 = arith.constant 0 : index
    %c0_238 = arith.constant 0 : index
    %444 = vector.load %arg37[%c0_236, %c0_237, %c0_238] : memref<2x1x32xf32, #tpu.memory_space<vmem>>, vector<1x1x32xf32>
    %445 = vector.shape_cast %444 : vector<1x1x32xf32> to vector<1x32xf32>
    %446 = vector.broadcast %445 : vector<1x32xf32> to vector<16x32xf32>
    %447 = arith.addf %443, %446 : vector<16x32xf32>
    %448 = arith.addf %399, %447 : vector<16x32xf32>
    %c1_239 = arith.constant 1 : index
    %c0_240 = arith.constant 0 : index
    %c0_241 = arith.constant 0 : index
    %449 = vector.load %arg26[%c1_239, %c0_240, %c0_241] : memref<2x1x32xf32, #tpu.memory_space<vmem>>, vector<1x1x32xf32>
    %450 = vector.shape_cast %449 : vector<1x1x32xf32> to vector<1x32xf32>
    %c1_242 = arith.constant 1 : index
    %c0_243 = arith.constant 0 : index
    %c0_244 = arith.constant 0 : index
    %451 = vector.load %arg27[%c1_242, %c0_243, %c0_244] : memref<2x1x32xf32, #tpu.memory_space<vmem>>, vector<1x1x32xf32>
    %452 = vector.shape_cast %451 : vector<1x1x32xf32> to vector<1x32xf32>
    %cst_245 = arith.constant dense<0.000000e+00> : vector<16xf32>
    %453 = vector.multi_reduction <add>, %448, %cst_245 [1] : vector<16x32xf32> to vector<16xf32>
    %454 = vector.shape_cast %453 : vector<16xf32> to vector<16x1xf32>
    %cst_246 = arith.constant 3.200000e+01 : f32
    %455 = vector.broadcast %cst_246 : f32 to vector<16x1xf32>
    %456 = arith.divf %454, %455 : vector<16x1xf32>
    %457 = vector.broadcast %456 : vector<16x1xf32> to vector<16x32xf32>
    %458 = arith.subf %448, %457 : vector<16x32xf32>
    %459 = arith.mulf %458, %458 : vector<16x32xf32>
    %cst_247 = arith.constant dense<0.000000e+00> : vector<16xf32>
    %460 = vector.multi_reduction <add>, %459, %cst_247 [1] : vector<16x32xf32> to vector<16xf32>
    %461 = vector.shape_cast %460 : vector<16xf32> to vector<16x1xf32>
    %cst_248 = arith.constant 3.200000e+01 : f32
    %462 = vector.broadcast %cst_248 : f32 to vector<16x1xf32>
    %463 = arith.divf %461, %462 : vector<16x1xf32>
    %464 = vector.broadcast %456 : vector<16x1xf32> to vector<16x32xf32>
    %465 = arith.subf %448, %464 : vector<16x32xf32>
    %cst_249 = arith.constant 9.99999974E-6 : f32
    %466 = vector.broadcast %cst_249 : f32 to vector<16x1xf32>
    %467 = arith.addf %463, %466 : vector<16x1xf32>
    %468 = math.rsqrt %467 : vector<16x1xf32>
    %469 = vector.broadcast %468 : vector<16x1xf32> to vector<16x32xf32>
    %470 = arith.mulf %465, %469 : vector<16x32xf32>
    %471 = vector.broadcast %450 : vector<1x32xf32> to vector<16x32xf32>
    %472 = arith.mulf %470, %471 : vector<16x32xf32>
    %473 = vector.broadcast %452 : vector<1x32xf32> to vector<16x32xf32>
    %474 = arith.addf %472, %473 : vector<16x32xf32>
    %c1_250 = arith.constant 1 : index
    %c0_251 = arith.constant 0 : index
    %c0_252 = arith.constant 0 : index
    %475 = vector.load %arg28[%c1_250, %c0_251, %c0_252] : memref<2x32x96xf32, #tpu.memory_space<vmem>>, vector<1x32x96xf32>
    %476 = vector.shape_cast %475 : vector<1x32x96xf32> to vector<32x96xf32>
    %cst_253 = arith.constant dense<0.000000e+00> : vector<16x96xf32>
    %477 = tpu.matmul %474, %476, %cst_253 {dimension_numbers = #tpu.dot_dimension_numbers<[1], [0], [0], [1], [0, 0, 1, 1], [], []>} : vector<16x32xf32>, vector<32x96xf32>, vector<16x96xf32> -> vector<16x96xf32>
    %c1_254 = arith.constant 1 : index
    %c0_255 = arith.constant 0 : index
    %c0_256 = arith.constant 0 : index
    %478 = vector.load %arg29[%c1_254, %c0_255, %c0_256] : memref<2x1x96xf32, #tpu.memory_space<vmem>>, vector<1x1x96xf32>
    %479 = vector.shape_cast %478 : vector<1x1x96xf32> to vector<1x96xf32>
    %480 = vector.broadcast %479 : vector<1x96xf32> to vector<16x96xf32>
    %481 = arith.addf %477, %480 : vector<16x96xf32>
    %482 = vector.extract_strided_slice %481 {offsets = [0, 0], sizes = [16, 32], strides = [1, 1]} : vector<16x96xf32> to vector<16x32xf32>
    %483 = vector.shape_cast %482 : vector<16x32xf32> to vector<2x8x32xf32>
    %484 = vector.extract_strided_slice %481 {offsets = [0, 32], sizes = [16, 32], strides = [1, 1]} : vector<16x96xf32> to vector<16x32xf32>
    %485 = vector.shape_cast %484 : vector<16x32xf32> to vector<2x8x32xf32>
    %486 = vector.extract_strided_slice %481 {offsets = [0, 64], sizes = [16, 32], strides = [1, 1]} : vector<16x96xf32> to vector<16x32xf32>
    %487 = vector.shape_cast %486 : vector<16x32xf32> to vector<2x8x32xf32>
    "tpu.trace_start"() <{level = 10 : i32, message = "nqd,nkd->nqk"}> : () -> ()
    %cst_257 = arith.constant dense<0.000000e+00> : vector<2x8x8xf32>
    %488 = tpu.matmul %483, %485, %cst_257 {dimension_numbers = #tpu.dot_dimension_numbers<[2], [2], [1], [1], [0, 0, 0, 1, 1, 1], [0], [0]>} : vector<2x8x32xf32>, vector<2x8x32xf32>, vector<2x8x8xf32> -> vector<2x8x8xf32>
    "tpu.trace_stop"() : () -> ()
    %cst_258 = arith.constant 0.176776692 : f32
    %489 = vector.broadcast %cst_258 : f32 to vector<2x8x8xf32>
    %490 = arith.mulf %488, %489 : vector<2x8x8xf32>
    %491 = vector.shape_cast %334 : vector<8x8xf32> to vector<1x8x8xf32>
    %492 = vector.broadcast %491 : vector<1x8x8xf32> to vector<2x8x8xf32>
    %493 = arith.addf %490, %492 : vector<2x8x8xf32>
    %cst_259 = arith.constant dense<0xFF800000> : vector<2x8xf32>
    %494 = vector.multi_reduction <maximumf>, %493, %cst_259 [2] : vector<2x8x8xf32> to vector<2x8xf32>
    %495 = vector.shape_cast %494 : vector<2x8xf32> to vector<2x8x1xf32>
    %496 = vector.broadcast %495 : vector<2x8x1xf32> to vector<2x8x8xf32>
    %497 = arith.subf %493, %496 : vector<2x8x8xf32>
    %498 = math.exp %497 : vector<2x8x8xf32>
    %cst_260 = arith.constant dense<0.000000e+00> : vector<2x8xf32>
    %499 = vector.multi_reduction <add>, %498, %cst_260 [2] : vector<2x8x8xf32> to vector<2x8xf32>
    %500 = vector.shape_cast %499 : vector<2x8xf32> to vector<2x8x1xf32>
    %501 = tpu.reciprocal %500 {approx = true} : vector<2x8x1xf32> -> vector<2x8x1xf32>
    %502 = vector.broadcast %501 : vector<2x8x1xf32> to vector<2x8x8xf32>
    %503 = arith.mulf %498, %502 : vector<2x8x8xf32>
    "tpu.trace_start"() <{level = 10 : i32, message = "nqk,nkd->nqd"}> : () -> ()
    %cst_261 = arith.constant dense<0.000000e+00> : vector<2x8x32xf32>
    %504 = tpu.matmul %503, %487, %cst_261 {dimension_numbers = #tpu.dot_dimension_numbers<[2], [1], [1], [2], [0, 0, 0, 1, 1, 2], [0], [0]>} : vector<2x8x8xf32>, vector<2x8x32xf32>, vector<2x8x32xf32> -> vector<2x8x32xf32>
    "tpu.trace_stop"() : () -> ()
    %505 = vector.shape_cast %504 : vector<2x8x32xf32> to vector<16x32xf32>
    %c1_262 = arith.constant 1 : index
    %c0_263 = arith.constant 0 : index
    %c0_264 = arith.constant 0 : index
    %506 = vector.load %arg30[%c1_262, %c0_263, %c0_264] : memref<2x32x32xf32, #tpu.memory_space<vmem>>, vector<1x32x32xf32>
    %507 = vector.shape_cast %506 : vector<1x32x32xf32> to vector<32x32xf32>
    %cst_265 = arith.constant dense<0.000000e+00> : vector<16x32xf32>
    %508 = tpu.matmul %505, %507, %cst_265 {dimension_numbers = #tpu.dot_dimension_numbers<[1], [0], [0], [1], [0, 0, 1, 1], [], []>} : vector<16x32xf32>, vector<32x32xf32>, vector<16x32xf32> -> vector<16x32xf32>
    %c1_266 = arith.constant 1 : index
    %c0_267 = arith.constant 0 : index
    %c0_268 = arith.constant 0 : index
    %509 = vector.load %arg31[%c1_266, %c0_267, %c0_268] : memref<2x1x32xf32, #tpu.memory_space<vmem>>, vector<1x1x32xf32>
    %510 = vector.shape_cast %509 : vector<1x1x32xf32> to vector<1x32xf32>
    %511 = vector.broadcast %510 : vector<1x32xf32> to vector<16x32xf32>
    %512 = arith.addf %508, %511 : vector<16x32xf32>
    %513 = arith.addf %448, %512 : vector<16x32xf32>
    %c1_269 = arith.constant 1 : index
    %c0_270 = arith.constant 0 : index
    %c0_271 = arith.constant 0 : index
    %514 = vector.load %arg32[%c1_269, %c0_270, %c0_271] : memref<2x1x32xf32, #tpu.memory_space<vmem>>, vector<1x1x32xf32>
    %515 = vector.shape_cast %514 : vector<1x1x32xf32> to vector<1x32xf32>
    %c1_272 = arith.constant 1 : index
    %c0_273 = arith.constant 0 : index
    %c0_274 = arith.constant 0 : index
    %516 = vector.load %arg33[%c1_272, %c0_273, %c0_274] : memref<2x1x32xf32, #tpu.memory_space<vmem>>, vector<1x1x32xf32>
    %517 = vector.shape_cast %516 : vector<1x1x32xf32> to vector<1x32xf32>
    %cst_275 = arith.constant dense<0.000000e+00> : vector<16xf32>
    %518 = vector.multi_reduction <add>, %513, %cst_275 [1] : vector<16x32xf32> to vector<16xf32>
    %519 = vector.shape_cast %518 : vector<16xf32> to vector<16x1xf32>
    %cst_276 = arith.constant 3.200000e+01 : f32
    %520 = vector.broadcast %cst_276 : f32 to vector<16x1xf32>
    %521 = arith.divf %519, %520 : vector<16x1xf32>
    %522 = vector.broadcast %521 : vector<16x1xf32> to vector<16x32xf32>
    %523 = arith.subf %513, %522 : vector<16x32xf32>
    %524 = arith.mulf %523, %523 : vector<16x32xf32>
    %cst_277 = arith.constant dense<0.000000e+00> : vector<16xf32>
    %525 = vector.multi_reduction <add>, %524, %cst_277 [1] : vector<16x32xf32> to vector<16xf32>
    %526 = vector.shape_cast %525 : vector<16xf32> to vector<16x1xf32>
    %cst_278 = arith.constant 3.200000e+01 : f32
    %527 = vector.broadcast %cst_278 : f32 to vector<16x1xf32>
    %528 = arith.divf %526, %527 : vector<16x1xf32>
    %529 = vector.broadcast %521 : vector<16x1xf32> to vector<16x32xf32>
    %530 = arith.subf %513, %529 : vector<16x32xf32>
    %cst_279 = arith.constant 9.99999974E-6 : f32
    %531 = vector.broadcast %cst_279 : f32 to vector<16x1xf32>
    %532 = arith.addf %528, %531 : vector<16x1xf32>
    %533 = math.rsqrt %532 : vector<16x1xf32>
    %534 = vector.broadcast %533 : vector<16x1xf32> to vector<16x32xf32>
    %535 = arith.mulf %530, %534 : vector<16x32xf32>
    %536 = vector.broadcast %515 : vector<1x32xf32> to vector<16x32xf32>
    %537 = arith.mulf %535, %536 : vector<16x32xf32>
    %538 = vector.broadcast %517 : vector<1x32xf32> to vector<16x32xf32>
    %539 = arith.addf %537, %538 : vector<16x32xf32>
    %c1_280 = arith.constant 1 : index
    %c0_281 = arith.constant 0 : index
    %c0_282 = arith.constant 0 : index
    %540 = vector.load %arg34[%c1_280, %c0_281, %c0_282] : memref<2x32x64xf32, #tpu.memory_space<vmem>>, vector<1x32x64xf32>
    %541 = vector.shape_cast %540 : vector<1x32x64xf32> to vector<32x64xf32>
    %cst_283 = arith.constant dense<0.000000e+00> : vector<16x64xf32>
    %542 = tpu.matmul %539, %541, %cst_283 {dimension_numbers = #tpu.dot_dimension_numbers<[1], [0], [0], [1], [0, 0, 1, 1], [], []>} : vector<16x32xf32>, vector<32x64xf32>, vector<16x64xf32> -> vector<16x64xf32>
    %c1_284 = arith.constant 1 : index
    %c0_285 = arith.constant 0 : index
    %c0_286 = arith.constant 0 : index
    %543 = vector.load %arg35[%c1_284, %c0_285, %c0_286] : memref<2x1x64xf32, #tpu.memory_space<vmem>>, vector<1x1x64xf32>
    %544 = vector.shape_cast %543 : vector<1x1x64xf32> to vector<1x64xf32>
    %545 = vector.broadcast %544 : vector<1x64xf32> to vector<16x64xf32>
    %546 = arith.addf %542, %545 : vector<16x64xf32>
    %cst_287 = arith.constant 1.702000e+00 : f32
    %547 = vector.broadcast %cst_287 : f32 to vector<16x64xf32>
    %548 = arith.mulf %547, %546 : vector<16x64xf32>
    %549 = arith.negf %548 : vector<16x64xf32>
    %550 = math.exp %549 : vector<16x64xf32>
    %cst_288 = arith.constant 1.000000e+00 : f32
    %551 = vector.broadcast %cst_288 : f32 to vector<16x64xf32>
    %552 = arith.addf %551, %550 : vector<16x64xf32>
    %553 = arith.divf %551, %552 : vector<16x64xf32>
    %554 = arith.mulf %546, %553 : vector<16x64xf32>
    %c1_289 = arith.constant 1 : index
    %c0_290 = arith.constant 0 : index
    %c0_291 = arith.constant 0 : index
    %555 = vector.load %arg36[%c1_289, %c0_290, %c0_291] : memref<2x64x32xf32, #tpu.memory_space<vmem>>, vector<1x64x32xf32>
    %556 = vector.shape_cast %555 : vector<1x64x32xf32> to vector<64x32xf32>
    %cst_292 = arith.constant dense<0.000000e+00> : vector<16x32xf32>
    %557 = tpu.matmul %554, %556, %cst_292 {dimension_numbers = #tpu.dot_dimension_numbers<[1], [0], [0], [1], [0, 0, 1, 1], [], []>} : vector<16x64xf32>, vector<64x32xf32>, vector<16x32xf32> -> vector<16x32xf32>
    %c1_293 = arith.constant 1 : index
    %c0_294 = arith.constant 0 : index
    %c0_295 = arith.constant 0 : index
    %558 = vector.load %arg37[%c1_293, %c0_294, %c0_295] : memref<2x1x32xf32, #tpu.memory_space<vmem>>, vector<1x1x32xf32>
    %559 = vector.shape_cast %558 : vector<1x1x32xf32> to vector<1x32xf32>
    %560 = vector.broadcast %559 : vector<1x32xf32> to vector<16x32xf32>
    %561 = arith.addf %557, %560 : vector<16x32xf32>
    %562 = arith.addf %513, %561 : vector<16x32xf32>
    %563 = vector.shape_cast %562 : vector<16x32xf32> to vector<2x8x32xf32>
    %564 = tpu.iota {dimensions = array<i32: 1>} : vector<2x8xi32>
    %c0_i32 = arith.constant 0 : i32
    %565 = vector.broadcast %c0_i32 : i32 to vector<2x8xi32>
    %566 = arith.cmpi eq, %564, %565 : vector<2x8xi32>
    %567 = arith.extui %566 : vector<2x8xi1> to vector<2x8xi32>
    %568 = arith.sitofp %567 : vector<2x8xi32> to vector<2x8xf32>
    %569 = vector.shape_cast %568 : vector<2x8xf32> to vector<2x8x1xf32>
    %570 = vector.broadcast %569 : vector<2x8x1xf32> to vector<2x8x32xf32>
    %571 = arith.mulf %570, %563 : vector<2x8x32xf32>
    %cst_296 = arith.constant dense<0.000000e+00> : vector<2x32xf32>
    %572 = vector.multi_reduction <add>, %571, %cst_296 [1] : vector<2x8x32xf32> to vector<2x32xf32>
    %c0_297 = arith.constant 0 : index
    %c0_298 = arith.constant 0 : index
    %573 = vector.load %arg38[%c0_297, %c0_298] : memref<1x32xf32, #tpu.memory_space<vmem>>, vector<1x32xf32>
    %c0_299 = arith.constant 0 : index
    %c0_300 = arith.constant 0 : index
    %574 = vector.load %arg39[%c0_299, %c0_300] : memref<1x32xf32, #tpu.memory_space<vmem>>, vector<1x32xf32>
    %cst_301 = arith.constant dense<0.000000e+00> : vector<2xf32>
    %575 = vector.multi_reduction <add>, %572, %cst_301 [1] : vector<2x32xf32> to vector<2xf32>
    %576 = vector.shape_cast %575 : vector<2xf32> to vector<2x1xf32>
    %cst_302 = arith.constant 3.200000e+01 : f32
    %577 = vector.broadcast %cst_302 : f32 to vector<2x1xf32>
    %578 = arith.divf %576, %577 : vector<2x1xf32>
    %579 = vector.broadcast %578 : vector<2x1xf32> to vector<2x32xf32>
    %580 = arith.subf %572, %579 : vector<2x32xf32>
    %581 = arith.mulf %580, %580 : vector<2x32xf32>
    %cst_303 = arith.constant dense<0.000000e+00> : vector<2xf32>
    %582 = vector.multi_reduction <add>, %581, %cst_303 [1] : vector<2x32xf32> to vector<2xf32>
    %583 = vector.shape_cast %582 : vector<2xf32> to vector<2x1xf32>
    %cst_304 = arith.constant 3.200000e+01 : f32
    %584 = vector.broadcast %cst_304 : f32 to vector<2x1xf32>
    %585 = arith.divf %583, %584 : vector<2x1xf32>
    %586 = vector.broadcast %578 : vector<2x1xf32> to vector<2x32xf32>
    %587 = arith.subf %572, %586 : vector<2x32xf32>
    %cst_305 = arith.constant 9.99999974E-6 : f32
    %588 = vector.broadcast %cst_305 : f32 to vector<2x1xf32>
    %589 = arith.addf %585, %588 : vector<2x1xf32>
    %590 = math.rsqrt %589 : vector<2x1xf32>
    %591 = vector.broadcast %590 : vector<2x1xf32> to vector<2x32xf32>
    %592 = arith.mulf %587, %591 : vector<2x32xf32>
    %593 = vector.broadcast %573 : vector<1x32xf32> to vector<2x32xf32>
    %594 = arith.mulf %592, %593 : vector<2x32xf32>
    %595 = vector.broadcast %574 : vector<1x32xf32> to vector<2x32xf32>
    %596 = arith.addf %594, %595 : vector<2x32xf32>
    %c0_306 = arith.constant 0 : index
    %c0_307 = arith.constant 0 : index
    %597 = vector.load %arg40[%c0_306, %c0_307] : memref<32x32xf32, #tpu.memory_space<vmem>>, vector<32x32xf32>
    %cst_308 = arith.constant dense<0.000000e+00> : vector<2x32xf32>
    %598 = tpu.matmul %596, %597, %cst_308 {dimension_numbers = #tpu.dot_dimension_numbers<[1], [0], [0], [1], [0, 0, 1, 1], [], []>} : vector<2x32xf32>, vector<32x32xf32>, vector<2x32xf32> -> vector<2x32xf32>
    %599 = arith.mulf %598, %598 : vector<2x32xf32>
    %cst_309 = arith.constant dense<0.000000e+00> : vector<2xf32>
    %600 = vector.multi_reduction <add>, %599, %cst_309 [1] : vector<2x32xf32> to vector<2xf32>
    %601 = vector.shape_cast %600 : vector<2xf32> to vector<2x1xf32>
    %cst_310 = arith.constant 9.99999996E-13 : f32
    %602 = vector.broadcast %cst_310 : f32 to vector<2x1xf32>
    %603 = arith.addf %601, %602 : vector<2x1xf32>
    %604 = math.rsqrt %603 : vector<2x1xf32>
    %605 = vector.broadcast %604 : vector<2x1xf32> to vector<2x32xf32>
    %606 = arith.mulf %598, %605 : vector<2x32xf32>
    %607 = arith.mulf %285, %285 : vector<4x32xf32>
    %cst_311 = arith.constant dense<0.000000e+00> : vector<4xf32>
    %608 = vector.multi_reduction <add>, %607, %cst_311 [1] : vector<4x32xf32> to vector<4xf32>
    %609 = vector.shape_cast %608 : vector<4xf32> to vector<4x1xf32>
    %cst_312 = arith.constant 9.99999996E-13 : f32
    %610 = vector.broadcast %cst_312 : f32 to vector<4x1xf32>
    %611 = arith.addf %609, %610 : vector<4x1xf32>
    %612 = math.rsqrt %611 : vector<4x1xf32>
    %613 = vector.broadcast %612 : vector<4x1xf32> to vector<4x32xf32>
    %614 = arith.mulf %285, %613 : vector<4x32xf32>
    %c0_313 = arith.constant 0 : index
    %c0_314 = arith.constant 0 : index
    %615 = memref.load %arg41[%c0_313, %c0_314] : memref<1x1xf32, #tpu.memory_space<smem>>
    %616 = math.exp %615 : f32
    %c0_315 = arith.constant 0 : index
    %c0_316 = arith.constant 0 : index
    %617 = vector.load %arg42[%c0_315, %c0_316] : memref<2x32xf32, #tpu.memory_space<vmem>>, vector<2x32xf32>
    tpu.vector_store %arg42[%c0_315, %c0_316], %606 {strides = array<i32>} : memref<2x32xf32, #tpu.memory_space<vmem>>, vector<2x32xf32>,
    %c0_317 = arith.constant 0 : index
    %c0_318 = arith.constant 0 : index
    %618 = vector.load %arg43[%c0_317, %c0_318] : memref<4x32xf32, #tpu.memory_space<vmem>>, vector<4x32xf32>
    tpu.vector_store %arg43[%c0_317, %c0_318], %614 {strides = array<i32>} : memref<4x32xf32, #tpu.memory_space<vmem>>, vector<4x32xf32>,
    %619 = tpu.transpose %614, [1, 0] : vector<4x32xf32> -> vector<32x4xf32>
    %cst_319 = arith.constant dense<0.000000e+00> : vector<2x4xf32>
    %620 = tpu.matmul %606, %619, %cst_319 {dimension_numbers = #tpu.dot_dimension_numbers<[1], [0], [0], [1], [0, 0, 1, 1], [], []>} : vector<2x32xf32>, vector<32x4xf32>, vector<2x4xf32> -> vector<2x4xf32>
    %621 = vector.broadcast %616 : f32 to vector<2x4xf32>
    %622 = arith.mulf %621, %620 : vector<2x4xf32>
    %c0_320 = arith.constant 0 : index
    %c0_321 = arith.constant 0 : index
    %623 = vector.load %arg44[%c0_320, %c0_321] : memref<2x4xf32, #tpu.memory_space<vmem>>, vector<2x4xf32>
    tpu.vector_store %arg44[%c0_320, %c0_321], %622 {strides = array<i32>} : memref<2x4xf32, #tpu.memory_space<vmem>>, vector<2x4xf32>,
    return
  }
}

</mosaic_0001>

<bundles_post_ra>
// kernel: forward.1
= control target key start
LH: loop header
LB: loop body
LE: loop exit
PB: predicated region body
PF: predicated region fallthrough
CT: control target
= control target key end

     0   :  { %s6232_s6 = smov 1   ;;  %s6233_s10 = smov 2   ;;  %s7234_s0 = inlined_call_operand.smem [shape: u32[45], index: -1, kind: input, shape index: {}] }
   0x1   :  { %s6293_s5 = sld [smem:[%s7234_s0]]   ;;  %s6234_s14 = smov 3  }
   0x2   :  { %s6298_s9 = sld [smem:[%s7234_s0 + %s6232_s6]]   ;;  %s6235_s18 = smov 4  }
   0x3   :  { %s6303_s13 = sld [smem:[%s7234_s0 + %s6233_s10]]   ;;  %s6236_s22 = smov 5  }
   0x4   :  { %s6308_s17 = sld [smem:[%s7234_s0 + %s6234_s14]]   ;;  %s6237_s26 = smov 6  }
   0x5   :  { %s6313_s21 = sld [smem:[%s7234_s0 + %s6235_s18]]   ;;  %s6238_s30 = smov 7  }
   0x6   :  { %s6318_s25 = sld [smem:[%s7234_s0 + %s6236_s22]]   ;;  %s6239_s4 = smov 8  }
   0x7   :  { %s6323_s29 = sld [smem:[%s7234_s0 + %s6237_s26]]   ;;  %s6240_s10 = smov 9  }
   0x8   :  { %s6328_s3 = sld [smem:[%s7234_s0 + %s6238_s30]]   ;;  %s6241_s15 = smov 10  }
   0x9   :  { %s6333_s8 = sld [smem:[%s7234_s0 + %s6239_s4]]   ;;  %s6242_s20 = smov 11  }
   0xa   :  { %s6338_s14 = sld [smem:[%s7234_s0 + %s6240_s10]]   ;;  %s6243_s26 = smov 12  }
   0xb   :  { %7253 = sst [smem:[#allocation12_spill]] %s6313_s21  ;;  %s6244_s1 = smov 13  }
   0xc   :  { %s6343_s19 = sld [smem:[%s7234_s0 + %s6241_s15]]   ;;  %s6245_s7 = smov 14  }
   0xd   :  { %s6348_s24 = sld [smem:[%s7234_s0 + %s6242_s20]]   ;;  %s6246_s15 = smov 15  }
   0xe   :  { %s6353_s30 = sld [smem:[%s7234_s0 + %s6243_s26]]   ;;  %s6247_s22 = smov 16  }
   0xf   :  { %s6358_s6 = sld [smem:[%s7234_s0 + %s6244_s1]]   ;;  %s6248_s28 = smov 17  }
  0x10   :  { %s6363_s12 = sld [smem:[%s7234_s0 + %s6245_s7]]   ;;  %s6249_s7 = smov 18  }
  0x11   :  { %s6368_s20 = sld [smem:[%s7234_s0 + %s6246_s15]]   ;;  %s6250_s15 = smov 19  }
  0x12   :  { %s6373_s27 = sld [smem:[%s7234_s0 + %s6247_s22]]   ;;  %s6251_s22 = smov 20  }
  0x13   :  { %s6378_s4 = sld [smem:[%s7234_s0 + %s6248_s28]]   ;;  %s6252_s28 = smov 21  }
  0x14   :  { %s6383_s21 = sld [smem:[%s7234_s0 + %s6249_s7]]   ;;  %s6253_s7 = smov 22  }
  0x16   :  { %7254 = sst [smem:[#allocation13_spill]] %s6363_s12 }
  0x17   :  { %s6388_s12 = sld [smem:[%s7234_s0 + %s6250_s15]]   ;;  %s6254_s15 = smov 23  }
  0x18   :  { %7255 = sst [smem:[#allocation14_spill]] %s6373_s27 }
  0x19   :  { %7256 = sst [smem:[#allocation15_spill]] %s6378_s4 }
  0x1a   :  { %7257 = sst [smem:[#allocation16_spill]] %s6383_s21 }
  0x1b   :  { %s6393_s27 = sld [smem:[%s7234_s0 + %s6251_s22]]   ;;  %s6255_s22 = smov 24  }
  0x1c   :  { %s6398_s4 = sld [smem:[%s7234_s0 + %s6252_s28]]   ;;  %s6256_s28 = smov 25  }
  0x1d   :  { %7258 = sst [smem:[#allocation17_spill]] %s6388_s12 }
  0x1e   :  { %s6403_s21 = sld [smem:[%s7234_s0 + %s6253_s7]]   ;;  %s6257_s7 = smov 26  }
  0x1f   :  { %s6408_s12 = sld [smem:[%s7234_s0 + %s6254_s15]]   ;;  %s6258_s15 = smov 27  }
  0x21   :  { %7259 = sst [smem:[#allocation18_spill]] %s6393_s27 }
  0x22   :  { %7260 = sst [smem:[#allocation19_spill]] %s6398_s4 }
  0x23   :  { %s6413_s27 = sld [smem:[%s7234_s0 + %s6255_s22]]   ;;  %s6259_s22 = smov 28  }
  0x24   :  { %7261 = sst [smem:[#allocation20_spill]] %s6403_s21 }
  0x25   :  { %7262 = sst [smem:[#allocation21_spill]] %s6408_s12 }
  0x26   :  { %s6418_s4 = sld [smem:[%s7234_s0 + %s6256_s28]]   ;;  %s6260_s28 = smov 29  }
  0x27   :  { %s6423_s21 = sld [smem:[%s7234_s0 + %s6257_s7]]   ;;  %s6261_s7 = smov 30  }
  0x28   :  { %s6428_s12 = sld [smem:[%s7234_s0 + %s6258_s15]]   ;;  %s6262_s15 = smov 31  }
  0x29   :  { %7263 = sst [smem:[#allocation22_spill]] %s6413_s27 }
  0x2a   :  { %s6433_s27 = sld [smem:[%s7234_s0 + %s6259_s22]]   ;;  %s6263_s22 = smov 32  }
  0x2c   :  { %7264 = sst [smem:[#allocation23_spill]] %s6418_s4 }
  0x2d   :  { %7265 = sst [smem:[#allocation24_spill]] %s6423_s21 }
  0x2e   :  { %7266 = sst [smem:[#allocation25_spill]] %s6428_s12 }
  0x2f   :  { %s6438_s4 = sld [smem:[%s7234_s0 + %s6260_s28]]   ;;  %s6264_s28 = smov 33  }
  0x30   :  { %7267 = sst [smem:[#allocation26_spill]] %s6433_s27 }
  0x31   :  { %s6443_s21 = sld [smem:[%s7234_s0 + %s6261_s7]]   ;;  %s6265_s7 = smov 34  }
  0x32   :  { %s6448_s12 = sld [smem:[%s7234_s0 + %s6262_s15]]   ;;  %s6266_s15 = smov 35  }
  0x33   :  { %s6453_s27 = sld [smem:[%s7234_s0 + %s6263_s22]]   ;;  %s6267_s22 = smov 36  }
  0x35   :  { %7268 = sst [smem:[#allocation27_spill]] %s6438_s4 }
  0x36   :  { %s6458_s4 = sld [smem:[%s7234_s0 + %s6264_s28]]   ;;  %s6268_s28 = smov 37  }
  0x37   :  { %7269 = sst [smem:[#allocation28_spill]] %s6443_s21 }
  0x38   :  { %7270 = sst [smem:[#allocation29_spill]] %s6448_s12 }
  0x39   :  { %7271 = sst [smem:[#allocation30_spill]] %s6453_s27 }
  0x3a   :  { %s6463_s21 = sld [smem:[%s7234_s0 + %s6265_s7]]   ;;  %s6269_s7 = smov 38  }
  0x3b   :  { %s6468_s12 = sld [smem:[%s7234_s0 + %s6266_s15]]   ;;  %s6270_s15 = smov 39  }
  0x3c   :  { %7272 = sst [smem:[#allocation31_spill]] %s6458_s4 }
  0x3d   :  { %s6473_s27 = sld [smem:[%s7234_s0 + %s6267_s22]]   ;;  %s6271_s22 = smov 40  }
  0x3e   :  { %s6478_s4 = sld [smem:[%s7234_s0 + %s6268_s28]]   ;;  %s6272_s28 = smov 41  }
  0x40   :  { %7273 = sst [smem:[#allocation32_spill]] %s6463_s21 }
  0x41   :  { %7274 = sst [smem:[#allocation33_spill]] %s6468_s12 }
  0x42   :  { %s6483_s21 = sld [smem:[%s7234_s0 + %s6269_s7]]   ;;  %s6273_s7 = smov 42  }
  0x43   :  { %7275 = sst [smem:[#allocation34_spill]] %s6473_s27 }
  0x44   :  { %7276 = sst [smem:[#allocation35_spill]] %s6478_s4 }
  0x45   :  { %s6488_s12 = sld [smem:[%s7234_s0 + %s6270_s15]]   ;;  %s6274_s15 = smov 43  }
  0x46   :  { %s6493_s27 = sld [smem:[%s7234_s0 + %s6271_s22]]   ;;  %s6275_s22 = smov 44  }
  0x47   :  { %s6498_s4 = sld [smem:[%s7234_s0 + %s6272_s28]]  }
  0x48   :  { %7277 = sst [smem:[#allocation36_spill]] %s6483_s21 }
  0x49   :  { %s6503_s21 = sld [smem:[%s7234_s0 + %s6273_s7]]  }
  0x4b   :  { %7278 = sst [smem:[#allocation37_spill]] %s6488_s12 }
  0x4c   :  { %7279 = sst [smem:[#allocation38_spill]] %s6493_s27 }
  0x4d   :  { %s6508_s12 = sld [smem:[%s7234_s0 + %s6274_s15]]  }
  0x4e   :  { %s6513_s27 = sld [smem:[%s7234_s0 + %s6275_s22]]  }
  0x4f   :  { %96 = vsyncpa [#allocation6], 0  ;;  %v182_v0 = vld [vmem:[%s6293_s5] sm:$0x1]  ;;  %vm186_vm0 = vcmask 253952   ;;  %vm192_vm1 = vcmask 254976  }
  0x50   :  { %v191_v1 = vld [vmem:[%s6298_s9] sm:$0x3]  ;;  %187 = vst.msk [vmem:[#allocation2] sm:$0x1] %vm186_vm0, %v182_v0  ;;  %vm201_vm2 = vcmask 258048  }
  0x51   :  { %193 = vst.msk [vmem:[#allocation2 + $0x1] sm:$0x3] %vm192_vm1, %v191_v1  ;;  %v197_v2 = vld [vmem:[%s6303_s13] sm:$0x1f]  ;;  %194 = vst.msk [vmem:[#allocation2 + $0x9] sm:$0x3] %vm192_vm1, %v191_v1 }
  0x52   :  { %195 = vst.msk [vmem:[#allocation2 + $0x11] sm:$0x3] %vm192_vm1, %v191_v1  ;;  %196 = vst.msk [vmem:[#allocation2 + $0x19] sm:$0x3] %vm192_vm1, %v191_v1  ;;  %v184_v3 = vld [vmem:[%s6293_s5 + $0x2] sm:$0x1] }
  0x53   :  { %202 = vst.msk [vmem:[#allocation2 + $0x3] sm:$0x1f] %vm201_vm2, %v197_v2  ;;  %v199_v4 = vld [vmem:[%s6303_s13 + $0x10] sm:$0x1f]  ;;  %v183_v5 = vld [vmem:[%s6293_s5 + $0x1] sm:$0x1] }
  0x54   :  { %189 = vst.msk [vmem:[#allocation2 + $0x10] sm:$0x1] %vm186_vm0, %v184_v3  ;;  %188 = vst.msk [vmem:[#allocation2 + $0x8] sm:$0x1] %vm186_vm0, %v183_v5  ;;  %v198_v6 = vld [vmem:[%s6303_s13 + $0x8] sm:$0x1f] }
  0x55   :  { %204 = vst.msk [vmem:[#allocation2 + $0x13] sm:$0x1f] %vm201_vm2, %v199_v4  ;;  %v185_v7 = vld [vmem:[%s6293_s5 + $0x3] sm:$0x1]  ;;  %v200_v8 = vld [vmem:[%s6303_s13 + $0x18] sm:$0x1f] }
  0x56   :  { %203 = vst.msk [vmem:[#allocation2 + $0xb] sm:$0x1f] %vm201_vm2, %v198_v6  ;;  %205 = vst.msk [vmem:[#allocation2 + $0x1b] sm:$0x1f] %vm201_vm2, %v200_v8 }
  0x57   :  { %190 = vst.msk [vmem:[#allocation2 + $0x18] sm:$0x1] %vm186_vm0, %v185_v7 }
  0x58   :  { %97 = vsyncpa [#allocation8], 0  ;;  %v210_v9 = vld [vmem:[%s6308_s17] sm:$0xff]  ;;  %vm223_vm3 = vcmask 261120   ;;  %v300_v42 = vld [vmem:[%s6328_s3 + $0x18] sm:$0xff]  ;;  %vm6277_vm4 = vmmov 0  }
  0x59   :  { %v299_v43 = vld [vmem:[%s6328_s3 + $0x10] sm:$0xff]  ;;  %5566 = vmatprep.subr.mxu0 %v300_v42  ;;  %v298_v44 = vld [vmem:[%s6328_s3 + $0x8] sm:$0xff]  ;;  %v297_v45 = vld [vmem:[%s6328_s3] sm:$0xff]  ;;  %s6278_s0 = smov 96   ;;  %vm721_vm6 = vcmask 64512   ;;  %s6280_s5 = smov 64  }
  0x5a   :  { %v206_v10 = vld [vmem:[#allocation2] sm:$0xff]  ;;  %5567 = vmatpush3.msra.mxu0 %v300_v42  ;;  %s7280_s9 = sld [smem:[#allocation13_spill]]  ;;  %vm1411_vm7 = vcmask 523264   ;;  %vm2962_vm9 = vcmask 1041409   ;;  %vm2964_vm10 = vcmask 1042434   ;;  %vm2966_vm11 = vcmask 1043459  }
  0x5b   :  { %v6537_v11 = vadd.f32 %v210_v9, %v206_v10  ;;  %5568 = vmatprep.subr.mxu0 %v299_v43  ;;  %v5181_v59 = vld [vmem:[%s6318_s25] ss:$0 sm:$0xff]  ;;  %s7281_s13 = sld [smem:[#allocation14_spill]]  ;;  %vm3152_vm12 = vcmask 256000   ;;  %vm3149_vm13 = vcmask 257024  }
  0x5c   :  { %v208_v12 = vld [vmem:[#allocation2 + $0x10] sm:$0xff]  ;;  %5569 = vmatpush3.msra.mxu0 %v299_v43  ;;  %v5182_v61 = vld [vmem:[%s6323_s29] ss:$0 sm:$0xff]  ;;  %s7282_s17 = sld [smem:[#allocation12_spill]] }
  0x5d   :  { %v6539_v13 = vadd.f32 %v210_v9, %v208_v12  ;;  %v207_v14 = vld [vmem:[#allocation2 + $0x8] sm:$0xff]  ;;  %v224_v16 = vsel %vm223_vm3, %v6537_v11, 0.0  ;;  %5570 = vmatprep.subr.mxu0 %v298_v44  ;;  %s7293_s28 = sld [smem:[#allocation24_spill]] }
  0x5e   :  { %v209_v15 = vld [vmem:[#allocation2 + $0x18] sm:$0xff]  ;;  %v6543_v17 = vadd.f32 %v210_v9, %v207_v14  ;;  %225 = vadd.xlane.f32.xlu0 %v224_v16  ;;  %5571 = vmatpush3.msra.mxu0 %v298_v44  ;;  %v6276_v14 = vmov 0.0   ;;  %s7294_s1 = sld [smem:[#allocation25_spill]] }
  0x5f   :  { %v6545_v18 = vadd.f32 %v210_v9, %v209_v15  ;;  %v230_v19 = vsel %vm223_vm3, %v6539_v13, 0.0  ;;  %5572 = vmatprep.subr.mxu0 %v297_v45  ;;  %5580 = vmatprep.subr.mxu1 %v6276_v14  ;;  %v5183_v15 = vld [vmem:[%s6333_s8] ss:$0 sm:$0xff]  ;;  %3153 = vst.msk [vmem:[#allocation3 + $0x5] sm:$0x7] %vm3152_vm12, %v6276_v14  ;;  %s7295_s2 = sld [smem:[#allocation27_spill]] }
  0x60   :  { %231 = vadd.xlane.f32.xlu1 %v230_v19  ;;  %v227_v20 = vsel %vm223_vm3, %v6543_v17, 0.0  ;;  %5573 = vmatpush3.msra.mxu0 %v297_v45  ;;  %3154 = vst.msk [vmem:[#allocation3 + $0xd] sm:$0x7] %vm3152_vm12, %v6276_v14  ;;  %s7296_s7 = sld [smem:[#allocation28_spill]] }
  0x61   :  { %v233_v21 = vsel %vm223_vm3, %v6545_v18, 0.0  ;;  %5595 = vmatprep.subr.mxu0 %v6276_v14  ;;  %5582 = vmatprep.mubr.msk.f32.mxu1 %vm6277_vm4, %v6276_v14  ;;  %s7297_s10 = sld [smem:[#allocation29_spill]] }
  0x62   :  { %228 = vadd.xlane.f32.xlu0 %v227_v20  ;;  %s7298_s11 = sld [smem:[#allocation32_spill]] }
  0x63   :  { %s7299_s15 = sld [smem:[#allocation30_spill]] }
  0x64   :  { %234 = vadd.xlane.f32.xlu1 %v233_v21  ;;  %s7300_s16 = sld [smem:[#allocation31_spill]] }
  0x65   :  { %s7301_s18 = sld [smem:[#allocation34_spill]] }
  0x66   :  { %s7302_s22 = sld [smem:[#allocation33_spill]] }
  0x67   :  { %s7303_s23 = sld [smem:[#allocation35_spill]] }
  0x68   :  { %s7304_s26 = sld [smem:[#allocation38_spill]] }
  0xe7   :  { %v226_v22 = vpop.xlane.xlu0 %225 }
  0xe8   :  { %v237_v23 = vmul.f32 0.03125, %v226_v22 }
  0xe9   :  { %v232_v24 = vpop.xlane.xlu1 %231 }
  0xea   :  { %v239_v25 = vmul.f32 0.03125, %v232_v24  ;;  %v241_v26 = vsub.f32 %v6537_v11, %v237_v23 }
  0xeb   :  { %v229_v28 = vpop.xlane.xlu0 %228 }
  0xec   :  { %v243_v27 = vsub.f32 %v6539_v13, %v239_v25  ;;  %v238_v29 = vmul.f32 0.03125, %v229_v28  ;;  %v245_v31 = vmul.f32 %v241_v26, %v241_v26 }
  0xed   :  { %v235_v30 = vpop.xlane.xlu1 %234 }
  0xee   :  { %v240_v32 = vmul.f32 0.03125, %v235_v30  ;;  %v247_v33 = vmul.f32 %v243_v27, %v243_v27  ;;  %v242_v34 = vsub.f32 %v6543_v17, %v238_v29  ;;  %v249_v35 = vsel %vm223_vm3, %v245_v31, 0.0 }
  0xef   :  { %250 = vadd.xlane.f32.xlu0 %v249_v35  ;;  %v215_v30 = vlaneseq }
  0xf0   :  { %v244_v36 = vsub.f32 %v6545_v18, %v240_v32  ;;  %v255_v37 = vsel %vm223_vm3, %v247_v33, 0.0  ;;  %v246_v38 = vmul.f32 %v242_v34, %v242_v34 }
  0xf1   :  { %v6618_v31 = vshrl.u32 %v215_v30, 7  ;;  %v6620_v32 = vand.u32 127, %v215_v30 }
  0xf2   :  { %v248_v39 = vmul.f32 %v244_v36, %v244_v36  ;;  %v252_v40 = vsel %vm223_vm3, %v246_v38, 0.0 }
  0xf3   :  { %256 = vadd.xlane.f32.xlu0 %v255_v37  ;;  %253 = vadd.xlane.f32.xlu1 %v252_v40  ;;  %vm219_vm5 = vcmp.le.s32.totalorder %v6620_v32, %v6618_v31  ;;  %vm3204_vm14 = vcmp.lt.s32.totalorder %v6620_v32, 5  ;;  %vm4842_vm15 = vcmp.eq.s32.totalorder %v6620_v32, 0 }
  0xf4   :  { %v258_v41 = vsel %vm223_vm3, %v248_v39, 0.0 }
  0xf7   :  { %259 = vadd.xlane.f32.xlu1 %v258_v41 }
 0x178   :  { %v251_v46 = vpop.xlane.xlu0 %250 }
 0x179   :  { %v261_v47 = vmul.f32 0.03125, %v251_v46 }
 0x17b   :  { %v265_v48 = vadd.f32 1e-05, %v261_v47 }
 0x17c   :  { %v254_v49 = vpop.xlane.xlu1 %253  ;;  %v257_v50 = vpop.xlane.xlu0 %256 }
 0x17d   :  { %6004 = vrsqrt.f32 %v265_v48  ;;  %v262_v51 = vmul.f32 0.03125, %v254_v49  ;;  %v263_v52 = vmul.f32 0.03125, %v257_v50 }
 0x17f   :  { %v266_v53 = vadd.f32 1e-05, %v262_v51  ;;  %v267_v54 = vadd.f32 1e-05, %v263_v52 }
 0x180   :  { %v260_v55 = vpop.xlane.xlu1 %259 }
 0x181   :  { %6006 = vrsqrt.f32 %v266_v53  ;;  %v264_v56 = vmul.f32 0.03125, %v260_v55 }
 0x182   :  { %6008 = vrsqrt.f32 %v267_v54 }
 0x183   :  { %v268_v57 = vadd.f32 1e-05, %v264_v56 }
 0x185   :  { %6010 = vrsqrt.f32 %v268_v57 }
 0x18a   :  { %v6005_v58 = vpop.eup %6004 }
 0x18b   :  { %v273_v60 = vmul.f32 %v6005_v58, %v241_v26 }
 0x18d   :  { %v283_v62 = vmul.f32 %v5181_v59, %v273_v60 }
 0x18e   :  { %v6007_v63 = vpop.eup %6006 }
 0x18f   :  { %v6009_v0 = vpop.eup %6008  ;;  %v293_v1 = vadd.f32 %v5182_v61, %v283_v62  ;;  %v274_v2 = vmul.f32 %v6007_v63, %v242_v34  ;;  %v6279_v34 = vmov -1e+09  }
 0x190   :  { %v275_v3 = vmul.f32 %v6009_v0, %v243_v27  ;;  %v6625_v35 = vsel %vm219_vm5, 0.0, %v6279_v34 }
 0x191   :  { %5574 = vmatprep.mubr.msk.f32.mxu0 %vm223_vm3, %v293_v1  ;;  %v284_v4 = vmul.f32 %v5181_v59, %v274_v2 }
 0x192   :  { %v6011_v5 = vpop.eup %6010  ;;  %v285_v6 = vmul.f32 %v5181_v59, %v275_v3 }
 0x193   :  { %v294_v7 = vadd.f32 %v5182_v61, %v284_v4  ;;  %v276_v8 = vmul.f32 %v6011_v5, %v244_v36 }
 0x194   :  { %v295_v9 = vadd.f32 %v5182_v61, %v285_v6 }
 0x195   :  { %5575 = vmatmul.mubr.msk.f32.vlgmr.msra.gmra.mxu0 %vm223_vm3, %v294_v7  ;;  %v286_v10 = vmul.f32 %v5181_v59, %v276_v8 }
 0x196   :  { %5577 = vmatprep.mubr.msk.f32.mxu0 %vm223_vm3, %v295_v9 }
 0x197   :  { %v296_v12 = vadd.f32 %v5182_v61, %v286_v10 }
 0x199   :  { %5578 = vmatmul.mubr.msk.f32.gmra.mxu0 %vm223_vm3, %v296_v12 }
 0x19a   :  { %5597 = vmatprep.mubr.msk.f32.mxu0 %vm6277_vm4, %v6276_v14 }
 0x255   :  { %v5576_v16 = vpop.f32.mrf.mxu0 }
 0x256   :  { %v6578_v19 = vadd.f32 %v5576_v16, %v5183_v15 }
 0x257   :  { %v386_v20 = vpop.f32.mrf.mxu0 }
 0x258   :  { %v6580_v21 = vadd.f32 %v5183_v15, %v386_v20  ;;  %483 = vrot.lane.b32.xlu1 %v6578_v19, %s6278_s0 }
 0x259   :  { %v5579_v22 = vpop.f32.mrf.mxu0 }
 0x25a   :  { %406 = vrot.lane.b32.xlu0 %v6580_v21, %s6278_s0  ;;  %v6590_v25 = vadd.f32 %v5579_v22, %v5183_v15 }
 0x25b   :  { %v396_v23 = vpop.f32.mrf.mxu0 }
 0x25c   :  { %v6586_v24 = vadd.f32 %v5183_v15, %v396_v23 }
 0x25e   :  { %560 = vrot.lane.b32.xlu1 %v6586_v24, %s6278_s0 }
 0x262   :  { %637 = vrot.lane.b32.xlu1 %v6590_v25, %s6278_s0 }
 0x2ca   :  { %v484_v26 = vpop.permute.xlu1 %483 }
 0x2cc   :  { %v407_v27 = vpop.permute.xlu0 %406 }
 0x2cd   :  { %5581 = vmatpush3.xpose.msk.msra.mxu1 %vm223_vm3, %v407_v27 }
 0x2ce   :  { %5585 = vmatprep.subr.mxu1 %v6276_v14 }
 0x2d0   :  { %v561_v28 = vpop.permute.xlu1 %560  ;;  %5583 = vmatmul.mubr.msk.f32.vlgmr.msra.gmra.mxu1 %vm223_vm3, %v6580_v21 }
 0x2d1   :  { %5586 = vmatpush3.xpose.msk.msra.mxu1 %vm223_vm3, %v484_v26  ;;  %5587 = vmatprep.mubr.msk.f32.mxu1 %vm6277_vm4, %v6276_v14 }
 0x2d2   :  { %5590 = vmatprep.subr.mxu1 %v6276_v14 }
 0x2d4   :  { %v638_v29 = vpop.permute.xlu1 %637  ;;  %5588 = vmatmul.mubr.msk.f32.vlgmr.msra.gmra.mxu1 %vm223_vm3, %v6578_v19 }
 0x2d5   :  { %5591 = vmatpush3.xpose.msk.msra.mxu1 %vm223_vm3, %v561_v28  ;;  %5596 = vmatpush3.xpose.msk.msra.mxu0 %vm223_vm3, %v638_v29 }
 0x2d6   :  { %5592 = vmatprep.mubr.msk.f32.mxu1 %vm6277_vm4, %v6276_v14  ;;  %5600 = vmatprep.subr.mxu1 %v6276_v14 }
 0x2d7   :  { %5605 = vmatprep.subr.mxu0 %v6276_v14 }
 0x2d8   :  { %5593 = vmatmul.mubr.msk.f32.vlgmr.msra.gmra.mxu1 %vm223_vm3, %v6586_v24  ;;  %5598 = vmatmul.mubr.msk.f32.vlgmr.msra.gmra.mxu0 %vm223_vm3, %v6590_v25 }
 0x2d9   :  { %5602 = vmatprep.mubr.msk.f32.mxu1 %vm6277_vm4, %v6276_v14  ;;  %5607 = vmatprep.mubr.msk.f32.mxu0 %vm6277_vm4, %v6276_v14 }
 0x390   :  { %v478_v33 = vpop.f32.mrf.mxu1 }
 0x391   :  { %v713_v36 = vmul.f32 0.17677669, %v478_v33 }
 0x392   :  { %v5584_v37 = vpop.f32.mrf.mxu1 }
 0x393   :  { %v717_v38 = vadd.f32 %v713_v36, %v6625_v35  ;;  %v1073_v36 = vld [vmem:[%s6338_s14 + $0x18] sm:$0xff]  ;;  %v1072_v37 = vld [vmem:[%s6338_s14 + $0x10] sm:$0xff] }
 0x394   :  { %v555_v39 = vpop.f32.mrf.mxu1 }
 0x395   :  { %v714_v40 = vmul.f32 0.17677669, %v555_v39  ;;  %v722_v41 = vsel %vm721_vm6, %v717_v38, -inf  ;;  %v1070_v39 = vld [vmem:[%s6338_s14] sm:$0xff] }
 0x396   :  { %723 = vmax.xlane.f32.xlu0 %v722_v41  ;;  %v5589_v42 = vpop.f32.mrf.mxu1 }
 0x397   :  { %v718_v43 = vadd.f32 %v714_v40, %v6625_v35 }
 0x398   :  { %v632_v44 = vpop.f32.mrf.mxu1  ;;  %v709_v45 = vpop.f32.mrf.mxu0 }
 0x399   :  { %v715_v46 = vmul.f32 0.17677669, %v632_v44  ;;  %v716_v47 = vmul.f32 0.17677669, %v709_v45  ;;  %v725_v48 = vsel %vm721_vm6, %v718_v43, -inf }
 0x39a   :  { %v5599_v49 = vpop.f32.mrf.mxu0  ;;  %726 = vmax.xlane.f32.xlu1 %v725_v48  ;;  %v5594_v50 = vpop.f32.mrf.mxu1  ;;  %v5200_v48 = vld [vmem:[%s6343_s19] ss:$0 sm:$0xff] }
 0x39b   :  { %v719_v51 = vadd.f32 %v715_v46, %v6625_v35  ;;  %v720_v53 = vadd.f32 %v716_v47, %v6625_v35 }
 0x39d   :  { %v728_v52 = vsel %vm721_vm6, %v719_v51, -inf  ;;  %v731_v54 = vsel %vm721_vm6, %v720_v53, -inf }
 0x39e   :  { %729 = vmax.xlane.f32.xlu0 %v728_v52 }
 0x3a2   :  { %732 = vmax.xlane.f32.xlu0 %v731_v54 }
 0x41f   :  { %v724_v55 = vpop.xlane.xlu0 %723 }
 0x420   :  { %v734_v56 = vsub.f32 %v717_v38, %v724_v55  ;;  %v1071_v38 = vld [vmem:[%s6338_s14 + $0x8] sm:$0xff] }
 0x422   :  { %v738_v57 = vmul.f32 1.442695, %v734_v56 }
 0x423   :  { %v727_v58 = vpop.xlane.xlu1 %726 }
 0x424   :  { %6012 = vpow2.f32 %v738_v57  ;;  %v735_v61 = vsub.f32 %v718_v43, %v727_v58 }
 0x426   :  { %v740_v1 = vmul.f32 1.442695, %v735_v61 }
 0x427   :  { %v730_v59 = vpop.xlane.xlu0 %729 }
 0x428   :  { %v736_v60 = vsub.f32 %v719_v51, %v730_v59 }
 0x42a   :  { %v742_v62 = vmul.f32 1.442695, %v736_v60 }
 0x42b   :  { %v733_v63 = vpop.xlane.xlu0 %732 }
 0x42c   :  { %6014 = vpow2.f32 %v742_v62  ;;  %v737_v0 = vsub.f32 %v720_v53, %v733_v63 }
 0x42e   :  { %v744_v2 = vmul.f32 1.442695, %v737_v0 }
 0x430   :  { %6016 = vpow2.f32 %v744_v2 }
 0x431   :  { %v6013_v3 = vpop.eup %6012  ;;  %6018 = vpow2.f32 %v740_v1 }
 0x432   :  { %v746_v4 = vsel %vm721_vm6, %v6013_v3, 0.0 }
 0x433   :  { %747 = vadd.xlane.f32.xlu0 %v746_v4 }
 0x439   :  { %v6015_v5 = vpop.eup %6014 }
 0x43a   :  { %v752_v6 = vsel %vm721_vm6, %v6015_v5, 0.0 }
 0x43b   :  { %753 = vadd.xlane.f32.xlu0 %v752_v6 }
 0x43d   :  { %v6017_v7 = vpop.eup %6016 }
 0x43e   :  { %v755_v8 = vsel %vm721_vm6, %v6017_v7, 0.0  ;;  %v6019_v9 = vpop.eup %6018 }
 0x43f   :  { %756 = vadd.xlane.f32.xlu1 %v755_v8  ;;  %v749_v10 = vsel %vm721_vm6, %v6019_v9, 0.0 }
 0x443   :  { %750 = vadd.xlane.f32.xlu1 %v749_v10 }
 0x451   :  { %766 = vrot.lane.b32.xlu0 %v6580_v21, %s6280_s5 }
 0x454   :  { %842 = vrot.lane.b32.xlu1 %v6578_v19, %s6280_s5 }
 0x458   :  { %918 = vrot.lane.b32.xlu1 %v6586_v24, %s6280_s5 }
 0x45c   :  { %994 = vrot.lane.b32.xlu1 %v6590_v25, %s6280_s5 }
 0x4bc   :  { %v748_v12 = vpop.xlane.xlu0 %747 }
 0x4bd   :  { %6020 = vrcp.f32 %v748_v12 }
 0x4c4   :  { %v754_v15 = vpop.xlane.xlu0 %753 }
 0x4c5   :  { %6022 = vrcp.f32 %v754_v15 }
 0x4c8   :  { %v757_v16 = vpop.xlane.xlu1 %756  ;;  %v767_v20 = vpop.permute.xlu0 %766 }
 0x4c9   :  { %5601 = vmatpush3.msra.mxu1 %v767_v20 }
 0x4ca   :  { %v6021_v22 = vpop.eup %6020  ;;  %5610 = vmatprep.subr.mxu1 %v6276_v14 }
 0x4cb   :  { %v762_v21 = vmul.f32 %v6021_v22, %v6013_v3 }
 0x4cc   :  { %v751_v23 = vpop.xlane.xlu1 %750 }
 0x4cd   :  { %6024 = vrcp.f32 %v751_v23  ;;  %5603 = vmatmul.mubr.msk.f32.vlgmr.msra.gmra.mxu1 %vm721_vm6, %v762_v21  ;;  %v1259_v23 = vld [vmem:[%s6358_s6 + $0x18] sm:$0xff] }
 0x4ce   :  { %5612 = vmatprep.mubr.msk.f32.mxu1 %vm6277_vm4, %v6276_v14  ;;  %6026 = vrcp.f32 %v757_v16 }
 0x4d0   :  { %v843_v19 = vpop.permute.xlu1 %842 }
 0x4d1   :  { %5606 = vmatpush3.msra.mxu0 %v843_v19  ;;  %v1258_v19 = vld [vmem:[%s6358_s6 + $0x10] sm:$0xff] }
 0x4d2   :  { %v6023_v24 = vpop.eup %6022  ;;  %5615 = vmatprep.subr.mxu0 %v6276_v14 }
 0x4d3   :  { %v764_v25 = vmul.f32 %v6023_v24, %v6015_v5  ;;  %v1257_v24 = vld [vmem:[%s6358_s6 + $0x8] sm:$0xff] }
 0x4d4   :  { %v919_v26 = vpop.permute.xlu1 %918 }
 0x4d5   :  { %5611 = vmatpush3.msra.mxu1 %v919_v26 }
 0x4d6   :  { %5613 = vmatmul.mubr.msk.f32.vlgmr.msra.gmra.mxu1 %vm721_vm6, %v764_v25  ;;  %5620 = vmatprep.subr.mxu1 %v1073_v36  ;;  %v1256_v25 = vld [vmem:[%s6358_s6] sm:$0xff] }
 0x4d7   :  { %5621 = vmatpush3.msra.mxu1 %v1073_v36 }
 0x4d8   :  { %v995_v30 = vpop.permute.xlu1 %994  ;;  %5622 = vmatprep.subr.mxu1 %v1072_v37 }
 0x4d9   :  { %5623 = vmatpush3.msra.mxu1 %v1072_v37 }
 0x4da   :  { %v6025_v27 = vpop.eup %6024  ;;  %5624 = vmatprep.subr.mxu1 %v1071_v38 }
 0x4db   :  { %v763_v28 = vmul.f32 %v6025_v27, %v6019_v9  ;;  %v6027_v29 = vpop.eup %6026  ;;  %5625 = vmatpush3.msra.mxu1 %v1071_v38 }
 0x4dc   :  { %v765_v33 = vmul.f32 %v6027_v29, %v6017_v7  ;;  %5626 = vmatprep.subr.mxu1 %v1070_v39 }
 0x4dd   :  { %5608 = vmatmul.mubr.msk.f32.vlgmr.msra.gmra.mxu0 %vm721_vm6, %v763_v28  ;;  %5627 = vmatpush3.msra.mxu1 %v1070_v39 }
 0x4de   :  { %5616 = vmatpush3.msra.mxu0 %v995_v30  ;;  %5617 = vmatprep.mubr.msk.f32.mxu0 %vm6277_vm4, %v6276_v14 }
 0x4df   :  { %5634 = vmatprep.subr.mxu0 %v1259_v23 }
 0x4e1   :  { %5618 = vmatmul.mubr.msk.f32.vlgmr.msra.gmra.mxu0 %vm721_vm6, %v765_v33 }
 0x4e2   :  { %5635 = vmatpush3.msra.mxu0 %v1259_v23 }
 0x4e3   :  { %5636 = vmatprep.subr.mxu0 %v1258_v19 }
 0x4e4   :  { %5637 = vmatpush3.msra.mxu0 %v1258_v19 }
 0x4e5   :  { %5638 = vmatprep.subr.mxu0 %v1257_v24 }
 0x4e6   :  { %5639 = vmatpush3.msra.mxu0 %v1257_v24 }
 0x4e7   :  { %5640 = vmatprep.subr.mxu0 %v1256_v25 }
 0x4e8   :  { %5641 = vmatpush3.msra.mxu0 %v1256_v25 }
 0x58d   :  { %v838_v40 = vpop.f32.mrf.mxu1 }
 0x58e   :  { %5628 = vmatprep.mubr.msk.f32.mxu1 %vm223_vm3, %v838_v40 }
 0x58f   :  { %v5604_v41 = vpop.f32.mrf.mxu1 }
 0x596   :  { %v990_v42 = vpop.f32.mrf.mxu1 }
 0x598   :  { %v5614_v43 = vpop.f32.mrf.mxu1 }
 0x59d   :  { %v914_v44 = vpop.f32.mrf.mxu0 }
 0x59e   :  { %5629 = vmatmul.mubr.msk.f32.vlgmr.msra.gmra.mxu1 %vm223_vm3, %v914_v44  ;;  %v5205_v44 = vld [vmem:[%s6348_s24] ss:$0 sm:$0xff] }
 0x59f   :  { %v5609_v45 = vpop.f32.mrf.mxu0  ;;  %5631 = vmatprep.mubr.msk.f32.mxu1 %vm223_vm3, %v990_v42 }
 0x5a1   :  { %v1066_v46 = vpop.f32.mrf.mxu0 }
 0x5a2   :  { %5632 = vmatmul.mubr.msk.f32.gmra.mxu1 %vm223_vm3, %v1066_v46 }
 0x5a3   :  { %v5619_v47 = vpop.f32.mrf.mxu0 }
 0x65e   :  { %v5630_v49 = vpop.f32.mrf.mxu1 }
 0x65f   :  { %v1165_v50 = vadd.f32 %v5630_v49, %v5200_v48 }
 0x660   :  { %v1159_v51 = vpop.f32.mrf.mxu1 }
 0x661   :  { %v6667_v52 = vadd.f32 %v1165_v50, %v6543_v17  ;;  %v1160_v53 = vadd.f32 %v5200_v48, %v1159_v51 }
 0x662   :  { %v5633_v54 = vpop.f32.mrf.mxu1 }
 0x663   :  { %v6670_v55 = vadd.f32 %v1160_v53, %v6537_v11  ;;  %v1187_v56 = vsel %vm223_vm3, %v6667_v52, 0.0  ;;  %v1175_v58 = vadd.f32 %v5633_v54, %v5200_v48 }
 0x664   :  { %1188 = vadd.xlane.f32.xlu1 %v1187_v56  ;;  %v1169_v57 = vpop.f32.mrf.mxu1 }
 0x665   :  { %v1170_v59 = vadd.f32 %v5200_v48, %v1169_v57  ;;  %v1184_v60 = vsel %vm223_vm3, %v6670_v55, 0.0  ;;  %v6680_v17 = vadd.f32 %v1175_v58, %v6545_v18  ;;  %v5206_v48 = vld [vmem:[%s6353_s30] ss:$0 sm:$0xff] }
 0x666   :  { %1185 = vadd.xlane.f32.xlu0 %v1184_v60 }
 0x667   :  { %v6677_v61 = vadd.f32 %v1170_v59, %v6539_v13  ;;  %v1193_v62 = vsel %vm223_vm3, %v6680_v17, 0.0 }
 0x669   :  { %v1190_v11 = vsel %vm223_vm3, %v6677_v61, 0.0 }
 0x66a   :  { %1191 = vadd.xlane.f32.xlu0 %v1190_v11 }
 0x66e   :  { %1194 = vadd.xlane.f32.xlu0 %v1193_v62  ;;  %v1403_v62 = vld [vmem:[%s6368_s20 + $0x38] sm:$0xff] }
 0x66f   :  { %5648 = vmatprep.subr.mxu1 %v1403_v62 }
 0x670   :  { %5649 = vmatpush3.msra.mxu1 %v1403_v62 }
 0x6ed   :  { %v1189_v63 = vpop.xlane.xlu1 %1188 }
 0x6ee   :  { %v1197_v0 = vmul.f32 0.03125, %v1189_v63  ;;  %v1402_v63 = vld [vmem:[%s6368_s20 + $0x30] sm:$0xff] }
 0x6ef   :  { %v1186_v1 = vpop.xlane.xlu0 %1185  ;;  %5650 = vmatprep.subr.mxu1 %v1402_v63 }
 0x6f0   :  { %v1201_v2 = vsub.f32 %v6667_v52, %v1197_v0  ;;  %v1196_v3 = vmul.f32 0.03125, %v1186_v1  ;;  %5651 = vmatpush3.msra.mxu1 %v1402_v63  ;;  %v1401_v0 = vld [vmem:[%s6368_s20 + $0x28] sm:$0xff]  ;;  %v1400_v1 = vld [vmem:[%s6368_s20 + $0x20] sm:$0xff] }
 0x6f1   :  { %5652 = vmatprep.subr.mxu1 %v1401_v0 }
 0x6f2   :  { %v1200_v13 = vsub.f32 %v6670_v55, %v1196_v3  ;;  %v1205_v4 = vmul.f32 %v1201_v2, %v1201_v2  ;;  %5653 = vmatpush3.msra.mxu1 %v1401_v0  ;;  %v1398_v3 = vld [vmem:[%s6368_s20 + $0x10] sm:$0xff] }
 0x6f3   :  { %v1192_v5 = vpop.xlane.xlu0 %1191  ;;  %5654 = vmatprep.subr.mxu1 %v1400_v1 }
 0x6f4   :  { %v1198_v18 = vmul.f32 0.03125, %v1192_v5  ;;  %v1211_v6 = vsel %vm223_vm3, %v1205_v4, 0.0  ;;  %v1204_v7 = vmul.f32 %v1200_v13, %v1200_v13  ;;  %5655 = vmatpush3.msra.mxu1 %v1400_v1  ;;  %v1396_v4 = vld [vmem:[%s6368_s20] sm:$0xff] }
 0x6f5   :  { %1212 = vadd.xlane.f32.xlu1 %v1211_v6  ;;  %v5207_v5 = vld [vmem:[%s7280_s9] ss:$0 sm:$0xff] }
 0x6f6   :  { %v1202_v8 = vsub.f32 %v6677_v61, %v1198_v18  ;;  %v1208_v9 = vsel %vm223_vm3, %v1204_v7, 0.0 }
 0x6f7   :  { %1209 = vadd.xlane.f32.xlu0 %v1208_v9  ;;  %v1195_v10 = vpop.xlane.xlu0 %1194 }
 0x6f8   :  { %v1199_v12 = vmul.f32 0.03125, %v1195_v10  ;;  %v1206_v15 = vmul.f32 %v1202_v8, %v1202_v8 }
 0x6fa   :  { %v1203_v16 = vsub.f32 %v6680_v17, %v1199_v12  ;;  %v1214_v20 = vsel %vm223_vm3, %v1206_v15, 0.0 }
 0x6fb   :  { %1215 = vadd.xlane.f32.xlu0 %v1214_v20 }
 0x6fc   :  { %v1207_v22 = vmul.f32 %v1203_v16, %v1203_v16 }
 0x6fe   :  { %v1217_v21 = vsel %vm223_vm3, %v1207_v22, 0.0 }
 0x6ff   :  { %1218 = vadd.xlane.f32.xlu1 %v1217_v21 }
 0x77e   :  { %v1213_v26 = vpop.xlane.xlu1 %1212 }
 0x77f   :  { %v1221_v27 = vmul.f32 0.03125, %v1213_v26 }
 0x780   :  { %v1210_v28 = vpop.xlane.xlu0 %1209 }
 0x781   :  { %v1225_v29 = vadd.f32 1e-05, %v1221_v27  ;;  %v1220_v30 = vmul.f32 0.03125, %v1210_v28 }
 0x783   :  { %6028 = vrsqrt.f32 %v1225_v29  ;;  %v1224_v33 = vadd.f32 1e-05, %v1220_v30 }
 0x784   :  { %v1216_v36 = vpop.xlane.xlu0 %1215 }
 0x785   :  { %6030 = vrsqrt.f32 %v1224_v33  ;;  %v1222_v37 = vmul.f32 0.03125, %v1216_v36 }
 0x787   :  { %v1226_v38 = vadd.f32 1e-05, %v1222_v37 }
 0x788   :  { %v1219_v39 = vpop.xlane.xlu1 %1218 }
 0x789   :  { %6032 = vrsqrt.f32 %v1226_v38  ;;  %v1223_v40 = vmul.f32 0.03125, %v1219_v39 }
 0x78b   :  { %v1227_v41 = vadd.f32 1e-05, %v1223_v40 }
 0x78d   :  { %6034 = vrsqrt.f32 %v1227_v41 }
 0x790   :  { %v6029_v42 = vpop.eup %6028 }
 0x791   :  { %v1233_v43 = vmul.f32 %v6029_v42, %v1201_v2  ;;  %v1399_v2 = vld [vmem:[%s6368_s20 + $0x18] sm:$0xff] }
 0x792   :  { %v6031_v45 = vpop.eup %6030  ;;  %5656 = vmatprep.subr.mxu1 %v1399_v2 }
 0x793   :  { %v1232_v46 = vmul.f32 %v6031_v45, %v1200_v13  ;;  %v1243_v47 = vmul.f32 %v5205_v44, %v1233_v43  ;;  %5657 = vmatpush3.msra.mxu1 %v1399_v2  ;;  %v1397_v13 = vld [vmem:[%s6368_s20 + $0x8] sm:$0xff] }
 0x794   :  { %5658 = vmatprep.subr.mxu1 %v1398_v3 }
 0x795   :  { %v1242_v49 = vmul.f32 %v5205_v44, %v1232_v46  ;;  %v1253_v54 = vadd.f32 %v5206_v48, %v1243_v47  ;;  %5659 = vmatpush3.msra.mxu1 %v1398_v3  ;;  %v5216_v46 = vld [vmem:[%s7281_s13] ss:$0 sm:$0xff] }
 0x796   :  { %v6033_v50 = vpop.eup %6032  ;;  %5660 = vmatprep.subr.mxu1 %v1397_v13 }
 0x797   :  { %v1252_v51 = vadd.f32 %v5206_v48, %v1242_v49  ;;  %v1234_v53 = vmul.f32 %v6033_v50, %v1202_v8  ;;  %5661 = vmatpush3.msra.mxu1 %v1397_v13 }
 0x798   :  { %5662 = vmatprep.subr.mxu1 %v1396_v4 }
 0x799   :  { %5642 = vmatprep.mubr.msk.f32.mxu0 %vm223_vm3, %v1252_v51  ;;  %v1244_v56 = vmul.f32 %v5205_v44, %v1234_v53  ;;  %5663 = vmatpush3.msra.mxu1 %v1396_v4 }
 0x79a   :  { %v6035_v57 = vpop.eup %6034  ;;  %5643 = vmatmul.mubr.msk.f32.vlgmr.msra.gmra.mxu0 %vm223_vm3, %v1253_v54  ;;  %5694 = vmatprep.subr.mxu1 %v6276_v14 }
 0x79b   :  { %v1254_v58 = vadd.f32 %v5206_v48, %v1244_v56  ;;  %v1235_v59 = vmul.f32 %v6035_v57, %v1203_v16 }
 0x79d   :  { %5645 = vmatprep.mubr.msk.f32.mxu0 %vm223_vm3, %v1254_v58  ;;  %v1245_v60 = vmul.f32 %v5205_v44, %v1235_v59 }
 0x79f   :  { %v1255_v11 = vadd.f32 %v5206_v48, %v1245_v60 }
 0x7a1   :  { %5646 = vmatmul.mubr.msk.f32.gmra.mxu0 %vm223_vm3, %v1255_v11 }
 0x85a   :  { %v5644_v18 = vpop.f32.mrf.mxu0 }
 0x85b   :  { %v1351_v6 = vadd.f32 %v5644_v18, %v5207_v5 }
 0x85c   :  { %v1345_v7 = vpop.f32.mrf.mxu0 }
 0x85d   :  { %v5213_v8 = vmul.f32 -1.702, %v1351_v6  ;;  %v1346_v9 = vadd.f32 %v5207_v5, %v1345_v7 }
 0x85f   :  { %v1374_v10 = vmul.f32 1.442695, %v5213_v8  ;;  %v5212_v12 = vmul.f32 -1.702, %v1346_v9 }
 0x861   :  { %6036 = vpow2.f32 %v1374_v10  ;;  %v1372_v15 = vmul.f32 1.442695, %v5212_v12  ;;  %v5647_v16 = vpop.f32.mrf.mxu0 }
 0x862   :  { %v1361_v20 = vadd.f32 %v5647_v16, %v5207_v5 }
 0x863   :  { %6038 = vpow2.f32 %v1372_v15  ;;  %v1355_v22 = vpop.f32.mrf.mxu0 }
 0x864   :  { %v5215_v21 = vmul.f32 -1.702, %v1361_v20  ;;  %v1356_v23 = vadd.f32 %v5207_v5, %v1355_v22  ;;  %v5228_v22 = vld [vmem:[%s6328_s3 + $0x38] sm:$0xff] }
 0x865   :  { %5670 = vmatprep.subr.mxu0 %v5228_v22 }
 0x866   :  { %v1378_v19 = vmul.f32 1.442695, %v5215_v21  ;;  %v5214_v24 = vmul.f32 -1.702, %v1356_v23  ;;  %v5227_v21 = vld [vmem:[%s6328_s3 + $0x30] sm:$0xff]  ;;  %5671 = vmatpush3.msra.mxu0 %v5228_v22 }
 0x867   :  { %5672 = vmatprep.subr.mxu0 %v5227_v21 }
 0x868   :  { %6040 = vpow2.f32 %v1378_v19  ;;  %v1376_v25 = vmul.f32 1.442695, %v5214_v24  ;;  %5673 = vmatpush3.msra.mxu0 %v5227_v21  ;;  %v5225_v19 = vld [vmem:[%s6328_s3 + $0x20] sm:$0xff] }
 0x86a   :  { %6042 = vpow2.f32 %v1376_v25 }
 0x86e   :  { %v6037_v26 = vpop.eup %6036 }
 0x86f   :  { %v1381_v27 = vadd.f32 1.0, %v6037_v26 }
 0x870   :  { %v6039_v28 = vpop.eup %6038 }
 0x871   :  { %v1380_v29 = vadd.f32 1.0, %v6039_v28  ;;  %6044 = vrcp.f32 %v1381_v27 }
 0x873   :  { %6046 = vrcp.f32 %v1380_v29 }
 0x875   :  { %v6041_v30 = vpop.eup %6040 }
 0x876   :  { %v1383_v33 = vadd.f32 1.0, %v6041_v30 }
 0x877   :  { %v6043_v36 = vpop.eup %6042 }
 0x878   :  { %v1382_v37 = vadd.f32 1.0, %v6043_v36  ;;  %6048 = vrcp.f32 %v1383_v33 }
 0x87a   :  { %6050 = vrcp.f32 %v1382_v37 }
 0x87e   :  { %v6045_v38 = vpop.eup %6044 }
 0x87f   :  { %v1393_v41 = vmul.f32 %v6045_v38, %v1351_v6 }
 0x880   :  { %v6047_v39 = vpop.eup %6046 }
 0x881   :  { %v1392_v40 = vmul.f32 %v6047_v39, %v1346_v9 }
 0x883   :  { %5664 = vmatprep.mubr.msk.f32.mxu1 %vm1411_vm7, %v1392_v40 }
 0x884   :  { %5665 = vmatmul.mubr.msk.f32.vlgmr.msra.gmra.mxu1 %vm1411_vm7, %v1393_v41 }
 0x885   :  { %v6049_v42 = vpop.eup %6048 }
 0x886   :  { %v1395_v45 = vmul.f32 %v6049_v42, %v1361_v20  ;;  %v5223_v42 = vld [vmem:[%s6318_s25 + $0x1] ss:$0 sm:$0xff]  ;;  %s7283_s25 = sld [smem:[#allocation17_spill]] }
 0x887   :  { %v6051_v43 = vpop.eup %6050 }
 0x888   :  { %v1394_v44 = vmul.f32 %v6051_v43, %v1356_v23  ;;  %v5226_v23 = vld [vmem:[%s6328_s3 + $0x28] sm:$0xff]  ;;  %s7285_s3 = sld [smem:[#allocation16_spill]] }
 0x889   :  { %5674 = vmatprep.subr.mxu0 %v5226_v23 }
 0x88a   :  { %5667 = vmatprep.mubr.msk.f32.mxu1 %vm1411_vm7, %v1394_v44  ;;  %5675 = vmatpush3.msra.mxu0 %v5226_v23 }
 0x88b   :  { %5668 = vmatmul.mubr.msk.f32.gmra.mxu1 %vm1411_vm7, %v1395_v45  ;;  %5676 = vmatprep.subr.mxu0 %v5225_v19 }
 0x88c   :  { %5696 = vmatprep.mubr.msk.f32.mxu1 %vm6277_vm4, %v6276_v14  ;;  %5677 = vmatpush3.msra.mxu0 %v5225_v19 }
 0x88d   :  { %5684 = vmatprep.subr.mxu0 %v6276_v14 }
 0x944   :  { %v5666_v47 = vpop.f32.mrf.mxu1 }
 0x945   :  { %v1496_v48 = vadd.f32 %v5666_v47, %v5216_v46 }
 0x946   :  { %v1490_v49 = vpop.f32.mrf.mxu1 }
 0x947   :  { %v6722_v50 = vadd.f32 %v1496_v48, %v6667_v52  ;;  %v1491_v51 = vadd.f32 %v5216_v46, %v1490_v49 }
 0x949   :  { %v6725_v53 = vadd.f32 %v1491_v51, %v6670_v55  ;;  %v1520_v54 = vsel %vm223_vm3, %v6722_v50, 0.0 }
 0x94a   :  { %1521 = vadd.xlane.f32.xlu1 %v1520_v54 }
 0x94b   :  { %v5669_v56 = vpop.f32.mrf.mxu1  ;;  %v1517_v57 = vsel %vm223_vm3, %v6725_v53, 0.0 }
 0x94c   :  { %v1506_v58 = vadd.f32 %v5669_v56, %v5216_v46  ;;  %1518 = vadd.xlane.f32.xlu0 %v1517_v57 }
 0x94d   :  { %v1500_v59 = vpop.f32.mrf.mxu1 }
 0x94e   :  { %v6732_v60 = vadd.f32 %v1506_v58, %v6680_v17  ;;  %v1501_v52 = vadd.f32 %v5216_v46, %v1500_v59  ;;  %v5224_v46 = vld [vmem:[%s6323_s29 + $0x1] ss:$0 sm:$0xff]  ;;  %s7284_s29 = sld [smem:[#allocation15_spill]] }
 0x950   :  { %v6735_v11 = vadd.f32 %v1501_v52, %v6677_v61  ;;  %v1526_v55 = vsel %vm223_vm3, %v6732_v60, 0.0 }
 0x951   :  { %1527 = vadd.xlane.f32.xlu1 %v1526_v55 }
 0x952   :  { %v1523_v62 = vsel %vm223_vm3, %v6735_v11, 0.0 }
 0x953   :  { %1524 = vadd.xlane.f32.xlu0 %v1523_v62  ;;  %v5230_v62 = vld [vmem:[%s6333_s8 + $0x1] ss:$0 sm:$0xff]  ;;  %s7286_s8 = sld [smem:[#allocation18_spill]] }
 0x9d3   :  { %v1522_v63 = vpop.xlane.xlu1 %1521 }
 0x9d4   :  { %v1530_v0 = vmul.f32 0.03125, %v1522_v63 }
 0x9d5   :  { %v1519_v1 = vpop.xlane.xlu0 %1518 }
 0x9d6   :  { %v1534_v2 = vsub.f32 %v6722_v50, %v1530_v0  ;;  %v1529_v3 = vmul.f32 0.03125, %v1519_v1 }
 0x9d8   :  { %v1533_v17 = vsub.f32 %v6725_v53, %v1529_v3  ;;  %v1538_v13 = vmul.f32 %v1534_v2, %v1534_v2 }
 0x9da   :  { %v1528_v4 = vpop.xlane.xlu1 %1527  ;;  %v1544_v61 = vsel %vm223_vm3, %v1538_v13, 0.0  ;;  %v1537_v5 = vmul.f32 %v1533_v17, %v1533_v17 }
 0x9db   :  { %v1532_v18 = vmul.f32 0.03125, %v1528_v4  ;;  %1545 = vadd.xlane.f32.xlu1 %v1544_v61 }
 0x9dc   :  { %v1525_v6 = vpop.xlane.xlu0 %1524  ;;  %v1541_v7 = vsel %vm223_vm3, %v1537_v5, 0.0 }
 0x9dd   :  { %v1536_v8 = vsub.f32 %v6732_v60, %v1532_v18  ;;  %v1531_v9 = vmul.f32 0.03125, %v1525_v6  ;;  %1542 = vadd.xlane.f32.xlu0 %v1541_v7 }
 0x9df   :  { %v1535_v10 = vsub.f32 %v6735_v11, %v1531_v9  ;;  %v1540_v12 = vmul.f32 %v1536_v8, %v1536_v8 }
 0x9e1   :  { %v1550_v15 = vsel %vm223_vm3, %v1540_v12, 0.0  ;;  %v1539_v16 = vmul.f32 %v1535_v10, %v1535_v10 }
 0x9e2   :  { %1551 = vadd.xlane.f32.xlu1 %v1550_v15 }
 0x9e3   :  { %v1547_v20 = vsel %vm223_vm3, %v1539_v16, 0.0 }
 0x9e4   :  { %1548 = vadd.xlane.f32.xlu0 %v1547_v20 }
 0xa64   :  { %v1546_v24 = vpop.xlane.xlu1 %1545 }
 0xa65   :  { %v1554_v25 = vmul.f32 0.03125, %v1546_v24 }
 0xa66   :  { %v1543_v26 = vpop.xlane.xlu0 %1542 }
 0xa67   :  { %v1558_v27 = vadd.f32 1e-05, %v1554_v25  ;;  %v1553_v28 = vmul.f32 0.03125, %v1543_v26 }
 0xa69   :  { %6052 = vrsqrt.f32 %v1558_v27  ;;  %v1557_v29 = vadd.f32 1e-05, %v1553_v28 }
 0xa6b   :  { %6054 = vrsqrt.f32 %v1557_v29  ;;  %v1552_v30 = vpop.xlane.xlu1 %1551 }
 0xa6c   :  { %v1556_v33 = vmul.f32 0.03125, %v1552_v30 }
 0xa6d   :  { %v1549_v36 = vpop.xlane.xlu0 %1548 }
 0xa6e   :  { %v1560_v37 = vadd.f32 1e-05, %v1556_v33  ;;  %v1555_v38 = vmul.f32 0.03125, %v1549_v36 }
 0xa70   :  { %6056 = vrsqrt.f32 %v1560_v37  ;;  %v1559_v39 = vadd.f32 1e-05, %v1555_v38 }
 0xa72   :  { %6058 = vrsqrt.f32 %v1559_v39 }
 0xa76   :  { %v6053_v40 = vpop.eup %6052 }
 0xa77   :  { %v1566_v41 = vmul.f32 %v6053_v40, %v1534_v2 }
 0xa78   :  { %v6055_v43 = vpop.eup %6054 }
 0xa79   :  { %v1565_v44 = vmul.f32 %v6055_v43, %v1533_v17  ;;  %v1576_v45 = vmul.f32 %v5223_v42, %v1566_v41 }
 0xa7b   :  { %v1575_v47 = vmul.f32 %v5223_v42, %v1565_v44  ;;  %v1586_v51 = vadd.f32 %v5224_v46, %v1576_v45 }
 0xa7d   :  { %v6057_v48 = vpop.eup %6056  ;;  %v1585_v49 = vadd.f32 %v5224_v46, %v1575_v47 }
 0xa7e   :  { %v1568_v54 = vmul.f32 %v6057_v48, %v1536_v8 }
 0xa7f   :  { %v6059_v56 = vpop.eup %6058  ;;  %5678 = vmatprep.mubr.msk.f32.mxu0 %vm223_vm3, %v1585_v49 }
 0xa80   :  { %5679 = vmatmul.mubr.msk.f32.vlgmr.msra.gmra.mxu0 %vm223_vm3, %v1586_v51  ;;  %v1567_v57 = vmul.f32 %v6059_v56, %v1535_v10  ;;  %v1578_v58 = vmul.f32 %v5223_v42, %v1568_v54 }
 0xa82   :  { %v1577_v59 = vmul.f32 %v5223_v42, %v1567_v57  ;;  %v1588_v55 = vadd.f32 %v5224_v46, %v1578_v58 }
 0xa84   :  { %v1587_v52 = vadd.f32 %v5224_v46, %v1577_v59 }
 0xa86   :  { %5681 = vmatprep.mubr.msk.f32.mxu0 %vm223_vm3, %v1587_v52 }
 0xa87   :  { %5682 = vmatmul.mubr.msk.f32.gmra.mxu0 %vm223_vm3, %v1588_v55 }
 0xa88   :  { %5686 = vmatprep.mubr.msk.f32.mxu0 %vm6277_vm4, %v6276_v14 }
 0xb40   :  { %v5680_v63 = vpop.f32.mrf.mxu0 }
 0xb41   :  { %v6763_v0 = vadd.f32 %v5680_v63, %v5230_v62 }
 0xb42   :  { %v1680_v1 = vpop.f32.mrf.mxu0 }
 0xb43   :  { %v6765_v2 = vadd.f32 %v5230_v62, %v1680_v1  ;;  %1777 = vrot.lane.b32.xlu1 %v6763_v0, %s6278_s0 }
 0xb45   :  { %1700 = vrot.lane.b32.xlu0 %v6765_v2, %s6278_s0 }
 0xb47   :  { %v5683_v3 = vpop.f32.mrf.mxu0 }
 0xb48   :  { %v6775_v4 = vadd.f32 %v5683_v3, %v5230_v62 }
 0xb49   :  { %v1690_v17 = vpop.f32.mrf.mxu0 }
 0xb4a   :  { %v6771_v13 = vadd.f32 %v5230_v62, %v1690_v17 }
 0xb4c   :  { %1854 = vrot.lane.b32.xlu1 %v6771_v13, %s6278_s0 }
 0xb50   :  { %1931 = vrot.lane.b32.xlu1 %v6775_v4, %s6278_s0 }
 0xbb5   :  { %v1778_v5 = vpop.permute.xlu1 %1777 }
 0xbb7   :  { %v1701_v61 = vpop.permute.xlu0 %1700 }
 0xbb8   :  { %5685 = vmatpush3.xpose.msk.msra.mxu0 %vm223_vm3, %v1701_v61 }
 0xbb9   :  { %5689 = vmatprep.subr.mxu0 %v6276_v14 }
 0xbbb   :  { %5687 = vmatmul.mubr.msk.f32.vlgmr.msra.gmra.mxu0 %vm223_vm3, %v6765_v2 }
 0xbbc   :  { %5690 = vmatpush3.xpose.msk.msra.mxu0 %vm223_vm3, %v1778_v5  ;;  %5691 = vmatprep.mubr.msk.f32.mxu0 %vm6277_vm4, %v6276_v14  ;;  %v5249_v5 = vld [vmem:[%s6338_s14 + $0x30] sm:$0xff] }
 0xbbd   :  { %5699 = vmatprep.subr.mxu0 %v6276_v14 }
 0xbbe   :  { %v1855_v18 = vpop.permute.xlu1 %1854 }
 0xbbf   :  { %5692 = vmatmul.mubr.msk.f32.vlgmr.msra.gmra.mxu0 %vm223_vm3, %v6763_v0  ;;  %5695 = vmatpush3.xpose.msk.msra.mxu1 %vm223_vm3, %v1855_v18 }
 0xbc0   :  { %5701 = vmatprep.mubr.msk.f32.mxu0 %vm6277_vm4, %v6276_v14  ;;  %5704 = vmatprep.subr.mxu1 %v6276_v14 }
 0xbc2   :  { %5697 = vmatmul.mubr.msk.f32.vlgmr.msra.gmra.mxu1 %vm223_vm3, %v6771_v13  ;;  %v1932_v6 = vpop.permute.xlu1 %1931 }
 0xbc3   :  { %5700 = vmatpush3.xpose.msk.msra.mxu0 %vm223_vm3, %v1932_v6  ;;  %5706 = vmatprep.mubr.msk.f32.mxu1 %vm6277_vm4, %v6276_v14 }
 0xbc4   :  { %5709 = vmatprep.subr.mxu0 %v6276_v14 }
 0xbc6   :  { %5702 = vmatmul.mubr.msk.f32.vlgmr.msra.gmra.mxu0 %vm223_vm3, %v6775_v4 }
 0xbc7   :  { %5711 = vmatprep.mubr.msk.f32.mxu0 %vm6277_vm4, %v6276_v14 }
 0xc7b   :  { %v1772_v7 = vpop.f32.mrf.mxu0 }
 0xc7c   :  { %v2007_v8 = vmul.f32 0.17677669, %v1772_v7 }
 0xc7d   :  { %v5688_v9 = vpop.f32.mrf.mxu0 }
 0xc7e   :  { %v2011_v10 = vadd.f32 %v2007_v8, %v6625_v35  ;;  %v5248_v9 = vld [vmem:[%s6338_s14 + $0x28] sm:$0xff] }
 0xc7f   :  { %v1849_v12 = vpop.f32.mrf.mxu0 }
 0xc80   :  { %v2008_v15 = vmul.f32 0.17677669, %v1849_v12  ;;  %v2015_v16 = vsel %vm721_vm6, %v2011_v10, -inf }
 0xc81   :  { %2016 = vmax.xlane.f32.xlu0 %v2015_v16  ;;  %v5693_v20 = vpop.f32.mrf.mxu0 }
 0xc82   :  { %v1926_v22 = vpop.f32.mrf.mxu1  ;;  %v2012_v21 = vadd.f32 %v2008_v15, %v6625_v35 }
 0xc83   :  { %v2009_v23 = vmul.f32 0.17677669, %v1926_v22 }
 0xc84   :  { %v5698_v19 = vpop.f32.mrf.mxu1  ;;  %v2018_v24 = vsel %vm721_vm6, %v2012_v21, -inf }
 0xc85   :  { %2019 = vmax.xlane.f32.xlu1 %v2018_v24  ;;  %v2013_v25 = vadd.f32 %v2009_v23, %v6625_v35  ;;  %v5252_v24 = vld [vmem:[%s6343_s19 + $0x1] ss:$0 sm:$0xff]  ;;  %s7288_s19 = sld [smem:[#allocation20_spill]] }
 0xc86   :  { %v2003_v26 = vpop.f32.mrf.mxu0 }
 0xc87   :  { %v2010_v27 = vmul.f32 0.17677669, %v2003_v26  ;;  %v2021_v28 = vsel %vm721_vm6, %v2013_v25, -inf }
 0xc88   :  { %2022 = vmax.xlane.f32.xlu0 %v2021_v28  ;;  %v5703_v29 = vpop.f32.mrf.mxu0 }
 0xc89   :  { %v2014_v30 = vadd.f32 %v2010_v27, %v6625_v35 }
 0xc8b   :  { %v2024_v33 = vsel %vm721_vm6, %v2014_v30, -inf }
 0xc8c   :  { %2025 = vmax.xlane.f32.xlu0 %v2024_v33 }
 0xd0a   :  { %v2017_v36 = vpop.xlane.xlu0 %2016 }
 0xd0b   :  { %v2027_v37 = vsub.f32 %v2011_v10, %v2017_v36  ;;  %v5247_v10 = vld [vmem:[%s6338_s14 + $0x20] sm:$0xff] }
 0xd0d   :  { %v2031_v38 = vmul.f32 1.442695, %v2027_v37 }
 0xd0e   :  { %v2020_v39 = vpop.xlane.xlu1 %2019 }
 0xd0f   :  { %6060 = vpow2.f32 %v2031_v38  ;;  %v2028_v40 = vsub.f32 %v2012_v21, %v2020_v39 }
 0xd11   :  { %v2033_v41 = vmul.f32 1.442695, %v2028_v40  ;;  %v2023_v42 = vpop.xlane.xlu0 %2022 }
 0xd12   :  { %v2029_v43 = vsub.f32 %v2013_v25, %v2023_v42 }
 0xd13   :  { %6062 = vpow2.f32 %v2033_v41 }
 0xd14   :  { %v2035_v44 = vmul.f32 1.442695, %v2029_v43 }
 0xd15   :  { %v2026_v51 = vpop.xlane.xlu0 %2025 }
 0xd16   :  { %6064 = vpow2.f32 %v2035_v44  ;;  %v2030_v54 = vsub.f32 %v2014_v30, %v2026_v51  ;;  %v5264_v51 = vld [vmem:[%s6358_s6 + $0x38] sm:$0xff] }
 0xd18   :  { %v2037_v56 = vmul.f32 1.442695, %v2030_v54  ;;  %v5263_v54 = vld [vmem:[%s6358_s6 + $0x30] sm:$0xff] }
 0xd1a   :  { %6066 = vpow2.f32 %v2037_v56  ;;  %v5262_v56 = vld [vmem:[%s6358_s6 + $0x28] sm:$0xff] }
 0xd1c   :  { %v6061_v45 = vpop.eup %6060 }
 0xd1d   :  { %v2039_v46 = vsel %vm721_vm6, %v6061_v45, 0.0 }
 0xd1e   :  { %2040 = vadd.xlane.f32.xlu0 %v2039_v46 }
 0xd20   :  { %v6063_v35 = vpop.eup %6062 }
 0xd21   :  { %v2042_v47 = vsel %vm721_vm6, %v6063_v35, 0.0 }
 0xd22   :  { %2043 = vadd.xlane.f32.xlu1 %v2042_v47 }
 0xd23   :  { %v6065_v48 = vpop.eup %6064 }
 0xd24   :  { %v2045_v49 = vsel %vm721_vm6, %v6065_v48, 0.0 }
 0xd25   :  { %2046 = vadd.xlane.f32.xlu0 %v2045_v49 }
 0xd27   :  { %v6067_v57 = vpop.eup %6066 }
 0xd28   :  { %v2048_v58 = vsel %vm721_vm6, %v6067_v57, 0.0 }
 0xd33   :  { %2135 = vrot.lane.b32.xlu1 %v6763_v0, %s6280_s5 }
 0xd37   :  { %2211 = vrot.lane.b32.xlu1 %v6771_v13, %s6280_s5 }
 0xd3b   :  { %2059 = vrot.lane.b32.xlu0 %v6765_v2, %s6280_s5  ;;  %v5250_v2 = vld [vmem:[%s6338_s14 + $0x38] sm:$0xff]  ;;  %s7287_s14 = sld [smem:[#allocation19_spill]] }
 0xd5b   :  { %2049 = vadd.xlane.f32.xlu1 %v2048_v58 }
 0xd6c   :  { %2287 = vrot.lane.b32.xlu1 %v6775_v4, %s6280_s5 }
 0xda7   :  { %v2041_v59 = vpop.xlane.xlu0 %2040 }
 0xda8   :  { %6068 = vrcp.f32 %v2041_v59 }
 0xdab   :  { %v2044_v52 = vpop.xlane.xlu1 %2043 }
 0xdac   :  { %6070 = vrcp.f32 %v2044_v52 }
 0xdae   :  { %v2047_v55 = vpop.xlane.xlu0 %2046 }
 0xdaf   :  { %6072 = vrcp.f32 %v2047_v55  ;;  %v2136_v62 = vpop.permute.xlu1 %2135 }
 0xdb0   :  { %5710 = vmatpush3.msra.mxu0 %v2136_v62 }
 0xdb1   :  { %5719 = vmatprep.subr.mxu0 %v6276_v14 }
 0xdb2   :  { %v2060_v63 = vpop.permute.xlu0 %2059 }
 0xdb3   :  { %5705 = vmatpush3.msra.mxu1 %v2060_v63  ;;  %v2212_v3 = vpop.permute.xlu1 %2211 }
 0xdb4   :  { %5714 = vmatprep.subr.mxu1 %v6276_v14 }
 0xdb5   :  { %v6069_v0 = vpop.eup %6068 }
 0xdb6   :  { %v2055_v1 = vmul.f32 %v6069_v0, %v6061_v45 }
 0xdb8   :  { %5707 = vmatmul.mubr.msk.f32.vlgmr.msra.gmra.mxu1 %vm721_vm6, %v2055_v1 }
 0xdb9   :  { %v6071_v17 = vpop.eup %6070  ;;  %5715 = vmatpush3.msra.mxu1 %v2212_v3  ;;  %5716 = vmatprep.mubr.msk.f32.mxu1 %vm6277_vm4, %v6276_v14 }
 0xdba   :  { %v2056_v13 = vmul.f32 %v6071_v17, %v6063_v35  ;;  %5724 = vmatprep.subr.mxu1 %v5250_v2 }
 0xdbc   :  { %v6073_v4 = vpop.eup %6072  ;;  %5712 = vmatmul.mubr.msk.f32.vlgmr.msra.gmra.mxu0 %vm721_vm6, %v2056_v13 }
 0xdbd   :  { %v2057_v61 = vmul.f32 %v6073_v4, %v6065_v48  ;;  %5721 = vmatprep.mubr.msk.f32.mxu0 %vm6277_vm4, %v6276_v14 }
 0xdbf   :  { %5717 = vmatmul.mubr.msk.f32.vlgmr.msra.gmra.mxu1 %vm721_vm6, %v2057_v61 }
 0xdc0   :  { %5725 = vmatpush3.msra.mxu1 %v5250_v2 }
 0xdc1   :  { %5726 = vmatprep.subr.mxu1 %v5249_v5 }
 0xdc2   :  { %5727 = vmatpush3.msra.mxu1 %v5249_v5 }
 0xdc3   :  { %5728 = vmatprep.subr.mxu1 %v5248_v9 }
 0xdc4   :  { %5729 = vmatpush3.msra.mxu1 %v5248_v9 }
 0xdc5   :  { %5730 = vmatprep.subr.mxu1 %v5247_v10 }
 0xdc6   :  { %5731 = vmatpush3.msra.mxu1 %v5247_v10 }
 0xde4   :  { %v2050_v18 = vpop.xlane.xlu1 %2049 }
 0xde5   :  { %6074 = vrcp.f32 %v2050_v18 }
 0xde8   :  { %v2288_v6 = vpop.permute.xlu1 %2287 }
 0xde9   :  { %5720 = vmatpush3.msra.mxu0 %v2288_v6 }
 0xdea   :  { %5738 = vmatprep.subr.mxu0 %v5264_v51 }
 0xdf2   :  { %v6075_v7 = vpop.eup %6074 }
 0xdf3   :  { %v2058_v8 = vmul.f32 %v6075_v7, %v6067_v57  ;;  %v5261_v57 = vld [vmem:[%s6358_s6 + $0x20] sm:$0xff]  ;;  %s7291_s6 = sld [smem:[#allocation23_spill]] }
 0xdf5   :  { %5722 = vmatmul.mubr.msk.f32.vlgmr.msra.gmra.mxu0 %vm721_vm6, %v2058_v8  ;;  %v5259_v8 = vld [vmem:[%s6348_s24 + $0x1] ss:$0 sm:$0xff]  ;;  %s7289_s24 = sld [smem:[#allocation21_spill]] }
 0xdf6   :  { %5739 = vmatpush3.msra.mxu0 %v5264_v51 }
 0xdf7   :  { %5740 = vmatprep.subr.mxu0 %v5263_v54 }
 0xdf8   :  { %5741 = vmatpush3.msra.mxu0 %v5263_v54 }
 0xdf9   :  { %5742 = vmatprep.subr.mxu0 %v5262_v56 }
 0xdfa   :  { %5743 = vmatpush3.msra.mxu0 %v5262_v56 }
 0xdfb   :  { %5744 = vmatprep.subr.mxu0 %v5261_v57 }
 0xdfc   :  { %5745 = vmatpush3.msra.mxu0 %v5261_v57 }
 0xdfd   :  { %5774 = vmatprep.subr.mxu0 %v6276_v14 }
 0xe78   :  { %v2131_v12 = vpop.f32.mrf.mxu1 }
 0xe79   :  { %5732 = vmatprep.mubr.msk.f32.mxu1 %vm223_vm3, %v2131_v12 }
 0xe7a   :  { %v5708_v15 = vpop.f32.mrf.mxu1 }
 0xe7b   :  { %v5260_v15 = vld [vmem:[%s6353_s30 + $0x1] ss:$0 sm:$0xff]  ;;  %s7290_s30 = sld [smem:[#allocation22_spill]] }
 0xe7c   :  { %v2207_v16 = vpop.f32.mrf.mxu0 }
 0xe7d   :  { %5733 = vmatmul.mubr.msk.f32.vlgmr.msra.gmra.mxu1 %vm223_vm3, %v2207_v16 }
 0xe7e   :  { %v5713_v20 = vpop.f32.mrf.mxu0 }
 0xe7f   :  { %v2283_v22 = vpop.f32.mrf.mxu1 }
 0xe80   :  { %5735 = vmatprep.mubr.msk.f32.mxu1 %vm223_vm3, %v2283_v22 }
 0xe81   :  { %v5718_v21 = vpop.f32.mrf.mxu1 }
 0xeb5   :  { %v2359_v23 = vpop.f32.mrf.mxu0 }
 0xeb6   :  { %5736 = vmatmul.mubr.msk.f32.gmra.mxu1 %vm223_vm3, %v2359_v23 }
 0xeb7   :  { %v5723_v19 = vpop.f32.mrf.mxu0 }
 0xf3d   :  { %v5734_v25 = vpop.f32.mrf.mxu1 }
 0xf3e   :  { %v2460_v26 = vadd.f32 %v5734_v25, %v5252_v24 }
 0xf3f   :  { %v2454_v27 = vpop.f32.mrf.mxu1 }
 0xf40   :  { %v6843_v28 = vadd.f32 %v2460_v26, %v6722_v50  ;;  %v2455_v29 = vadd.f32 %v5252_v24, %v2454_v27 }
 0xf42   :  { %v6846_v30 = vadd.f32 %v2455_v29, %v6725_v53  ;;  %v2484_v33 = vsel %vm223_vm3, %v6843_v28, 0.0 }
 0xf43   :  { %2485 = vadd.xlane.f32.xlu1 %v2484_v33 }
 0xf44   :  { %v2481_v36 = vsel %vm223_vm3, %v6846_v30, 0.0 }
 0xf45   :  { %2482 = vadd.xlane.f32.xlu0 %v2481_v36 }
 0xf76   :  { %v5737_v37 = vpop.f32.mrf.mxu1 }
 0xf77   :  { %v2470_v39 = vadd.f32 %v5737_v37, %v5252_v24 }
 0xf78   :  { %v2464_v38 = vpop.f32.mrf.mxu1 }
 0xf79   :  { %v2465_v40 = vadd.f32 %v5252_v24, %v2464_v38  ;;  %v6856_v50 = vadd.f32 %v2470_v39, %v6732_v60 }
 0xf7b   :  { %v6853_v41 = vadd.f32 %v2465_v40, %v6735_v11  ;;  %v2490_v42 = vsel %vm223_vm3, %v6856_v50, 0.0 }
 0xf7d   :  { %v2487_v53 = vsel %vm223_vm3, %v6853_v41, 0.0 }
 0xf7e   :  { %2488 = vadd.xlane.f32.xlu0 %v2487_v53  ;;  %v5282_v53 = vld [vmem:[%s6368_s20 + $0x78] sm:$0xff] }
 0xf7f   :  { %5752 = vmatprep.subr.mxu1 %v5282_v53 }
 0xf80   :  { %5753 = vmatpush3.msra.mxu1 %v5282_v53 }
 0xf82   :  { %2491 = vadd.xlane.f32.xlu0 %v2490_v42  ;;  %v5281_v42 = vld [vmem:[%s6368_s20 + $0x70] sm:$0xff] }
 0xf83   :  { %5754 = vmatprep.subr.mxu1 %v5281_v42 }
 0xf84   :  { %5755 = vmatpush3.msra.mxu1 %v5281_v42 }
 0xfcc   :  { %v2486_v43 = vpop.xlane.xlu1 %2485 }
 0xfcd   :  { %v2494_v44 = vmul.f32 0.03125, %v2486_v43  ;;  %v5280_v43 = vld [vmem:[%s6368_s20 + $0x68] sm:$0xff] }
 0xfce   :  { %v2483_v45 = vpop.xlane.xlu0 %2482  ;;  %5756 = vmatprep.subr.mxu1 %v5280_v43 }
 0xfcf   :  { %v2498_v11 = vsub.f32 %v6843_v28, %v2494_v44  ;;  %v2493_v46 = vmul.f32 0.03125, %v2483_v45  ;;  %5757 = vmatpush3.msra.mxu1 %v5280_v43  ;;  %v5279_v44 = vld [vmem:[%s6368_s20 + $0x60] sm:$0xff]  ;;  %v5278_v45 = vld [vmem:[%s6368_s20 + $0x58] sm:$0xff] }
 0xfd0   :  { %5758 = vmatprep.subr.mxu1 %v5279_v44  ;;  %v2887_v43 = vld [vmem:[%s7282_s17] sm:$0xf]  ;;  %s6283_s17 = smov [#allocation5]  }
 0xfd1   :  { %v2497_v60 = vsub.f32 %v6846_v30, %v2493_v46  ;;  %v2502_v35 = vmul.f32 %v2498_v11, %v2498_v11  ;;  %5759 = vmatpush3.msra.mxu1 %v5279_v44  ;;  %v5276_v46 = vld [vmem:[%s6368_s20 + $0x48] sm:$0xff] }
 0xfd2   :  { %5760 = vmatprep.subr.mxu1 %v5278_v45 }
 0xfd3   :  { %v2508_v47 = vsel %vm223_vm3, %v2502_v35, 0.0  ;;  %v2501_v48 = vmul.f32 %v2497_v60, %v2497_v60  ;;  %5761 = vmatpush3.msra.mxu1 %v5278_v45  ;;  %v5266_v35 = vld [vmem:[%s7280_s9 + $0x1] ss:$0 sm:$0xff]  ;;  %v2896_v45 = vsub.s32 0, %v6618_v31  ;;  %s6282_s9 = smov [#allocation7]  }
 0xfd4   :  { %2509 = vadd.xlane.f32.xlu1 %v2508_v47 }
 0xfd5   :  { %v2505_v49 = vsel %vm223_vm3, %v2501_v48, 0.0 }
 0xfd6   :  { %2506 = vadd.xlane.f32.xlu0 %v2505_v49 }
0x1007   :  { %v2489_v58 = vpop.xlane.xlu0 %2488 }
0x1008   :  { %v2495_v59 = vmul.f32 0.03125, %v2489_v58 }
0x100a   :  { %v2499_v52 = vsub.f32 %v6853_v41, %v2495_v59 }
0x100b   :  { %v2492_v55 = vpop.xlane.xlu0 %2491 }
0x100c   :  { %v2496_v62 = vmul.f32 0.03125, %v2492_v55  ;;  %v2503_v63 = vmul.f32 %v2499_v52, %v2499_v52 }
0x100e   :  { %v2500_v0 = vsub.f32 %v6856_v50, %v2496_v62  ;;  %v2511_v1 = vsel %vm223_vm3, %v2503_v63, 0.0 }
0x100f   :  { %2512 = vadd.xlane.f32.xlu0 %v2511_v1 }
0x1010   :  { %v2504_v2 = vmul.f32 %v2500_v0, %v2500_v0 }
0x1012   :  { %v2514_v3 = vsel %vm223_vm3, %v2504_v2, 0.0 }
0x1013   :  { %2515 = vadd.xlane.f32.xlu1 %v2514_v3 }
0x105d   :  { %v2510_v17 = vpop.xlane.xlu1 %2509 }
0x105e   :  { %v2518_v13 = vmul.f32 0.03125, %v2510_v17 }
0x105f   :  { %v2507_v4 = vpop.xlane.xlu0 %2506 }
0x1060   :  { %v2522_v61 = vadd.f32 1e-05, %v2518_v13  ;;  %v2517_v5 = vmul.f32 0.03125, %v2507_v4 }
0x1062   :  { %6076 = vrsqrt.f32 %v2522_v61  ;;  %v2521_v18 = vadd.f32 1e-05, %v2517_v5 }
0x1064   :  { %6078 = vrsqrt.f32 %v2521_v18 }
0x106f   :  { %v6077_v6 = vpop.eup %6076 }
0x1070   :  { %v2530_v7 = vmul.f32 %v6077_v6, %v2498_v11  ;;  %v5277_v11 = vld [vmem:[%s6368_s20 + $0x50] sm:$0xff] }
0x1071   :  { %v6079_v9 = vpop.eup %6078  ;;  %5762 = vmatprep.subr.mxu1 %v5277_v11 }
0x1072   :  { %v2529_v10 = vmul.f32 %v6079_v9, %v2497_v60  ;;  %v2540_v12 = vmul.f32 %v5259_v8, %v2530_v7  ;;  %5763 = vmatpush3.msra.mxu1 %v5277_v11  ;;  %v5275_v60 = vld [vmem:[%s6368_s20 + $0x40] sm:$0xff]  ;;  %s7292_s20 = sld [smem:[#allocation26_spill]] }
0x1073   :  { %5764 = vmatprep.subr.mxu1 %v5276_v46 }
0x1074   :  { %v2539_v16 = vmul.f32 %v5259_v8, %v2529_v10  ;;  %v2550_v22 = vadd.f32 %v5260_v15, %v2540_v12  ;;  %5765 = vmatpush3.msra.mxu1 %v5276_v46 }
0x1075   :  { %5766 = vmatprep.subr.mxu1 %v5275_v60 }
0x1076   :  { %v2549_v20 = vadd.f32 %v5260_v15, %v2539_v16  ;;  %5767 = vmatpush3.msra.mxu1 %v5275_v60  ;;  %v2903_v60 = vsub.s32 1, %v6618_v31 }
0x1078   :  { %5746 = vmatprep.mubr.msk.f32.mxu0 %vm223_vm3, %v2549_v20 }
0x1079   :  { %5747 = vmatmul.mubr.msk.f32.vlgmr.msra.gmra.mxu0 %vm223_vm3, %v2550_v22  ;;  %v6281_v22 = vmov 0  }
0x107a   :  { %6000 = vset.pattern.permute.xlu0 %v6281_v22 }
0x1098   :  { %v2513_v21 = vpop.xlane.xlu0 %2512 }
0x1099   :  { %v2519_v23 = vmul.f32 0.03125, %v2513_v21  ;;  %v5284_v21 = vld [vmem:[%s7281_s13 + $0x1] ss:$0 sm:$0xff]  ;;  %s5112_s13 = sshll.u32 %s6282_s9, 4  ;;  %s5113_s13 = int_to_ptr.vmem [resolvable:$true] %s5112_s13 }
0x109a   :  { %p6173_p1 = scmp.lt.s32.totalorder %s5113_s13, %s5113_s13 }
0x109b   :  { %v2523_v19 = vadd.f32 1e-05, %v2519_v23 }
0x109c   :  { %v2516_v24 = vpop.xlane.xlu1 %2515 }
0x109d   :  { %6080 = vrsqrt.f32 %v2523_v19  ;;  %v2520_v25 = vmul.f32 0.03125, %v2516_v24 }
0x109f   :  { %v2524_v26 = vadd.f32 1e-05, %v2520_v25 }
0x10a1   :  { %6082 = vrsqrt.f32 %v2524_v26 }
0x10aa   :  { %v6081_v27 = vpop.eup %6080 }
0x10ab   :  { %v2531_v29 = vmul.f32 %v6081_v27, %v2499_v52 }
0x10ad   :  { %v2541_v33 = vmul.f32 %v5259_v8, %v2531_v29 }
0x10ae   :  { %v6083_v36 = vpop.eup %6082 }
0x10af   :  { %v2551_v37 = vadd.f32 %v5260_v15, %v2541_v33  ;;  %v2532_v38 = vmul.f32 %v6083_v36, %v2500_v0 }
0x10b1   :  { %5749 = vmatprep.mubr.msk.f32.mxu0 %vm223_vm3, %v2551_v37  ;;  %v2542_v39 = vmul.f32 %v5259_v8, %v2532_v38 }
0x10b3   :  { %v2552_v40 = vadd.f32 %v5260_v15, %v2542_v39 }
0x10b5   :  { %5750 = vmatmul.mubr.msk.f32.gmra.mxu0 %vm223_vm3, %v2552_v40 }
0x10b6   :  { %5782 = vmatprep.mubr.msk.f32.mxu0 %vm6277_vm4, %v6276_v14 }
0x1139   :  { %v5748_v47 = vpop.f32.mrf.mxu0 }
0x113a   :  { %v2650_v48 = vadd.f32 %v5748_v47, %v5266_v35 }
0x113b   :  { %v2644_v49 = vpop.f32.mrf.mxu0 }
0x113c   :  { %v5272_v51 = vmul.f32 -1.702, %v2650_v48  ;;  %v2645_v54 = vadd.f32 %v5266_v35, %v2644_v49 }
0x113e   :  { %v2673_v56 = vmul.f32 1.442695, %v5272_v51  ;;  %v5271_v57 = vmul.f32 -1.702, %v2645_v54 }
0x1140   :  { %6084 = vpow2.f32 %v2673_v56  ;;  %v2671_v58 = vmul.f32 1.442695, %v5271_v57 }
0x1142   :  { %6086 = vpow2.f32 %v2671_v58 }
0x114d   :  { %v6085_v59 = vpop.eup %6084 }
0x114e   :  { %v2680_v52 = vadd.f32 1.0, %v6085_v59 }
0x114f   :  { %v6087_v55 = vpop.eup %6086 }
0x1150   :  { %v2679_v62 = vadd.f32 1.0, %v6087_v55  ;;  %6088 = vrcp.f32 %v2680_v52 }
0x1152   :  { %6090 = vrcp.f32 %v2679_v62 }
0x115d   :  { %v6089_v63 = vpop.eup %6088 }
0x115e   :  { %v2692_v2 = vmul.f32 %v6089_v63, %v2650_v48 }
0x115f   :  { %v6091_v0 = vpop.eup %6090 }
0x1160   :  { %v2691_v1 = vmul.f32 %v6091_v0, %v2645_v54 }
0x1162   :  { %5768 = vmatprep.mubr.msk.f32.mxu1 %vm1411_vm7, %v2691_v1 }
0x1163   :  { %5769 = vmatmul.mubr.msk.f32.vlgmr.msra.gmra.mxu1 %vm1411_vm7, %v2692_v2 }
0x1175   :  { %v5751_v3 = vpop.f32.mrf.mxu0 }
0x1176   :  { %v2660_v17 = vadd.f32 %v5751_v3, %v5266_v35 }
0x1177   :  { %v2654_v13 = vpop.f32.mrf.mxu0 }
0x1178   :  { %v5274_v4 = vmul.f32 -1.702, %v2660_v17  ;;  %v2655_v61 = vadd.f32 %v5266_v35, %v2654_v13 }
0x117a   :  { %v2677_v5 = vmul.f32 1.442695, %v5274_v4  ;;  %v5273_v18 = vmul.f32 -1.702, %v2655_v61  ;;  %v2917_v4 = vsub.s32 3, %v6618_v31 }
0x117c   :  { %6092 = vpow2.f32 %v2677_v5  ;;  %v2675_v6 = vmul.f32 1.442695, %v5273_v18  ;;  %v2957_v5 = vld [vmem:[%s7283_s25 + $0x18] sm:$0xff]  ;;  %v2956_v18 = vld [vmem:[%s7283_s25 + $0x10] sm:$0xff] }
0x117d   :  { %5775 = vmatpush3.msra.mxu0 %v2957_v5 }
0x117e   :  { %6094 = vpow2.f32 %v2675_v6  ;;  %5776 = vmatprep.subr.mxu0 %v6276_v14  ;;  %v2955_v6 = vld [vmem:[%s7283_s25 + $0x8] sm:$0xff] }
0x117f   :  { %5777 = vmatpush3.msra.mxu0 %v2956_v18 }
0x1180   :  { %5778 = vmatprep.subr.mxu0 %v6276_v14 }
0x1181   :  { %5779 = vmatpush3.msra.mxu0 %v2955_v6 }
0x1182   :  { %5780 = vmatprep.subr.mxu0 %v6276_v14 }
0x1189   :  { %v6093_v7 = vpop.eup %6092 }
0x118a   :  { %v2682_v8 = vadd.f32 1.0, %v6093_v7  ;;  %v2954_v7 = vld [vmem:[%s7283_s25] sm:$0xff]  ;;  %s5102_s25 = sshll.u32 %s6283_s17, 4  ;;  %s5103_s25 = int_to_ptr.vmem [resolvable:$true] %s5102_s25 }
0x118b   :  { %v6095_v9 = vpop.eup %6094  ;;  %5781 = vmatpush3.msra.mxu0 %v2954_v7 }
0x118c   :  { %v2681_v10 = vadd.f32 1.0, %v6095_v9  ;;  %6096 = vrcp.f32 %v2682_v8  ;;  %3073 = vmatprep.subr.mxu0 %v6276_v14 }
0x118e   :  { %6098 = vrcp.f32 %v2681_v10 }
0x1199   :  { %v6097_v12 = vpop.eup %6096 }
0x119a   :  { %v2694_v20 = vmul.f32 %v6097_v12, %v2660_v17  ;;  %v2910_v17 = vsub.s32 2, %v6618_v31 }
0x119b   :  { %v6099_v15 = vpop.eup %6098 }
0x119c   :  { %v2693_v16 = vmul.f32 %v6099_v15, %v2655_v61 }
0x119e   :  { %5771 = vmatprep.mubr.msk.f32.mxu1 %vm1411_vm7, %v2693_v16 }
0x119f   :  { %5772 = vmatmul.mubr.msk.f32.gmra.mxu1 %vm1411_vm7, %v2694_v20 }
0x1223   :  { %v5770_v23 = vpop.f32.mrf.mxu1 }
0x1224   :  { %v2796_v19 = vadd.f32 %v5770_v23, %v5284_v21 }
0x1225   :  { %v2790_v24 = vpop.f32.mrf.mxu1 }
0x1226   :  { %v2791_v25 = vadd.f32 %v5284_v21, %v2790_v24  ;;  %v2810_v26 = vadd.f32 %v2796_v19, %v6843_v28 }
0x1228   :  { %v2818_v27 = vsel %vm223_vm3, %v2810_v26, 0.0  ;;  %v2809_v29 = vadd.f32 %v2791_v25, %v6846_v30 }
0x1229   :  { %2819 = vadd.xlane.f32.xlu1 %v2818_v27  ;;  %v5289_v27 = vld [vmem:[%s7284_s29] ss:$0 sm:$0xff]  ;;  %s6168_s29 = scalar_lea.vmem %s5113_s13, 64 }
0x122a   :  { %v2815_v33 = vsel %vm223_vm3, %v2809_v29, 0.0  ;;  %p6169_p0 = scmp.ne.s32.totalorder %s5113_s13, %s6168_s29  ;;  %p6174_p2 = scmp.lt.s32.totalorder %s6168_s29, %s6168_s29 }
0x122b   :  { %2816 = vadd.xlane.f32.xlu0 %v2815_v33  ;;  %v5290_v33 = vld [vmem:[%s7285_s3] ss:$0 sm:$0xff] }
0x122c   :  { %p6175_p3 = por %p6174_p2, %p6173_p1 }
0x122e   :  { %p6176_p4 = pnand %p6175_p3, %p6169_p0 }
0x125f   :  { %v5773_v36 = vpop.f32.mrf.mxu1 }
0x1260   :  { %v2806_v37 = vadd.f32 %v5773_v36, %v5284_v21 }
0x1261   :  { %v2800_v38 = vpop.f32.mrf.mxu1 }
0x1262   :  { %v2801_v39 = vadd.f32 %v5284_v21, %v2800_v38  ;;  %v2812_v40 = vadd.f32 %v2806_v37, %v6856_v50 }
0x1264   :  { %v2824_v53 = vsel %vm223_vm3, %v2812_v40, 0.0  ;;  %v2811_v42 = vadd.f32 %v2801_v39, %v6853_v41 }
0x1265   :  { %2825 = vadd.xlane.f32.xlu1 %v2824_v53 }
0x1266   :  { %v2821_v28 = vsel %vm223_vm3, %v2811_v42, 0.0 }
0x1267   :  { %2822 = vadd.xlane.f32.xlu0 %v2821_v28 }
0x127d   :  { %2889 = vperm.xlu0 %6000, %v2887_v43  }
0x12b2   :  { %v2820_v35 = vpop.xlane.xlu1 %2819 }
0x12b3   :  { %v2828_v47 = vmul.f32 0.03125, %v2820_v35 }
0x12b4   :  { %v2817_v30 = vpop.xlane.xlu0 %2816 }
0x12b5   :  { %v2832_v48 = vsub.f32 %v2810_v26, %v2828_v47  ;;  %v2827_v49 = vmul.f32 0.03125, %v2817_v30 }
0x12b7   :  { %v2831_v54 = vsub.f32 %v2809_v29, %v2827_v49  ;;  %v2836_v57 = vmul.f32 %v2832_v48, %v2832_v48 }
0x12b9   :  { %v2842_v52 = vsel %vm223_vm3, %v2836_v57, 0.0  ;;  %v2835_v55 = vmul.f32 %v2831_v54, %v2831_v54 }
0x12bb   :  { %v2839_v63 = vsel %vm223_vm3, %v2835_v55, 0.0 }
0x12ee   :  { %v2826_v51 = vpop.xlane.xlu1 %2825 }
0x12ef   :  { %v2830_v56 = vmul.f32 0.03125, %v2826_v51 }
0x12f0   :  { %v2823_v44 = vpop.xlane.xlu0 %2822 }
0x12f1   :  { %v6910_v58 = vsub.f32 %v2812_v40, %v2830_v56  ;;  %v2829_v59 = vmul.f32 0.03125, %v2823_v44 }
0x12f3   :  { %v6913_v62 = vsub.f32 %v2811_v42, %v2829_v59  ;;  %v2838_v0 = vmul.f32 %v6910_v58, %v6910_v58 }
0x12f5   :  { %v2848_v1 = vsel %vm223_vm3, %v2838_v0, 0.0  ;;  %v2837_v2 = vmul.f32 %v6913_v62, %v6913_v62 }
0x12f7   :  { %v2845_v3 = vsel %vm223_vm3, %v2837_v2, 0.0 }
0x12f8   :  { %v2890_v11 = vpop.permute.xlu0 %2889 }
0x12f9   :  { %vm2891_vm8 = vcmp.eq.s32.totalorder %v6620_v32, %v2890_v11 }
0x12fa   :  { %v5291_v46 = vsel %vm2891_vm8, 1.0, %v6276_v14 }
0x12fb   :  { %v2897_v50 = vrot.slane %v5291_v46, %v2896_v45  ;;  %v2904_v41 = vrot.slane %v5291_v46, %v2903_v60  ;;  %v2911_v13 = vrot.slane %v5291_v46, %v2910_v17  ;;  %v2918_v61 = vrot.slane %v5291_v46, %v2917_v4 }
0x12fd   :  { %2899 = vbcast.lane.b32.xlu1 %v2897_v50, 256 }
0x1301   :  { %2906 = vbcast.lane.b32.xlu1 %v2904_v41, 256 }
0x1325   :  { %2843 = vadd.xlane.f32.xlu1 %v2842_v52 }
0x1329   :  { %2840 = vadd.xlane.f32.xlu1 %v2839_v63 }
0x132d   :  { %2849 = vadd.xlane.f32.xlu1 %v2848_v1 }
0x1331   :  { %2846 = vadd.xlane.f32.xlu1 %v2845_v3 }
0x1342   :  { %2913 = vbcast.lane.b32.xlu1 %v2911_v13, 256 }
0x1346   :  { %2920 = vbcast.lane.b32.xlu1 %v2918_v61, 256 }
0x136f   :  { %v2900_v31 = vpop.permute.xlu1 %2899 }
0x1373   :  { %v2907_v8 = vpop.permute.xlu1 %2906 }
0x13ae   :  { %v2844_v9 = vpop.xlane.xlu1 %2843 }
0x13af   :  { %v2852_v10 = vmul.f32 0.03125, %v2844_v9 }
0x13b1   :  { %v2856_v12 = vadd.f32 1e-05, %v2852_v10 }
0x13b2   :  { %v2841_v15 = vpop.xlane.xlu1 %2840 }
0x13b3   :  { %6100 = vrsqrt.f32 %v2856_v12  ;;  %v2851_v16 = vmul.f32 0.03125, %v2841_v15 }
0x13b5   :  { %v2855_v20 = vadd.f32 1e-05, %v2851_v16  ;;  %v6001_v16 = vld [vmem:[%s7286_s8 + $0x4] ss:$8 sps:$4 sm:$0xff]  }
0x13b6   :  { %v2850_v22 = vpop.xlane.xlu1 %2849 }
0x13b7   :  { %6102 = vrsqrt.f32 %v2855_v20  ;;  %v2854_v21 = vmul.f32 0.03125, %v2850_v22  ;;  %v3057_v22 = vld [vmem:[%s7287_s14 + $0x78] sm:$0xff] }
0x13b9   :  { %v2858_v23 = vadd.f32 1e-05, %v2854_v21 }
0x13ba   :  { %v2847_v19 = vpop.xlane.xlu1 %2846 }
0x13bb   :  { %6104 = vrsqrt.f32 %v2858_v23  ;;  %v2853_v24 = vmul.f32 0.03125, %v2847_v19  ;;  %v3056_v23 = vld [vmem:[%s7287_s14 + $0x70] sm:$0xff]  ;;  %v3055_v19 = vld [vmem:[%s7287_s14 + $0x68] sm:$0xff] }
0x13bd   :  { %v2857_v25 = vadd.f32 1e-05, %v2853_v24  ;;  %v3054_v24 = vld [vmem:[%s7287_s14 + $0x60] sm:$0xff] }
0x13be   :  { %v2914_v28 = vpop.permute.xlu1 %2913 }
0x13bf   :  { %6106 = vrsqrt.f32 %v2857_v25  ;;  %v3053_v25 = vld [vmem:[%s7287_s14 + $0x58] sm:$0xff] }
0x13c0   :  { %v6101_v26 = vpop.eup %6100 }
0x13c1   :  { %v2864_v29 = vmul.f32 %v6101_v26, %v2832_v48  ;;  %v3052_v26 = vld [vmem:[%s7287_s14 + $0x50] sm:$0xff] }
0x13c2   :  { %v2921_v48 = vpop.permute.xlu1 %2920 }
0x13c3   :  { %v2874_v36 = vmul.f32 %v5289_v27, %v2864_v29  ;;  %v3050_v29 = vld [vmem:[%s7287_s14 + $0x40] sm:$0xff] }
0x13c4   :  { %v6103_v37 = vpop.eup %6102 }
0x13c5   :  { %v2863_v38 = vmul.f32 %v6103_v37, %v2831_v54  ;;  %v2884_v39 = vadd.f32 %v5290_v33, %v2874_v36  ;;  %v3048_v36 = vld [vmem:[%s7287_s14 + $0x30] sm:$0xff]  ;;  %v3047_v37 = vld [vmem:[%s7287_s14 + $0x28] sm:$0xff] }
0x13c7   :  { %v2873_v40 = vmul.f32 %v5289_v27, %v2863_v38  ;;  %v2923_v53 = vmul.f32 %v2907_v8, %v2884_v39  ;;  %v3046_v38 = vld [vmem:[%s7287_s14 + $0x20] sm:$0xff]  ;;  %v3045_v39 = vld [vmem:[%s7287_s14 + $0x18] sm:$0xff] }
0x13c8   :  { %v6105_v42 = vpop.eup %6104 }
0x13c9   :  { %v2883_v43 = vadd.f32 %v5290_v33, %v2873_v40  ;;  %v2933_v30 = vsel %vm223_vm3, %v2923_v53, 0.0  ;;  %v2866_v44 = vmul.f32 %v6105_v42, %v6910_v58  ;;  %v3044_v40 = vld [vmem:[%s7287_s14 + $0x10] sm:$0xff]  ;;  %v3043_v53 = vld [vmem:[%s7287_s14 + $0x8] sm:$0xff]  ;;  %v3042_v42 = vld [vmem:[%s7287_s14] sm:$0xff] }
0x13ca   :  { %v2934_v11 = vrot.slane %v2933_v30, 4 }
0x13cb   :  { %v2922_v45 = vmul.f32 %v2900_v31, %v2883_v43  ;;  %v2876_v46 = vmul.f32 %v5289_v27, %v2866_v44  ;;  %v3064_v43 = vld [vmem:[%s7287_s14 + $0xb0] sm:$0xff]  ;;  %v3062_v44 = vld [vmem:[%s7287_s14 + $0xa0] sm:$0xff] }
0x13cc   :  { %v6107_v50 = vpop.eup %6106  ;;  %v2935_v51 = vadd.f32 %v2934_v11, %v2933_v30  ;;  %v3063_v30 = vld [vmem:[%s7287_s14 + $0xa8] sm:$0xff]  ;;  %v3060_v11 = vld [vmem:[%s7287_s14 + $0x90] sm:$0xff] }
0x13cd   :  { %v2865_v60 = vmul.f32 %v6107_v50, %v6913_v62  ;;  %v2926_v41 = vsel %vm223_vm3, %v2922_v45, 0.0  ;;  %v2886_v35 = vadd.f32 %v5290_v33, %v2876_v46  ;;  %v3061_v45 = vld [vmem:[%s7287_s14 + $0x98] sm:$0xff]  ;;  %v3059_v46 = vld [vmem:[%s7287_s14 + $0x88] sm:$0xff]  ;;  %v3058_v50 = vld [vmem:[%s7287_s14 + $0x80] sm:$0xff] }
0x13ce   :  { %v2927_v47 = vrot.slane %v2926_v41, 4  ;;  %v2936_v55 = vrot.slane %v2935_v51, 2 }
0x13cf   :  { %v2875_v49 = vmul.f32 %v5289_v27, %v2865_v60  ;;  %v2925_v54 = vmul.f32 %v2921_v48, %v2886_v35  ;;  %v3051_v27 = vld [vmem:[%s7287_s14 + $0x48] sm:$0xff] }
0x13d0   :  { %v2928_v56 = vadd.f32 %v2927_v47, %v2926_v41  ;;  %v2937_v17 = vadd.f32 %v2936_v55, %v2935_v51  ;;  %v6003_v60 = vld [vmem:[%s7286_s8] ss:$8 sps:$4 sm:$0xff]  }
0x13d1   :  { %v2885_v57 = vadd.f32 %v5290_v33, %v2875_v49  ;;  %v2947_v59 = vsel %vm223_vm3, %v2925_v54, 0.0  ;;  %v3049_v33 = vld [vmem:[%s7287_s14 + $0x38] sm:$0xff]  ;;  %v3146_v41 = vld [vmem:[%s7288_s19] sm:$0x1] }
0x13d2   :  { %v2929_v52 = vrot.slane %v2928_v56, 2  ;;  %v2948_v58 = vrot.slane %v2947_v59, 4  ;;  %v2938_v18 = vrot.slane %v2937_v17, 1  ;;  %3147 = vst.msk [vmem:[#allocation3] sm:$0x1] %vm186_vm0, %v3146_v41  ;;  %v3157_v54 = vld [vmem:[%s7289_s24] sm:$0xff] }
0x13d3   :  { %v2924_v63 = vmul.f32 %v2914_v28, %v2885_v57  ;;  %v3065_v28 = vld [vmem:[%s7287_s14 + $0xb8] sm:$0xff]  ;;  %3148 = vst.msk [vmem:[#allocation3 + $0x8] sm:$0x1] %vm186_vm0, %v3146_v41 }
0x13d4   :  { %v2949_v0 = vadd.f32 %v2948_v58, %v2947_v59  ;;  %v2930_v1 = vadd.f32 %v2929_v52, %v2928_v56  ;;  %v2939_v9 = vadd.f32 %v2938_v18, %v2937_v17 }
0x13d5   :  { %v2940_v62 = vsel %vm223_vm3, %v2924_v63, 0.0 }
0x13d6   :  { %v2941_v2 = vrot.slane %v2940_v62, 4  ;;  %v2950_v3 = vrot.slane %v2949_v0, 2  ;;  %v2931_v61 = vrot.slane %v2930_v1, 1 }
0x13d8   :  { %v2942_v13 = vadd.f32 %v2941_v2, %v2940_v62  ;;  %v2951_v4 = vadd.f32 %v2950_v3, %v2949_v0  ;;  %v2932_v31 = vadd.f32 %v2931_v61, %v2930_v1 }
0x13da   :  { %v2943_v5 = vrot.slane %v2942_v13, 2  ;;  %v2952_v7 = vrot.slane %v2951_v4, 1  ;;  %v2963_v15 = vsel %vm2962_vm9, %v2939_v9, %v2932_v31 }
0x13dc   :  { %v2944_v6 = vadd.f32 %v2943_v5, %v2942_v13  ;;  %v2953_v12 = vadd.f32 %v2952_v7, %v2951_v4 }
0x13de   :  { %v2945_v8 = vrot.slane %v2944_v6, 1 }
0x13e0   :  { %v2946_v10 = vadd.f32 %v2945_v8, %v2944_v6 }
0x13e2   :  { %v2965_v20 = vsel %vm2964_vm10, %v2946_v10, %v2963_v15  ;;  %v5294_v10 = vld [vmem:[%s7290_s30] ss:$0 sm:$0xff] }
0x13e3   :  { %v2967_v21 = vsel %vm2966_vm11, %v2953_v12, %v2965_v20  ;;  %v5295_v15 = vld [vmem:[%s7291_s6] ss:$0 sm:$0xff] }
0x13e4   :  { %5783 = vmatmul.mubr.msk.f32.vlgmr.msra.gmra.mxu0 %vm223_vm3, %v2967_v21 }
0x13e5   :  { %3074 = vmatpush1.msra.mxu0 %v3057_v22  ;;  %5293 = vmatprep.mubr.msk.f32.mxu0 %vm1411_vm7, %v6001_v16 }
0x13e6   :  { %3075 = vmatprep.subr.mxu0 %v6276_v14 }
0x13e7   :  { %3076 = vmatpush1.msra.mxu0 %v3056_v23 }
0x13e8   :  { %3077 = vmatprep.subr.mxu0 %v6276_v14 }
0x13e9   :  { %3078 = vmatpush1.msra.mxu0 %v3055_v19 }
0x13ea   :  { %3079 = vmatprep.subr.mxu0 %v6276_v14 }
0x13eb   :  { %3080 = vmatpush1.msra.mxu0 %v3054_v24 }
0x13ec   :  { %3081 = vmatprep.subr.mxu0 %v6276_v14 }
0x13ed   :  { %3082 = vmatpush1.msra.mxu0 %v3053_v25 }
0x13ee   :  { %3083 = vmatprep.subr.mxu0 %v6276_v14 }
0x13ef   :  { %3084 = vmatpush1.msra.mxu0 %v3052_v26 }
0x13f0   :  { %3085 = vmatprep.subr.mxu0 %v6276_v14 }
0x13f1   :  { %3086 = vmatpush1.msra.mxu0 %v3051_v27 }
0x13f2   :  { %3087 = vmatprep.subr.mxu0 %v6276_v14 }
0x13f3   :  { %3088 = vmatpush1.msra.mxu0 %v3050_v29 }
0x13f4   :  { %3089 = vmatprep.subr.mxu0 %v6276_v14 }
0x13f5   :  { %3090 = vmatpush1.msra.mxu0 %v3049_v33 }
0x13f6   :  { %3091 = vmatprep.subr.mxu0 %v6276_v14 }
0x13f7   :  { %3092 = vmatpush1.msra.mxu0 %v3048_v36 }
0x13f8   :  { %3093 = vmatprep.subr.mxu0 %v6276_v14 }
0x13f9   :  { %3094 = vmatpush1.msra.mxu0 %v3047_v37 }
0x13fa   :  { %3095 = vmatprep.subr.mxu0 %v6276_v14 }
0x13fb   :  { %3096 = vmatpush1.msra.mxu0 %v3046_v38 }
0x13fc   :  { %3097 = vmatprep.subr.mxu0 %v6276_v14 }
0x13fd   :  { %3098 = vmatpush1.msra.mxu0 %v3045_v39 }
0x13fe   :  { %3099 = vmatprep.subr.mxu0 %v6276_v14 }
0x13ff   :  { %3100 = vmatpush1.msra.mxu0 %v3044_v40 }
0x1400   :  { %3101 = vmatprep.subr.mxu0 %v6276_v14 }
0x1401   :  { %3102 = vmatpush1.msra.mxu0 %v3043_v53 }
0x1402   :  { %3103 = vmatprep.subr.mxu0 %v6276_v14 }
0x1403   :  { %3104 = vmatpush1.msra.mxu0 %v3042_v42  ;;  %v3253_v42 = vld [vmem:[%s7292_s20 + $0x18] sm:$0xff] }
0x1404   :  { %3121 = vmatprep.subr.mxu0 %v6276_v14  ;;  %5785 = vmatprep.subr.mxu1 %v3253_v42 }
0x1405   :  { %3122 = vmatpush2.msra.mxu0 %v3065_v28  ;;  %v3252_v28 = vld [vmem:[%s7292_s20 + $0x10] sm:$0xff]  ;;  %5786 = vmatpush3.msra.mxu1 %v3253_v42  ;;  %v3674_v42 = vld [vmem:[%s7296_s7] sm:$0xff] }
0x1406   :  { %3123 = vmatprep.subr.mxu0 %v6276_v14  ;;  %5787 = vmatprep.subr.mxu1 %v3252_v28 }
0x1407   :  { %3124 = vmatpush2.msra.mxu0 %v3064_v43  ;;  %v3251_v43 = vld [vmem:[%s7292_s20 + $0x8] sm:$0xff]  ;;  %5788 = vmatpush3.msra.mxu1 %v3252_v28 }
0x1408   :  { %3125 = vmatprep.subr.mxu0 %v6276_v14  ;;  %5789 = vmatprep.subr.mxu1 %v3251_v43 }
0x1409   :  { %3126 = vmatpush2.msra.mxu0 %v3063_v30  ;;  %5790 = vmatpush3.msra.mxu1 %v3251_v43  ;;  %v3250_v30 = vld [vmem:[%s7292_s20] sm:$0xff] }
0x140a   :  { %3127 = vmatprep.subr.mxu0 %v6276_v14  ;;  %5791 = vmatprep.subr.mxu1 %v3250_v30 }
0x140b   :  { %3128 = vmatpush2.msra.mxu0 %v3062_v44  ;;  %5792 = vmatpush3.msra.mxu1 %v3250_v30 }
0x140c   :  { %3129 = vmatprep.subr.mxu0 %v6276_v14  ;;  %5796 = vmatprep.subr.mxu1 %v6276_v14 }
0x140d   :  { %3130 = vmatpush2.msra.mxu0 %v3061_v45 }
0x140e   :  { %3131 = vmatprep.subr.mxu0 %v6276_v14 }
0x140f   :  { %3132 = vmatpush2.msra.mxu0 %v3060_v11 }
0x1410   :  { %3133 = vmatprep.subr.mxu0 %v6276_v14 }
0x1411   :  { %3134 = vmatpush2.msra.mxu0 %v3059_v46 }
0x1412   :  { %3135 = vmatprep.subr.mxu0 %v6276_v14 }
0x1413   :  { %3136 = vmatpush2.msra.mxu0 %v3058_v50 }
0x1414   :  { %3138 = vmatmul.mubr.f32.vlgmr.msra.gmra.mxu0 %v6003_v60 }
0x14a4   :  { %v6997_v35 = vpop.f32.mrf.mxu0 }
0x14a6   :  { %v5784_v47 = vpop.f32.mrf.mxu0 }
0x14a7   :  { %v5296_v47 = vld [vmem:[%s7293_s28] ss:$0 sm:$0xff] }
0x14d4   :  { %v3139_v48 = vpop.f32.mrf.mxu0 }
0x14d5   :  { %v3144_v49 = vcombine.high %v3139_v48, %v3139_v48  ;;  %3150 = vst.msk [vmem:[#allocation3 + $0x1] sm:$0xf] %vm3149_vm13, %v3139_v48 }
0x14d6   :  { %v3141_v51 = vpop.f32.mrf.mxu0 }
0x14d7   :  { %3151 = vst.msk [vmem:[#allocation3 + $0x9] sm:$0xf] %vm3149_vm13, %v3144_v49  ;;  %v5297_v49 = vld [vmem:[%s7294_s1] ss:$0 sm:$0xff] }
0x14dc   :  { %v3155_v56 = vld [vmem:[#allocation3] sm:$0xff] }
0x14dd   :  { %v3158_v57 = vadd.f32 %v3157_v54, %v3155_v56 }
0x14de   :  { %v3156_v59 = vld [vmem:[#allocation3 + $0x8] sm:$0xff] }
0x14df   :  { %v3162_v52 = vsel %vm223_vm3, %v3158_v57, 0.0  ;;  %v3159_v58 = vadd.f32 %v3157_v54, %v3156_v59 }
0x14e0   :  { %3163 = vadd.xlane.f32.xlu0 %v3162_v52 }
0x14e1   :  { %v3165_v55 = vsel %vm223_vm3, %v3159_v58, 0.0 }
0x14e2   :  { %3166 = vadd.xlane.f32.xlu1 %v3165_v55 }
0x1569   :  { %v3164_v63 = vpop.xlane.xlu0 %3163 }
0x156a   :  { %v3168_v0 = vmul.f32 0.03125, %v3164_v63 }
0x156b   :  { %v3167_v1 = vpop.xlane.xlu1 %3166 }
0x156c   :  { %v3170_v62 = vsub.f32 %v3158_v57, %v3168_v0  ;;  %v3169_v2 = vmul.f32 0.03125, %v3167_v1 }
0x156e   :  { %v3171_v3 = vsub.f32 %v3159_v58, %v3169_v2  ;;  %v3172_v17 = vmul.f32 %v3170_v62, %v3170_v62  ;;  %v5298_v58 = vld [vmem:[%s7295_s2] ss:$0 sm:$0xff] }
0x1570   :  { %v3174_v13 = vsel %vm223_vm3, %v3172_v17, 0.0  ;;  %v3173_v4 = vmul.f32 %v3171_v3, %v3171_v3  ;;  %v7046_v17 = vsel %vm3204_vm14, 0.0, %v6279_v34 }
0x1571   :  { %3175 = vadd.xlane.f32.xlu0 %v3174_v13 }
0x1572   :  { %v3177_v61 = vsel %vm223_vm3, %v3173_v4, 0.0 }
0x1575   :  { %3178 = vadd.xlane.f32.xlu0 %v3177_v61 }
0x15fa   :  { %v3176_v5 = vpop.xlane.xlu0 %3175 }
0x15fb   :  { %v3180_v18 = vmul.f32 0.03125, %v3176_v5 }
0x15fd   :  { %v3182_v6 = vadd.f32 1e-05, %v3180_v18 }
0x15fe   :  { %v3179_v7 = vpop.xlane.xlu0 %3178 }
0x15ff   :  { %6108 = vrsqrt.f32 %v3182_v6  ;;  %v3181_v31 = vmul.f32 0.03125, %v3179_v7 }
0x1601   :  { %v3183_v8 = vadd.f32 1e-05, %v3181_v31 }
0x1603   :  { %6110 = vrsqrt.f32 %v3183_v8 }
0x160c   :  { %v6109_v9 = vpop.eup %6108 }
0x160d   :  { %v3186_v12 = vmul.f32 %v6109_v9, %v3170_v62 }
0x160f   :  { %v3194_v16 = vmul.f32 %v5294_v10, %v3186_v12 }
0x1610   :  { %v6111_v20 = vpop.eup %6110 }
0x1611   :  { %v7008_v22 = vadd.f32 %v5295_v15, %v3194_v16  ;;  %v3187_v21 = vmul.f32 %v6111_v20, %v3171_v3 }
0x1613   :  { %v3208_v23 = vsel %vm223_vm3, %v7008_v22, 0.0  ;;  %v3195_v19 = vmul.f32 %v5294_v10, %v3187_v21 }
0x1614   :  { %3209 = vadd.xlane.f32.xlu1 %v3208_v23 }
0x1615   :  { %v7012_v24 = vadd.f32 %v5295_v15, %v3195_v19 }
0x1617   :  { %v3211_v25 = vsel %vm223_vm3, %v7012_v24, 0.0 }
0x1618   :  { %3212 = vadd.xlane.f32.xlu0 %v3211_v25 }
0x169d   :  { %v3210_v26 = vpop.xlane.xlu1 %3209 }
0x169e   :  { %v3214_v27 = vmul.f32 0.03125, %v3210_v26 }
0x16a0   :  { %v3216_v29 = vsub.f32 %v7008_v22, %v3214_v27 }
0x16a1   :  { %v3213_v33 = vpop.xlane.xlu0 %3212 }
0x16a2   :  { %v3215_v36 = vmul.f32 0.03125, %v3213_v33  ;;  %v3218_v37 = vmul.f32 %v3216_v29, %v3216_v29 }
0x16a4   :  { %v3217_v38 = vsub.f32 %v7012_v24, %v3215_v36  ;;  %v3220_v39 = vsel %vm223_vm3, %v3218_v37, 0.0  ;;  %v3677_v36 = vld [vmem:[%s7296_s7 + $0x18] sm:$0xff] }
0x16a5   :  { %3221 = vadd.xlane.f32.xlu1 %v3220_v39 }
0x16a6   :  { %v3219_v40 = vmul.f32 %v3217_v38, %v3217_v38 }
0x16a8   :  { %v3223_v53 = vsel %vm223_vm3, %v3219_v40, 0.0  ;;  %v3676_v40 = vld [vmem:[%s7296_s7 + $0x10] sm:$0xff] }
0x16a9   :  { %3224 = vadd.xlane.f32.xlu0 %v3223_v53  ;;  %v3675_v53 = vld [vmem:[%s7296_s7 + $0x8] sm:$0xff] }
0x172e   :  { %v3222_v44 = vpop.xlane.xlu1 %3221 }
0x172f   :  { %v3226_v45 = vmul.f32 0.03125, %v3222_v44 }
0x1731   :  { %v3228_v11 = vadd.f32 1e-05, %v3226_v45  ;;  %v5307_v45 = vld [vmem:[%s7297_s10] ss:$0 sm:$0xff] }
0x1732   :  { %v3225_v46 = vpop.xlane.xlu0 %3224 }
0x1733   :  { %6112 = vrsqrt.f32 %v3228_v11  ;;  %v3227_v50 = vmul.f32 0.03125, %v3225_v46 }
0x1735   :  { %v3229_v60 = vadd.f32 1e-05, %v3227_v50 }
0x1737   :  { %6114 = vrsqrt.f32 %v3229_v60 }
0x1740   :  { %v6113_v41 = vpop.eup %6112 }
0x1741   :  { %v3232_v48 = vmul.f32 %v6113_v41, %v3216_v29 }
0x1743   :  { %v3240_v51 = vmul.f32 %v5296_v47, %v3232_v48 }
0x1744   :  { %v6115_v54 = vpop.eup %6114 }
0x1745   :  { %v3233_v56 = vmul.f32 %v6115_v54, %v3217_v38  ;;  %v3248_v57 = vadd.f32 %v5297_v49, %v3240_v51 }
0x1747   :  { %v3241_v59 = vmul.f32 %v5296_v47, %v3233_v56  ;;  %5793 = vmatprep.mubr.msk.f32.mxu1 %vm223_vm3, %v3248_v57 }
0x1749   :  { %v3249_v52 = vadd.f32 %v5297_v49, %v3241_v59 }
0x174b   :  { %5794 = vmatmul.mubr.msk.f32.vlgmr.msra.gmra.mxu1 %vm223_vm3, %v3249_v52 }
0x174c   :  { %5798 = vmatprep.mubr.msk.f32.mxu1 %vm6277_vm4, %v6276_v14 }
0x180b   :  { %v5795_v55 = vpop.f32.mrf.mxu1 }
0x180c   :  { %v3339_v63 = vadd.f32 %v5795_v55, %v5298_v58 }
0x180d   :  { %v3333_v0 = vpop.f32.mrf.mxu1 }
0x180e   :  { %v3334_v1 = vadd.f32 %v5298_v58, %v3333_v0  ;;  %3420 = vrot.lane.b32.xlu0 %v3339_v63, %s6278_s0  ;;  %v3814_v0 = vld [vmem:[%s7298_s11 + $0x10] sm:$0xff] }
0x1810   :  { %3343 = vrot.lane.b32.xlu1 %v3334_v1, %s6278_s0 }
0x1880   :  { %v3421_v2 = vpop.permute.xlu0 %3420 }
0x1882   :  { %v3344_v62 = vpop.permute.xlu1 %3343 }
0x1883   :  { %5797 = vmatpush3.xpose.msk.msra.mxu1 %vm223_vm3, %v3344_v62  ;;  %v3812_v62 = vld [vmem:[%s7298_s11] sm:$0xff] }
0x1884   :  { %5801 = vmatprep.subr.mxu1 %v6276_v14 }
0x1886   :  { %5799 = vmatmul.mubr.msk.f32.vlgmr.msra.gmra.mxu1 %vm223_vm3, %v3334_v1 }
0x1887   :  { %5802 = vmatpush3.xpose.msk.msra.mxu1 %vm223_vm3, %v3421_v2  ;;  %5803 = vmatprep.mubr.msk.f32.mxu1 %vm6277_vm4, %v6276_v14 }
0x1888   :  { %5806 = vmatprep.subr.mxu1 %v6276_v14 }
0x188a   :  { %5804 = vmatmul.mubr.msk.f32.vlgmr.msra.gmra.mxu1 %vm223_vm3, %v3339_v63 }
0x188b   :  { %5808 = vmatprep.mubr.msk.f32.mxu1 %vm6277_vm4, %v6276_v14 }
0x1946   :  { %v3415_v3 = vpop.f32.mrf.mxu1 }
0x1947   :  { %v3496_v13 = vmul.f32 0.17677669, %v3415_v3 }
0x1948   :  { %v5800_v4 = vpop.f32.mrf.mxu1 }
0x1949   :  { %v3498_v61 = vadd.f32 %v3496_v13, %v7046_v17 }
0x194a   :  { %v3492_v5 = vpop.f32.mrf.mxu1 }
0x194b   :  { %v3497_v18 = vmul.f32 0.17677669, %v3492_v5  ;;  %v3500_v6 = vsel %vm721_vm6, %v3498_v61, -inf }
0x194c   :  { %3501 = vmax.xlane.f32.xlu1 %v3500_v6  ;;  %v5805_v7 = vpop.f32.mrf.mxu1  ;;  %v5310_v6 = vld [vmem:[%s7299_s15] ss:$0 sm:$0xff] }
0x194d   :  { %v3499_v31 = vadd.f32 %v3497_v18, %v7046_v17 }
0x194f   :  { %v3503_v8 = vsel %vm721_vm6, %v3499_v31, -inf }
0x1950   :  { %3504 = vmax.xlane.f32.xlu0 %v3503_v8 }
0x19d5   :  { %v3502_v9 = vpop.xlane.xlu1 %3501 }
0x19d6   :  { %v3506_v10 = vsub.f32 %v3498_v61, %v3502_v9 }
0x19d8   :  { %v3508_v12 = vmul.f32 1.442695, %v3506_v10  ;;  %v5311_v10 = vld [vmem:[%s7300_s16] ss:$0 sm:$0xff] }
0x19d9   :  { %v3505_v34 = vpop.xlane.xlu0 %3504 }
0x19da   :  { %6116 = vpow2.f32 %v3508_v12  ;;  %v3507_v15 = vsub.f32 %v3499_v31, %v3505_v34 }
0x19dc   :  { %v3510_v16 = vmul.f32 1.442695, %v3507_v15 }
0x19de   :  { %6118 = vpow2.f32 %v3510_v16  ;;  %v3927_v16 = vld [vmem:[%s7301_s18 + $0x38] sm:$0xff] }
0x19e7   :  { %v6117_v20 = vpop.eup %6116 }
0x19e8   :  { %v3512_v21 = vsel %vm721_vm6, %v6117_v20, 0.0 }
0x19e9   :  { %3513 = vadd.xlane.f32.xlu1 %v3512_v21  ;;  %v3925_v21 = vld [vmem:[%s7301_s18 + $0x28] sm:$0xff] }
0x19eb   :  { %v6119_v23 = vpop.eup %6118 }
0x19ec   :  { %v3515_v19 = vsel %vm721_vm6, %v6119_v23, 0.0 }
0x19ed   :  { %3516 = vadd.xlane.f32.xlu0 %v3515_v19  ;;  %v3923_v19 = vld [vmem:[%s7301_s18 + $0x18] sm:$0xff] }
0x19fa   :  { %3522 = vrot.lane.b32.xlu1 %v3334_v1, %s6280_s5  ;;  %v3813_v1 = vld [vmem:[%s7298_s11 + $0x8] sm:$0xff] }
0x1a03   :  { %3598 = vrot.lane.b32.xlu0 %v3339_v63, %s6280_s5  ;;  %v3815_v63 = vld [vmem:[%s7298_s11 + $0x18] sm:$0xff] }
0x1a72   :  { %v3514_v25 = vpop.xlane.xlu1 %3513 }
0x1a73   :  { %6120 = vrcp.f32 %v3514_v25  ;;  %v3922_v25 = vld [vmem:[%s7301_s18 + $0x10] sm:$0xff] }
0x1a76   :  { %v3523_v26 = vpop.permute.xlu1 %3522  ;;  %v3517_v27 = vpop.xlane.xlu0 %3516 }
0x1a77   :  { %6122 = vrcp.f32 %v3517_v27  ;;  %5807 = vmatpush3.msra.mxu1 %v3523_v26  ;;  %v3921_v26 = vld [vmem:[%s7301_s18 + $0x8] sm:$0xff]  ;;  %v3920_v27 = vld [vmem:[%s7301_s18] sm:$0xff] }
0x1a78   :  { %5811 = vmatprep.subr.mxu1 %v6276_v14 }
0x1a7a   :  { %v3599_v37 = vpop.permute.xlu0 %3598 }
0x1a80   :  { %v6121_v29 = vpop.eup %6120 }
0x1a81   :  { %v3520_v33 = vmul.f32 %v6121_v29, %v6117_v20  ;;  %v3926_v20 = vld [vmem:[%s7301_s18 + $0x30] sm:$0xff]  ;;  %v5312_v29 = vld [vmem:[%s7302_s22] ss:$0 sm:$0xff] }
0x1a83   :  { %5809 = vmatmul.mubr.msk.f32.vlgmr.msra.gmra.mxu1 %vm721_vm6, %v3520_v33 }
0x1a84   :  { %v6123_v38 = vpop.eup %6122  ;;  %5812 = vmatpush3.msra.mxu1 %v3599_v37  ;;  %5813 = vmatprep.mubr.msk.f32.mxu1 %vm6277_vm4, %v6276_v14 }
0x1a85   :  { %v3521_v39 = vmul.f32 %v6123_v38, %v6119_v23  ;;  %5816 = vmatprep.subr.mxu1 %v3677_v36  ;;  %v3924_v23 = vld [vmem:[%s7301_s18 + $0x20] sm:$0xff] }
0x1a87   :  { %5814 = vmatmul.mubr.msk.f32.vlgmr.msra.gmra.mxu1 %vm721_vm6, %v3521_v39 }
0x1a88   :  { %5817 = vmatpush3.msra.mxu1 %v3677_v36 }
0x1a89   :  { %5818 = vmatprep.subr.mxu1 %v3676_v40 }
0x1a8a   :  { %5819 = vmatpush3.msra.mxu1 %v3676_v40 }
0x1a8b   :  { %5820 = vmatprep.subr.mxu1 %v3675_v53 }
0x1a8c   :  { %5821 = vmatpush3.msra.mxu1 %v3675_v53 }
0x1a8d   :  { %5822 = vmatprep.subr.mxu1 %v3674_v42 }
0x1a8e   :  { %5823 = vmatpush3.msra.mxu1 %v3674_v42 }
0x1a8f   :  { %5827 = vmatprep.subr.mxu1 %v3815_v63 }
0x1b43   :  { %v3594_v28 = vpop.f32.mrf.mxu1 }
0x1b44   :  { %5824 = vmatprep.mubr.msk.f32.mxu1 %vm223_vm3, %v3594_v28 }
0x1b45   :  { %v5810_v43 = vpop.f32.mrf.mxu1 }
0x1b47   :  { %v3670_v30 = vpop.f32.mrf.mxu1 }
0x1b48   :  { %5825 = vmatmul.mubr.msk.f32.vlgmr.msra.gmra.mxu1 %vm223_vm3, %v3670_v30 }
0x1b49   :  { %v5815_v44 = vpop.f32.mrf.mxu1  ;;  %5828 = vmatpush3.msra.mxu1 %v3815_v63 }
0x1b4a   :  { %5829 = vmatprep.subr.mxu1 %v3814_v0 }
0x1b4b   :  { %5830 = vmatpush3.msra.mxu1 %v3814_v0 }
0x1b4c   :  { %5831 = vmatprep.subr.mxu1 %v3813_v1 }
0x1b4d   :  { %5832 = vmatpush3.msra.mxu1 %v3813_v1 }
0x1b4e   :  { %5833 = vmatprep.subr.mxu1 %v3812_v62 }
0x1b4f   :  { %5834 = vmatpush3.msra.mxu1 %v3812_v62 }
0x1b50   :  { %5838 = vmatprep.subr.mxu1 %v3927_v16 }
0x1c08   :  { %v5826_v11 = vpop.f32.mrf.mxu1 }
0x1c09   :  { %v3763_v46 = vadd.f32 %v5826_v11, %v5307_v45 }
0x1c0a   :  { %v3757_v50 = vpop.f32.mrf.mxu1 }
0x1c0b   :  { %v7069_v60 = vadd.f32 %v3763_v46, %v7012_v24  ;;  %v3758_v41 = vadd.f32 %v5307_v45, %v3757_v50 }
0x1c0d   :  { %v7072_v47 = vadd.f32 %v3758_v41, %v7008_v22  ;;  %v3773_v48 = vsel %vm223_vm3, %v7069_v60, 0.0  ;;  %v5317_v41 = vld [vmem:[%s7303_s23] ss:$0 sm:$0xff] }
0x1c0e   :  { %3774 = vadd.xlane.f32.xlu0 %v3773_v48 }
0x1c0f   :  { %v3770_v49 = vsel %vm223_vm3, %v7072_v47, 0.0 }
0x1c10   :  { %3771 = vadd.xlane.f32.xlu1 %v3770_v49 }
0x1c97   :  { %v3775_v51 = vpop.xlane.xlu0 %3774 }
0x1c98   :  { %v3777_v54 = vmul.f32 0.03125, %v3775_v51 }
0x1c99   :  { %v3772_v56 = vpop.xlane.xlu1 %3771 }
0x1c9a   :  { %v3779_v24 = vsub.f32 %v7069_v60, %v3777_v54  ;;  %v3776_v57 = vmul.f32 0.03125, %v3772_v56 }
0x1c9c   :  { %v3778_v22 = vsub.f32 %v7072_v47, %v3776_v57  ;;  %v3781_v59 = vmul.f32 %v3779_v24, %v3779_v24 }
0x1c9e   :  { %v3785_v52 = vsel %vm223_vm3, %v3781_v59, 0.0  ;;  %v3780_v58 = vmul.f32 %v3778_v22, %v3778_v22 }
0x1c9f   :  { %3786 = vadd.xlane.f32.xlu0 %v3785_v52 }
0x1ca0   :  { %v3782_v55 = vsel %vm223_vm3, %v3780_v58, 0.0 }
0x1ca1   :  { %3783 = vadd.xlane.f32.xlu1 %v3782_v55 }
0x1d28   :  { %v3787_v2 = vpop.xlane.xlu0 %3786 }
0x1d29   :  { %v3789_v3 = vmul.f32 0.03125, %v3787_v2  ;;  %v5327_v2 = vld [vmem:[%s7292_s20 + $0x38] sm:$0xff] }
0x1d2a   :  { %v3784_v13 = vpop.xlane.xlu1 %3783  ;;  %5857 = vmatprep.subr.mxu0 %v5327_v2 }
0x1d2b   :  { %v3791_v4 = vadd.f32 1e-05, %v3789_v3  ;;  %v3788_v61 = vmul.f32 0.03125, %v3784_v13  ;;  %v5326_v3 = vld [vmem:[%s7292_s20 + $0x30] sm:$0xff]  ;;  %5858 = vmatpush3.msra.mxu0 %v5327_v2  ;;  %v5325_v13 = vld [vmem:[%s7292_s20 + $0x28] sm:$0xff] }
0x1d2c   :  { %5859 = vmatprep.subr.mxu0 %v5326_v3 }
0x1d2d   :  { %6124 = vrsqrt.f32 %v3791_v4  ;;  %v3790_v5 = vadd.f32 1e-05, %v3788_v61  ;;  %5860 = vmatpush3.msra.mxu0 %v5326_v3  ;;  %v5324_v4 = vld [vmem:[%s7292_s20 + $0x20] sm:$0xff] }
0x1d2e   :  { %5861 = vmatprep.subr.mxu0 %v5325_v13 }
0x1d2f   :  { %6126 = vrsqrt.f32 %v3790_v5  ;;  %5862 = vmatpush3.msra.mxu0 %v5325_v13 }
0x1d30   :  { %5863 = vmatprep.subr.mxu0 %v5324_v4 }
0x1d31   :  { %5864 = vmatpush3.msra.mxu0 %v5324_v4 }
0x1d32   :  { %5868 = vmatprep.subr.mxu0 %v6276_v14 }
0x1d3a   :  { %v6125_v18 = vpop.eup %6124 }
0x1d3b   :  { %v3795_v7 = vmul.f32 %v6125_v18, %v3779_v24 }
0x1d3c   :  { %v6127_v31 = vpop.eup %6126 }
0x1d3d   :  { %v3794_v8 = vmul.f32 %v6127_v31, %v3778_v22  ;;  %v3803_v9 = vmul.f32 %v5310_v6, %v3795_v7 }
0x1d3f   :  { %v3802_v12 = vmul.f32 %v5310_v6, %v3794_v8  ;;  %v3811_v15 = vadd.f32 %v5311_v10, %v3803_v9  ;;  %v5322_v9 = vld [vmem:[%s7293_s28 + $0x1] ss:$0 sm:$0xff] }
0x1d41   :  { %v3810_v34 = vadd.f32 %v5311_v10, %v3802_v12 }
0x1d43   :  { %5835 = vmatprep.mubr.msk.f32.mxu1 %vm223_vm3, %v3810_v34 }
0x1d44   :  { %5836 = vmatmul.mubr.msk.f32.vlgmr.msra.gmra.mxu1 %vm223_vm3, %v3811_v15 }
0x1d45   :  { %5839 = vmatpush3.msra.mxu1 %v3927_v16  ;;  %v5323_v16 = vld [vmem:[%s7294_s1 + $0x1] ss:$0 sm:$0xff] }
0x1d46   :  { %5840 = vmatprep.subr.mxu1 %v3926_v20 }
0x1d47   :  { %5841 = vmatpush3.msra.mxu1 %v3926_v20 }
0x1d48   :  { %5842 = vmatprep.subr.mxu1 %v3925_v21 }
0x1d49   :  { %5843 = vmatpush3.msra.mxu1 %v3925_v21 }
0x1d4a   :  { %5844 = vmatprep.subr.mxu1 %v3924_v23 }
0x1d4b   :  { %5845 = vmatpush3.msra.mxu1 %v3924_v23 }
0x1d4c   :  { %5846 = vmatprep.subr.mxu1 %v3923_v19 }
0x1d4d   :  { %5847 = vmatpush3.msra.mxu1 %v3923_v19  ;;  %v5329_v19 = vld [vmem:[%s7295_s2 + $0x1] ss:$0 sm:$0xff] }
0x1d4e   :  { %5848 = vmatprep.subr.mxu1 %v3922_v25 }
0x1d4f   :  { %5849 = vmatpush3.msra.mxu1 %v3922_v25 }
0x1d50   :  { %5850 = vmatprep.subr.mxu1 %v3921_v26 }
0x1d51   :  { %5851 = vmatpush3.msra.mxu1 %v3921_v26 }
0x1d52   :  { %5852 = vmatprep.subr.mxu1 %v3920_v27 }
0x1d53   :  { %5853 = vmatpush3.msra.mxu1 %v3920_v27 }
0x1d54   :  { %5878 = vmatprep.subr.mxu1 %v6276_v14 }
0x1e04   :  { %v5837_v33 = vpop.f32.mrf.mxu1 }
0x1e05   :  { %v3901_v36 = vadd.f32 %v5837_v33, %v5312_v29 }
0x1e06   :  { %v3895_v37 = vpop.f32.mrf.mxu1 }
0x1e07   :  { %v5316_v38 = vmul.f32 -1.702, %v3901_v36  ;;  %v3896_v39 = vadd.f32 %v5312_v29, %v3895_v37 }
0x1e09   :  { %v3910_v40 = vmul.f32 1.442695, %v5316_v38  ;;  %v5315_v53 = vmul.f32 -1.702, %v3896_v39 }
0x1e0b   :  { %6128 = vpow2.f32 %v3910_v40  ;;  %v3908_v42 = vmul.f32 1.442695, %v5315_v53 }
0x1e0d   :  { %6130 = vpow2.f32 %v3908_v42 }
0x1e18   :  { %v6129_v28 = vpop.eup %6128 }
0x1e19   :  { %v3913_v43 = vadd.f32 1.0, %v6129_v28 }
0x1e1a   :  { %v6131_v30 = vpop.eup %6130 }
0x1e1b   :  { %v3912_v44 = vadd.f32 1.0, %v6131_v30  ;;  %6132 = vrcp.f32 %v3913_v43 }
0x1e1d   :  { %6134 = vrcp.f32 %v3912_v44 }
0x1e28   :  { %v6133_v45 = vpop.eup %6132 }
0x1e29   :  { %v3919_v50 = vmul.f32 %v6133_v45, %v3901_v36 }
0x1e2a   :  { %v6135_v11 = vpop.eup %6134 }
0x1e2b   :  { %v3918_v46 = vmul.f32 %v6135_v11, %v3896_v39 }
0x1e2d   :  { %5854 = vmatprep.mubr.msk.f32.mxu1 %vm1411_vm7, %v3918_v46 }
0x1e2e   :  { %5855 = vmatmul.mubr.msk.f32.vlgmr.msra.gmra.mxu1 %vm1411_vm7, %v3919_v50 }
0x1e2f   :  { %5880 = vmatprep.mubr.msk.f32.mxu1 %vm6277_vm4, %v6276_v14 }
0x1eee   :  { %v5856_v48 = vpop.f32.mrf.mxu1 }
0x1eef   :  { %v4013_v49 = vadd.f32 %v5856_v48, %v5317_v41 }
0x1ef0   :  { %v4007_v51 = vpop.f32.mrf.mxu1 }
0x1ef1   :  { %v7106_v54 = vadd.f32 %v4013_v49, %v7069_v60  ;;  %v4008_v56 = vadd.f32 %v5317_v41, %v4007_v51 }
0x1ef3   :  { %v7109_v24 = vadd.f32 %v4008_v56, %v7072_v47  ;;  %v4025_v57 = vsel %vm223_vm3, %v7106_v54, 0.0 }
0x1ef4   :  { %4026 = vadd.xlane.f32.xlu0 %v4025_v57 }
0x1ef5   :  { %v4022_v22 = vsel %vm223_vm3, %v7109_v24, 0.0 }
0x1ef6   :  { %4023 = vadd.xlane.f32.xlu1 %v4022_v22  ;;  %v5341_v22 = vld [vmem:[%s7296_s7 + $0x38] sm:$0xff] }
0x1f7d   :  { %v4027_v59 = vpop.xlane.xlu0 %4026 }
0x1f7e   :  { %v4029_v52 = vmul.f32 0.03125, %v4027_v59 }
0x1f7f   :  { %v4024_v58 = vpop.xlane.xlu1 %4023 }
0x1f80   :  { %v4031_v60 = vsub.f32 %v7106_v54, %v4029_v52  ;;  %v4028_v55 = vmul.f32 0.03125, %v4024_v58 }
0x1f82   :  { %v4030_v47 = vsub.f32 %v7109_v24, %v4028_v55  ;;  %v4033_v63 = vmul.f32 %v4031_v60, %v4031_v60 }
0x1f84   :  { %v4037_v0 = vsel %vm223_vm3, %v4033_v63, 0.0  ;;  %v4032_v1 = vmul.f32 %v4030_v47, %v4030_v47 }
0x1f85   :  { %4038 = vadd.xlane.f32.xlu0 %v4037_v0 }
0x1f86   :  { %v4034_v62 = vsel %vm223_vm3, %v4032_v1, 0.0  ;;  %v5339_v1 = vld [vmem:[%s7296_s7 + $0x28] sm:$0xff] }
0x1f87   :  { %4035 = vadd.xlane.f32.xlu1 %v4034_v62  ;;  %v5338_v62 = vld [vmem:[%s7296_s7 + $0x20] sm:$0xff] }
0x200e   :  { %v4039_v61 = vpop.xlane.xlu0 %4038 }
0x200f   :  { %v4041_v5 = vmul.f32 0.03125, %v4039_v61  ;;  %v5343_v61 = vld [vmem:[%s7297_s10 + $0x1] ss:$0 sm:$0xff] }
0x2010   :  { %v4036_v18 = vpop.xlane.xlu1 %4035 }
0x2011   :  { %v4043_v6 = vadd.f32 1e-05, %v4041_v5  ;;  %v4040_v7 = vmul.f32 0.03125, %v4036_v18 }
0x2013   :  { %6136 = vrsqrt.f32 %v4043_v6  ;;  %v4042_v31 = vadd.f32 1e-05, %v4040_v7 }
0x2015   :  { %6138 = vrsqrt.f32 %v4042_v31 }
0x2020   :  { %v6137_v8 = vpop.eup %6136 }
0x2021   :  { %v4047_v10 = vmul.f32 %v6137_v8, %v4031_v60 }
0x2022   :  { %v6139_v12 = vpop.eup %6138 }
0x2023   :  { %v4046_v34 = vmul.f32 %v6139_v12, %v4030_v47  ;;  %v4055_v15 = vmul.f32 %v5322_v9, %v4047_v10  ;;  %v5340_v47 = vld [vmem:[%s7296_s7 + $0x30] sm:$0xff] }
0x2025   :  { %v4054_v20 = vmul.f32 %v5322_v9, %v4046_v34  ;;  %v4063_v23 = vadd.f32 %v5323_v16, %v4055_v15 }
0x2027   :  { %v4062_v21 = vadd.f32 %v5323_v16, %v4054_v20 }
0x2029   :  { %5865 = vmatprep.mubr.msk.f32.mxu0 %vm223_vm3, %v4062_v21 }
0x202a   :  { %5866 = vmatmul.mubr.msk.f32.vlgmr.msra.gmra.mxu0 %vm223_vm3, %v4063_v23 }
0x202b   :  { %5870 = vmatprep.mubr.msk.f32.mxu0 %vm6277_vm4, %v6276_v14 }
0x20ea   :  { %v5867_v25 = vpop.f32.mrf.mxu0 }
0x20eb   :  { %v4155_v26 = vadd.f32 %v5867_v25, %v5329_v19  ;;  %v5353_v25 = vld [vmem:[%s7298_s11 + $0x38] sm:$0xff] }
0x20ec   :  { %v4149_v27 = vpop.f32.mrf.mxu0 }
0x20ed   :  { %v4150_v29 = vadd.f32 %v5329_v19, %v4149_v27  ;;  %4236 = vrot.lane.b32.xlu0 %v4155_v26, %s6278_s0  ;;  %v5351_v27 = vld [vmem:[%s7298_s11 + $0x28] sm:$0xff] }
0x20ef   :  { %4159 = vrot.lane.b32.xlu1 %v4150_v29, %s6278_s0  ;;  %s7305_s0 = sld [smem:[#allocation36_spill]] }
0x215f   :  { %v4237_v36 = vpop.permute.xlu0 %4236 }
0x2161   :  { %v4160_v33 = vpop.permute.xlu1 %4159 }
0x2162   :  { %5869 = vmatpush3.xpose.msk.msra.mxu0 %vm223_vm3, %v4160_v33 }
0x2163   :  { %5873 = vmatprep.subr.mxu0 %v6276_v14 }
0x2165   :  { %5871 = vmatmul.mubr.msk.f32.vlgmr.msra.gmra.mxu0 %vm223_vm3, %v4150_v29 }
0x2166   :  { %5874 = vmatpush3.xpose.msk.msra.mxu0 %vm223_vm3, %v4237_v36  ;;  %5875 = vmatprep.mubr.msk.f32.mxu0 %vm6277_vm4, %v6276_v14 }
0x2167   :  { %5883 = vmatprep.subr.mxu0 %v6276_v14 }
0x2169   :  { %5876 = vmatmul.mubr.msk.f32.vlgmr.msra.gmra.mxu0 %vm223_vm3, %v4155_v26 }
0x216a   :  { %5885 = vmatprep.mubr.msk.f32.mxu0 %vm6277_vm4, %v6276_v14 }
0x2225   :  { %v4231_v37 = vpop.f32.mrf.mxu0 }
0x2226   :  { %v4312_v38 = vmul.f32 0.17677669, %v4231_v37 }
0x2227   :  { %v5872_v39 = vpop.f32.mrf.mxu0 }
0x2228   :  { %v4314_v40 = vadd.f32 %v4312_v38, %v7046_v17 }
0x2229   :  { %v4308_v53 = vpop.f32.mrf.mxu0 }
0x222a   :  { %v4313_v42 = vmul.f32 0.17677669, %v4308_v53  ;;  %v4316_v28 = vsel %vm721_vm6, %v4314_v40, -inf }
0x222b   :  { %4317 = vmax.xlane.f32.xlu1 %v4316_v28  ;;  %v5877_v43 = vpop.f32.mrf.mxu0 }
0x222c   :  { %v4315_v30 = vadd.f32 %v4313_v42, %v7046_v17  ;;  %v5348_v42 = vld [vmem:[%s7299_s15 + $0x1] ss:$0 sm:$0xff] }
0x222e   :  { %v4319_v44 = vsel %vm721_vm6, %v4315_v30, -inf }
0x222f   :  { %4320 = vmax.xlane.f32.xlu0 %v4319_v44 }
0x22b4   :  { %v4318_v45 = vpop.xlane.xlu1 %4317 }
0x22b5   :  { %v4322_v11 = vsub.f32 %v4314_v40, %v4318_v45  ;;  %v5349_v45 = vld [vmem:[%s7300_s16 + $0x1] ss:$0 sm:$0xff] }
0x22b7   :  { %v4324_v46 = vmul.f32 1.442695, %v4322_v11 }
0x22b8   :  { %v4321_v50 = vpop.xlane.xlu0 %4320 }
0x22b9   :  { %6140 = vpow2.f32 %v4324_v46  ;;  %v4323_v41 = vsub.f32 %v4315_v30, %v4321_v50 }
0x22bb   :  { %v4326_v48 = vmul.f32 1.442695, %v4323_v41  ;;  %v5367_v41 = vld [vmem:[%s7301_s18 + $0x78] sm:$0xff] }
0x22bd   :  { %6142 = vpow2.f32 %v4326_v48  ;;  %v5366_v48 = vld [vmem:[%s7301_s18 + $0x70] sm:$0xff] }
0x22c6   :  { %v6141_v49 = vpop.eup %6140 }
0x22c7   :  { %v4328_v51 = vsel %vm721_vm6, %v6141_v49, 0.0 }
0x22c8   :  { %4329 = vadd.xlane.f32.xlu1 %v4328_v51  ;;  %v5364_v51 = vld [vmem:[%s7301_s18 + $0x60] sm:$0xff] }
0x22ca   :  { %v6143_v56 = vpop.eup %6142 }
0x22cb   :  { %v4331_v57 = vsel %vm721_vm6, %v6143_v56, 0.0 }
0x22cc   :  { %4332 = vadd.xlane.f32.xlu0 %v4331_v57  ;;  %v5362_v57 = vld [vmem:[%s7301_s18 + $0x50] sm:$0xff] }
0x22d9   :  { %4338 = vrot.lane.b32.xlu1 %v4150_v29, %s6280_s5  ;;  %v5350_v29 = vld [vmem:[%s7298_s11 + $0x20] sm:$0xff] }
0x22e2   :  { %4414 = vrot.lane.b32.xlu0 %v4155_v26, %s6280_s5  ;;  %v5352_v26 = vld [vmem:[%s7298_s11 + $0x30] sm:$0xff]  ;;  %s7306_s5 = sld [smem:[#allocation37_spill]] }
0x2351   :  { %v4330_v17 = vpop.xlane.xlu1 %4329 }
0x2352   :  { %6144 = vrcp.f32 %v4330_v17  ;;  %v5361_v17 = vld [vmem:[%s7301_s18 + $0x48] sm:$0xff] }
0x2355   :  { %v4339_v59 = vpop.permute.xlu1 %4338  ;;  %v4333_v52 = vpop.xlane.xlu0 %4332 }
0x2356   :  { %6146 = vrcp.f32 %v4333_v52  ;;  %5879 = vmatpush3.msra.mxu1 %v4339_v59  ;;  %v5372_v59 = vsel %vm4842_vm15, 1.0, %v6276_v14  ;;  %v5355_v52 = vld [vmem:[%s7302_s22 + $0x1] ss:$0 sm:$0xff] }
0x2357   :  { %5888 = vmatprep.subr.mxu1 %v5341_v22 }
0x2359   :  { %v4415_v58 = vpop.permute.xlu0 %4414 }
0x235a   :  { %5884 = vmatpush3.msra.mxu0 %v4415_v58 }
0x235b   :  { %5899 = vmatprep.subr.mxu0 %v5353_v25 }
0x235f   :  { %v6145_v60 = vpop.eup %6144 }
0x2360   :  { %v4336_v55 = vmul.f32 %v6145_v60, %v6141_v49  ;;  %v5365_v49 = vld [vmem:[%s7301_s18 + $0x68] sm:$0xff] }
0x2362   :  { %5881 = vmatmul.mubr.msk.f32.vlgmr.msra.gmra.mxu1 %vm721_vm6, %v4336_v55 }
0x2363   :  { %v6147_v63 = vpop.eup %6146  ;;  %5889 = vmatpush3.msra.mxu1 %v5341_v22  ;;  %v5360_v22 = vld [vmem:[%s7301_s18 + $0x40] sm:$0xff] }
0x2364   :  { %v4337_v0 = vmul.f32 %v6147_v63, %v6143_v56  ;;  %5890 = vmatprep.subr.mxu1 %v5340_v47  ;;  %v5363_v56 = vld [vmem:[%s7301_s18 + $0x58] sm:$0xff] }
0x2365   :  { %5891 = vmatpush3.msra.mxu1 %v5340_v47 }
0x2366   :  { %5886 = vmatmul.mubr.msk.f32.vlgmr.msra.gmra.mxu0 %vm721_vm6, %v4337_v0  ;;  %5892 = vmatprep.subr.mxu1 %v5339_v1 }
0x2367   :  { %5893 = vmatpush3.msra.mxu1 %v5339_v1  ;;  %5900 = vmatpush3.msra.mxu0 %v5353_v25 }
0x2368   :  { %5894 = vmatprep.subr.mxu1 %v5338_v62  ;;  %5901 = vmatprep.subr.mxu0 %v5352_v26 }
0x2369   :  { %5895 = vmatpush3.msra.mxu1 %v5338_v62  ;;  %5902 = vmatpush3.msra.mxu0 %v5352_v26 }
0x236a   :  { %5903 = vmatprep.subr.mxu0 %v5351_v27  ;;  %5910 = vmatprep.subr.mxu1 %v5367_v41 }
0x236b   :  { %5904 = vmatpush3.msra.mxu0 %v5351_v27 }
0x236c   :  { %5905 = vmatprep.subr.mxu0 %v5350_v29 }
0x236d   :  { %5906 = vmatpush3.msra.mxu0 %v5350_v29 }
0x236e   :  { %5929 = vmatprep.subr.mxu0 %v6276_v14 }
0x2422   :  { %v4410_v2 = vpop.f32.mrf.mxu1 }
0x2423   :  { %5896 = vmatprep.mubr.msk.f32.mxu1 %vm223_vm3, %v4410_v2 }
0x2424   :  { %v5882_v3 = vpop.f32.mrf.mxu1 }
0x2426   :  { %v4486_v13 = vpop.f32.mrf.mxu0 }
0x2427   :  { %5897 = vmatmul.mubr.msk.f32.vlgmr.msra.gmra.mxu1 %vm223_vm3, %v4486_v13 }
0x2428   :  { %v5887_v4 = vpop.f32.mrf.mxu0  ;;  %5911 = vmatpush3.msra.mxu1 %v5367_v41 }
0x2429   :  { %5912 = vmatprep.subr.mxu1 %v5366_v48 }
0x242a   :  { %5913 = vmatpush3.msra.mxu1 %v5366_v48 }
0x242b   :  { %5914 = vmatprep.subr.mxu1 %v5365_v49 }
0x242c   :  { %5915 = vmatpush3.msra.mxu1 %v5365_v49  ;;  %v4918_v49 = vld [vmem:[%s7304_s26 + $0x18] sm:$0xff] }
0x242d   :  { %5916 = vmatprep.subr.mxu1 %v5364_v51 }
0x242e   :  { %5917 = vmatpush3.msra.mxu1 %v5364_v51  ;;  %v4917_v51 = vld [vmem:[%s7304_s26 + $0x10] sm:$0xff] }
0x242f   :  { %5918 = vmatprep.subr.mxu1 %v5363_v56 }
0x2430   :  { %5919 = vmatpush3.msra.mxu1 %v5363_v56  ;;  %v4916_v56 = vld [vmem:[%s7304_s26 + $0x8] sm:$0xff] }
0x2431   :  { %5920 = vmatprep.subr.mxu1 %v5362_v57 }
0x2432   :  { %5921 = vmatpush3.msra.mxu1 %v5362_v57  ;;  %v4915_v57 = vld [vmem:[%s7304_s26] sm:$0xff] }
0x2433   :  { %5922 = vmatprep.subr.mxu1 %v5361_v17 }
0x2434   :  { %5923 = vmatpush3.msra.mxu1 %v5361_v17 }
0x2435   :  { %5924 = vmatprep.subr.mxu1 %v5360_v22 }
0x2436   :  { %5925 = vmatpush3.msra.mxu1 %v5360_v22 }
0x24e7   :  { %v5898_v5 = vpop.f32.mrf.mxu1 }
0x24e8   :  { %v4581_v18 = vadd.f32 %v5898_v5, %v5343_v61 }
0x24e9   :  { %v4575_v6 = vpop.f32.mrf.mxu1 }
0x24ea   :  { %v7161_v7 = vadd.f32 %v4581_v18, %v7106_v54  ;;  %v4576_v31 = vadd.f32 %v5343_v61, %v4575_v6  ;;  %v5369_v6 = vld [vmem:[%s7303_s23 + $0x1] ss:$0 sm:$0xff] }
0x24ec   :  { %v7164_v8 = vadd.f32 %v4576_v31, %v7109_v24  ;;  %v4593_v9 = vsel %vm223_vm3, %v7161_v7, 0.0 }
0x24ed   :  { %4594 = vadd.xlane.f32.xlu0 %v4593_v9 }
0x24ee   :  { %v4590_v10 = vsel %vm223_vm3, %v7164_v8, 0.0 }
0x24ef   :  { %4591 = vadd.xlane.f32.xlu1 %v4590_v10 }
0x2576   :  { %v4595_v12 = vpop.xlane.xlu0 %4594 }
0x2577   :  { %v4597_v34 = vmul.f32 0.03125, %v4595_v12 }
0x2578   :  { %v4592_v15 = vpop.xlane.xlu1 %4591 }
0x2579   :  { %v4599_v54 = vsub.f32 %v7161_v7, %v4597_v34  ;;  %v4596_v16 = vmul.f32 0.03125, %v4592_v15 }
0x257b   :  { %v4598_v24 = vsub.f32 %v7164_v8, %v4596_v16  ;;  %v4601_v20 = vmul.f32 %v4599_v54, %v4599_v54 }
0x257d   :  { %v4605_v21 = vsel %vm223_vm3, %v4601_v20, 0.0  ;;  %v4600_v23 = vmul.f32 %v4598_v24, %v4598_v24 }
0x257e   :  { %4606 = vadd.xlane.f32.xlu0 %v4605_v21 }
0x257f   :  { %v4602_v19 = vsel %vm223_vm3, %v4600_v23, 0.0 }
0x2580   :  { %4603 = vadd.xlane.f32.xlu1 %v4602_v19 }
0x2591   :  { %4846 = vbcast.lane.b32.xlu1 %v5372_v59, 256 }
0x2607   :  { %v4607_v33 = vpop.xlane.xlu0 %4606 }
0x2608   :  { %v4609_v36 = vmul.f32 0.03125, %v4607_v33 }
0x2609   :  { %v4604_v37 = vpop.xlane.xlu1 %4603 }
0x260a   :  { %v4611_v38 = vadd.f32 1e-05, %v4609_v36  ;;  %v4608_v39 = vmul.f32 0.03125, %v4604_v37 }
0x260c   :  { %6148 = vrsqrt.f32 %v4611_v38  ;;  %v4610_v40 = vadd.f32 1e-05, %v4608_v39 }
0x260d   :  { %v4847_v12 = vpop.permute.xlu1 %4846 }
0x260e   :  { %6150 = vrsqrt.f32 %v4610_v40 }
0x2619   :  { %v6149_v53 = vpop.eup %6148 }
0x261a   :  { %v4615_v28 = vmul.f32 %v6149_v53, %v4599_v54 }
0x261b   :  { %v6151_v43 = vpop.eup %6150 }
0x261c   :  { %v4614_v30 = vmul.f32 %v6151_v43, %v4598_v24  ;;  %v4623_v44 = vmul.f32 %v5348_v42, %v4615_v28 }
0x261e   :  { %v4622_v11 = vmul.f32 %v5348_v42, %v4614_v30  ;;  %v4631_v50 = vadd.f32 %v5349_v45, %v4623_v44 }
0x2620   :  { %v4630_v46 = vadd.f32 %v5349_v45, %v4622_v11 }
0x2622   :  { %5907 = vmatprep.mubr.msk.f32.mxu0 %vm223_vm3, %v4630_v46 }
0x2623   :  { %5908 = vmatmul.mubr.msk.f32.vlgmr.msra.gmra.mxu0 %vm223_vm3, %v4631_v50  ;;  %v5002_v50 = vmul.f32 %v6997_v35, %v6997_v35 }
0x2624   :  { %5937 = vmatprep.mubr.msk.f32.mxu0 %vm6277_vm4, %v6276_v14  ;;  %5930 = vmatpush3.msra.mxu0 %v4918_v49 }
0x2625   :  { %v5003_v48 = vsel %vm3149_vm13, %v5002_v50, 0.0  ;;  %5931 = vmatprep.subr.mxu0 %v6276_v14 }
0x2626   :  { %5932 = vmatpush3.msra.mxu0 %v4917_v51 }
0x2627   :  { %5933 = vmatprep.subr.mxu0 %v6276_v14 }
0x2628   :  { %5934 = vmatpush3.msra.mxu0 %v4916_v56 }
0x2629   :  { %5935 = vmatprep.subr.mxu0 %v6276_v14 }
0x262a   :  { %5936 = vmatpush3.msra.mxu0 %v4915_v57 }
0x262b   :  { %5940 = vmatprep.subr.mxu0 %v6276_v14 }
0x26e3   :  { %v5909_v58 = vpop.f32.mrf.mxu0 }
0x26e4   :  { %v4723_v60 = vadd.f32 %v5909_v58, %v5355_v52 }
0x26e5   :  { %v4717_v55 = vpop.f32.mrf.mxu0 }
0x26e6   :  { %v5359_v47 = vmul.f32 -1.702, %v4723_v60  ;;  %v4718_v63 = vadd.f32 %v5355_v52, %v4717_v55 }
0x26e8   :  { %v4732_v0 = vmul.f32 1.442695, %v5359_v47  ;;  %v5358_v1 = vmul.f32 -1.702, %v4718_v63 }
0x26ea   :  { %6152 = vpow2.f32 %v4732_v0  ;;  %v4730_v62 = vmul.f32 1.442695, %v5358_v1  ;;  %v5373_v0 = vld [vmem:[%s7305_s0] ss:$0 sm:$0xff] }
0x26ec   :  { %6154 = vpow2.f32 %v4730_v62 }
0x26f7   :  { %v6153_v2 = vpop.eup %6152 }
0x26f8   :  { %v4735_v3 = vadd.f32 1.0, %v6153_v2 }
0x26f9   :  { %v6155_v13 = vpop.eup %6154 }
0x26fa   :  { %v4734_v4 = vadd.f32 1.0, %v6155_v13  ;;  %6156 = vrcp.f32 %v4735_v3  ;;  %v5374_v13 = vld [vmem:[%s7306_s5] ss:$0 sm:$0xff] }
0x26fc   :  { %6158 = vrcp.f32 %v4734_v4 }
0x2707   :  { %v6157_v32 = vpop.eup %6156 }
0x2708   :  { %v4741_v18 = vmul.f32 %v6157_v32, %v4723_v60 }
0x2709   :  { %v6159_v61 = vpop.eup %6158 }
0x270a   :  { %v4740_v5 = vmul.f32 %v6159_v61, %v4718_v63 }
0x270c   :  { %5926 = vmatprep.mubr.msk.f32.mxu1 %vm1411_vm7, %v4740_v5 }
0x270d   :  { %5927 = vmatmul.mubr.msk.f32.vlgmr.msra.gmra.mxu1 %vm1411_vm7, %v4741_v18 }
0x27cd   :  { %v5928_v31 = vpop.f32.mrf.mxu1 }
0x27ce   :  { %v4837_v9 = vadd.f32 %v5928_v31, %v5369_v6 }
0x27cf   :  { %v4831_v10 = vpop.f32.mrf.mxu1 }
0x27d0   :  { %v4832_v34 = vadd.f32 %v5369_v6, %v4831_v10  ;;  %v4841_v15 = vadd.f32 %v4837_v9, %v7161_v7  ;;  %v5010_v9 = vstv %s6498_s4 }
0x27d1   :  { %v5011_v10 = vmul.f32 1.442695, %v5010_v9 }
0x27d2   :  { %v4840_v54 = vadd.f32 %v4832_v34, %v7164_v8  ;;  %v4849_v16 = vmul.f32 %v4847_v12, %v4841_v15 }
0x27d4   :  { %v4848_v24 = vmul.f32 %v4847_v12, %v4840_v54  ;;  %v4857_v20 = vsel %vm223_vm3, %v4849_v16, 0.0 }
0x27d5   :  { %v4858_v21 = vrot.slane %v4857_v20, 4 }
0x27d6   :  { %v4850_v23 = vsel %vm223_vm3, %v4848_v24, 0.0 }
0x27d7   :  { %v4851_v19 = vrot.slane %v4850_v23, 4  ;;  %v4859_v25 = vadd.f32 %v4858_v21, %v4857_v20 }
0x27d9   :  { %v4852_v26 = vadd.f32 %v4851_v19, %v4850_v23  ;;  %v4860_v27 = vrot.slane %v4859_v25, 2 }
0x27db   :  { %v4853_v29 = vrot.slane %v4852_v26, 2  ;;  %v4861_v33 = vadd.f32 %v4860_v27, %v4859_v25 }
0x27dd   :  { %v4854_v36 = vadd.f32 %v4853_v29, %v4852_v26  ;;  %v4862_v37 = vrot.slane %v4861_v33, 1 }
0x27df   :  { %v4855_v38 = vrot.slane %v4854_v36, 1  ;;  %v4863_v7 = vadd.f32 %v4862_v37, %v4861_v33 }
0x27e1   :  { %v4856_v39 = vadd.f32 %v4855_v38, %v4854_v36 }
0x27e3   :  { %v4868_v8 = vsel %vm2962_vm9, %v4863_v7, %v4856_v39 }
0x27e4   :  { %v4870_v40 = vsel %vm192_vm1, %v4868_v8, 0.0 }
0x27e5   :  { %4871 = vadd.xlane.f32.xlu0 %v4870_v40 }
0x286e   :  { %v4872_v53 = vpop.xlane.xlu0 %4871 }
0x286f   :  { %v4873_v42 = vmul.f32 0.03125, %v4872_v53 }
0x2871   :  { %v4875_v28 = vrot.slane %v4873_v42, 1  ;;  %v4878_v43 = vsub.f32 %v4856_v39, %v4873_v42 }
0x2873   :  { %v4879_v30 = vsub.f32 %v4863_v7, %v4875_v28  ;;  %v4880_v45 = vmul.f32 %v4878_v43, %v4878_v43 }
0x2875   :  { %v4881_v44 = vmul.f32 %v4879_v30, %v4879_v30 }
0x2877   :  { %v4884_v11 = vrot.slane %v4881_v44, 7 }
0x2879   :  { %v4885_v46 = vsel %vm2962_vm9, %v4884_v11, %v4880_v45 }
0x287a   :  { %v4887_v41 = vsel %vm192_vm1, %v4885_v46, 0.0 }
0x287b   :  { %4888 = vadd.xlane.f32.xlu0 %v4887_v41 }
0x287f   :  { %5004 = vadd.xlane.f32.xlu0 %v5003_v48 }
0x2904   :  { %v4889_v17 = vpop.xlane.xlu0 %4888 }
0x2905   :  { %v4890_v22 = vmul.f32 0.03125, %v4889_v17 }
0x2907   :  { %v4891_v59 = vadd.f32 1e-05, %v4890_v22 }
0x2908   :  { %v5005_v52 = vpop.xlane.xlu0 %5004 }
0x2909   :  { %6160 = vrsqrt.f32 %v4891_v59  ;;  %v5006_v58 = vadd.f32 1e-12, %v5005_v52 }
0x290b   :  { %6162 = vrsqrt.f32 %v5006_v58 }
0x290c   :  { %6164 = vpow2.f32 %v5011_v10 }
0x2916   :  { %v6161_v60 = vpop.eup %6160 }
0x2917   :  { %v4894_v55 = vrot.slane %v6161_v60, 1  ;;  %v4897_v47 = vmul.f32 %v6161_v60, %v4878_v43 }
0x2918   :  { %v6163_v63 = vpop.eup %6162 }
0x2919   :  { %v4898_v1 = vmul.f32 %v4894_v55, %v4879_v30  ;;  %v5008_v62 = vmul.f32 %v6163_v63, %v6997_v35  ;;  %v4905_v2 = vmul.f32 %v5373_v0, %v4897_v47  ;;  %v6165_v12 = vpop.eup %6164 }
0x291a   :  { %5945 = vpush %v6165_v12 }
0x291b   :  { %v4906_v3 = vmul.f32 %v5373_v0, %v4898_v1  ;;  %5015 = vst.msk [vmem:[#allocation7] sm:$0xf] %vm3149_vm13, %v5008_v62  ;;  %v4913_v32 = vadd.f32 %v5374_v13, %v4905_v2 }
0x291d   :  { %v4914_v4 = vadd.f32 %v5374_v13, %v4906_v3 }
0x291f   :  { %v4921_v61 = vrot.slane %v4914_v4, 7 }
0x2921   :  { %v4922_v5 = vsel %vm2962_vm9, %v4921_v61, %v4913_v32 }
0x2922   :  { %5938 = vmatmul.mubr.msk.f32.vlgmr.msra.gmra.mxu0 %vm223_vm3, %v4922_v5 }
0x2923   :  { %5941 = vmatpush3.xpose.msk.msra.mxu0 %vm223_vm3, %v5008_v62  ;;  %5942 = vmatprep.mubr.msk.f32.mxu0 %vm6277_vm4, %v6276_v14 }
0x29e2   :  { %v4991_v18 = vpop.f32.mrf.mxu0 }
0x29e3   :  { %v4995_v35 = vmul.f32 %v4991_v18, %v4991_v18 }
0x29e4   :  { %v5939_v6 = vpop.f32.mrf.mxu0 }
0x29e5   :  { %v4996_v31 = vsel %vm192_vm1, %v4995_v35, 0.0 }
0x29e6   :  { %4997 = vadd.xlane.f32.xlu0 %v4996_v31 }
0x2a6f   :  { %v4998_v34 = vpop.xlane.xlu0 %4997 }
0x2a70   :  { %v4999_v15 = vadd.f32 1e-12, %v4998_v34 }
0x2a72   :  { %6166 = vrsqrt.f32 %v4999_v15 }
0x2a7f   :  { %v6167_v54 = vpop.eup %6166 }
0x2a80   :  { %v5001_v16 = vmul.f32 %v6167_v54, %v4991_v18 }
0x2a82   :  { %5943 = vmatmul.mubr.msk.f32.vlgmr.msra.gmra.mxu0 %vm223_vm3, %v5001_v16  ;;  %5014 = vst.msk [vmem:[#allocation5] sm:$0x3] %vm192_vm1, %v5001_v16 }
0x2a83   :  { %6179 = shalt.err (!%p6176_p4)
}
0x2a84   :  { %5115 = dma.vmem_to_hbm [thread:$0]  %s5113_s13, 64, %s6508_s12, [#allocation8]  }
0x2a85   :  { %s6188_s4 = scalar_lea.vmem %s5103_s25, 32  ;;  %p6193_p6 = scmp.lt.s32.totalorder %s5103_s25, %s5103_s25 }
0x2a86   :  { %p6189_p5 = scmp.ne.s32.totalorder %s5103_s25, %s6188_s4  ;;  %p6194_p7 = scmp.lt.s32.totalorder %s6188_s4, %s6188_s4 }
0x2a88   :  { %p6195_p8 = por %p6194_p7, %p6193_p6 }
0x2a8a   :  { %p6196_p9 = pnand %p6195_p8, %p6189_p5 }
0x2a8c   :  { %6199 = shalt.err (!%p6196_p9)
}
0x2a8d   :  { %5105 = dma.vmem_to_hbm [thread:$0]  %s5103_s25, 32, %s6503_s21, [#allocation6]   ;;  %vm5094_vm0 = vcmask 25600  }
0x2a8e   :  { %s5946_s3 = spop %5945  ;;  %s6284_s8 = smov [#allocation9]  }
0x2a8f   :  { %v5092_v14 = vstv %s5946_s3  ;;  %s5122_s14 = sshll.u32 %s6284_s8, 4  ;;  %s5123_s14 = int_to_ptr.vmem [resolvable:$true] %s5122_s14 }
0x2a90   :  { %s6208_s12 = scalar_lea.vmem %s5123_s14, 32  ;;  %p6213_p11 = scmp.lt.s32.totalorder %s5123_s14, %s5123_s14 }
0x2a91   :  { %p6209_p10 = scmp.ne.s32.totalorder %s5123_s14, %s6208_s12  ;;  %p6214_p12 = scmp.lt.s32.totalorder %s6208_s12, %s6208_s12 }
0x2a93   :  { %p6215_p13 = por %p6214_p12, %p6213_p11 }
0x2a95   :  { %p6216_p0 = pnand %p6215_p13, %p6209_p10 }
0x2b42   :  { %v5088_v24 = vpop.f32.mrf.mxu0 }
0x2b43   :  { %v5093_v20 = vmul.f32 %v5092_v14, %v5088_v24 }
0x2b44   :  { %v5944_v21 = vpop.f32.mrf.mxu0 }
0x2b45   :  { %5095 = vst.msk [vmem:[#allocation9] sm:$0x3] %vm5094_vm0, %v5093_v20 }
0x2b46   :  { %6219 = shalt.err (!%p6216_p0)
}
0x2b47   :  { %5125 = dma.vmem_to_hbm [thread:$0]  %s5123_s14, 32, %s6513_s27, [#allocation8]  }
0x2b48   :  { %6228 = dma.done.wait [#allocation6], 32  }
0x2b49   :  { %6229 = vsyncadd [#allocation6], 4294967264 }
0x2b4a   :  { %6230 = dma.done.wait [#allocation8], 96  }
0x2b4b   :  { %6231 = vsyncadd [#allocation8], 4294967200 }
0x2b4c   :  { %5135 = vsyncpa [#allocation6], 1 }
0x2b4d   :  { %5136 = vsyncpa [#allocation8], 1 }

</bundles_post_ra>
